<compile_context>
chip_gen: v7x
topology: tpu7x:2x2x1
jax: 0.10.0
libtpu: 0.0.40
codegen_flags: <defaults>
</compile_context>

<pallas_src>
import functools
import numpy as np
import jax
import jax.numpy as jnp
from jax.experimental import pallas as pl
from jax.experimental.pallas import tpu as pltpu

# Matmul precision inside the kernel. HIGHEST keeps f32 accuracy (needed to meet
# the rtol=1e-3 / atol=1e-4 check against the f32 reference below). Relax to
# jax.lax.Precision.DEFAULT (single bf16 MXU pass, 3-6x cheaper matmuls) when
# the accuracy budget allows / the batch is scaled up.
MATMUL_PRECISION = jax.lax.Precision.HIGHEST


def _round_up(x, m):
    return (x + m - 1) // m * m


def _neural_ode_kernel(dt_ref, ts_ref, cur_ref, x0_ref,
                       w1x_ref, w1c_ref, w1t_ref, b1_ref,
                       w2_ref, b2_ref, w3_ref, b3_ref,
                       w4t_ref, b4_ref, out_ref, *, precision):
    n_steps = cur_ref.shape[0]            # T - 1 (static)
    b_blk, t_pad = out_ref.shape          # static block dims

    # ---- hoist all weights/biases out of the time loop (loaded once) ----
    w1x = w1x_ref[...]                    # (1, 128) row of W1 for the state x
    w1c = w1c_ref[...]                    # (1, 128) row of W1 for the current
    w1t = w1t_ref[...]                    # (1, 128) row of W1 for the time
    b1 = b1_ref[...]                      # (1, 128)
    w2 = w2_ref[...]; b2 = b2_ref[...]    # (128, 128), (1, 128)
    w3 = w3_ref[...]; b3 = b3_ref[...]    # (128, 128) zero-padded, (1, 128)
    w4t = w4t_ref[...]                    # (1, 128) zero-padded transposed last layer
    b4 = b4_ref[...]                      # (1, 1)

    def f(y, c, tt):
        # first layer as broadcast outer products (K=3 is far below an MXU tile)
        h = jnp.maximum(y * w1x + c * w1c + tt * w1t + b1, 0.0)          # (B, 128)
        h = jnp.maximum(jnp.dot(h, w2, precision=precision,
                                preferred_element_type=jnp.float32) + b2, 0.0)
        h = jnp.maximum(jnp.dot(h, w3, precision=precision,
                                preferred_element_type=jnp.float32) + b3, 0.0)
        # last layer (128 -> 1, zero-padded cols) as elementwise mul + lane reduce
        return jnp.sum(h * w4t, axis=-1, keepdims=True) + b4             # (B, 1)

    lane = jax.lax.broadcasted_iota(jnp.int32, (b_blk, t_pad), 1)
    third = jnp.float32(1.0 / 3.0)

    y0 = x0_ref[...]                                                     # (B, 1)
    traj0 = jnp.where(lane == 0, y0, jnp.float32(0.0))                   # col 0 = x0

    def body(i, carry):
        y, traj = carry
        cur_i = cur_ref[i]                # (B, 4): current at the 4 RK4 stage times
        dt = dt_ref[i]
        t_a = ts_ref[4 * i]
        t_b = ts_ref[4 * i + 1]
        t_c = ts_ref[4 * i + 2]
        t_d = ts_ref[4 * i + 3]
        # torchdiffeq fixed-grid rk4 ("3/8 rule")
        k1 = f(y, cur_i[:, 0:1], t_a)
        k2 = f(y + dt * k1 * third, cur_i[:, 1:2], t_b)
        k3 = f(y + dt * (k2 - k1 * third), cur_i[:, 2:3], t_c)
        k4 = f(y + dt * (k1 - k2 + k3), cur_i[:, 3:4], t_d)
        y_new = y + (k1 + 3.0 * (k2 + k3) + k4) * dt * 0.125
        traj = jnp.where(lane == i + 1, y_new, traj)
        return y_new, traj

    _, traj = jax.lax.fori_loop(0, n_steps, body, (y0, traj0))

    # single lane-dense (last dim = multiple of 128) writeback for this batch block
    out_ref[...] = traj


def neural_ode_forward(x0, current_profile, t, params, precision=MATMUL_PRECISION):
    """x0: (B,1), current_profile: (B,T,1), t: (T,) -> (B,T,1)."""
    W1, b1, W2, b2, W3, b3, W4, b4 = params
    B = x0.shape[0]
    T = t.shape[0]
    n_steps = T - 1
    H1 = W1.shape[1]                 # 128
    H2 = W2.shape[1]                 # 128
    H3 = W3.shape[1]                 # 64
    H3P = _round_up(H3, 128)         # pad 64 -> 128 so every lane dim is full width

    # ---- glue (cheap, plain JAX): RK4 stage times, dt, nearest-t current ----
    t0 = t[:-1]
    t1 = t[1:]
    dt = (t1 - t0).astype(jnp.float32)                                   # (T-1,)
    ts = jnp.stack([t0, t0 + dt / 3.0, t0 + 2.0 * dt / 3.0, t1], 1)      # (T-1,4)
    idx = jnp.argmin(jnp.abs(ts[:, :, None] - t[None, None, :]), -1)     # (T-1,4)
    cur = current_profile[:, :, 0]                                       # (B,T)
    cur_stages = jnp.transpose(cur[:, idx], (1, 0, 2))                   # (T-1,B,4)

    # ---- layout plumbing, done once in the wrapper ----
    if B <= 128:
        b_pad = _round_up(B, 8)
        b_blk = b_pad
    else:
        b_pad = _round_up(B, 128)
        b_blk = 128
    grid_b = b_pad // b_blk
    t_pad = _round_up(T, 128)        # lane-dense trajectory width

    x0_p = jnp.pad(x0.astype(jnp.float32), ((0, b_pad - B), (0, 0)))
    cur_p = jnp.pad(cur_stages.astype(jnp.float32),
                    ((0, 0), (0, b_pad - B), (0, 0)))
    ts_flat = ts.reshape(-1).astype(jnp.float32)                         # (4*(T-1),)

    # split W1 into its 3 rows once; zero-pad the 64-wide layer to 128 outputs
    w1x = W1[0:1, :]
    w1c = W1[1:2, :]
    w1t = W1[2:3, :]
    W3p = jnp.zeros((H2, H3P), jnp.float32).at[:, :H3].set(W3)
    b3p = jnp.zeros((1, H3P), jnp.float32).at[:, :H3].set(b3)
    w4t = jnp.zeros((1, H3P), jnp.float32).at[:, :H3].set(W4[:, 0])

    smem_spec = pl.BlockSpec(memory_space=pltpu.MemorySpace.SMEM)

    def rep(shape):  # replicated block (same full-array block for every batch block)
        return pl.BlockSpec(shape, lambda b, _n=len(shape): (0,) * _n)

    kernel = functools.partial(_neural_ode_kernel, precision=precision)

    out = pl.pallas_call(
        kernel,
        out_shape=jax.ShapeDtypeStruct((b_pad, t_pad), jnp.float32),
        grid=(grid_b,),
        in_specs=[
            smem_spec,                                               # dt      (T-1,)
            smem_spec,                                               # ts_flat (4(T-1),)
            pl.BlockSpec((n_steps, b_blk, 4), lambda b: (0, b, 0)),  # cur_stages
            pl.BlockSpec((b_blk, 1), lambda b: (b, 0)),              # x0
            rep((1, H1)), rep((1, H1)), rep((1, H1)), rep((1, H1)),  # w1x,w1c,w1t,b1
            rep((H1, H2)), rep((1, H2)),                             # W2, b2
            rep((H2, H3P)), rep((1, H3P)),                           # W3p, b3p
            rep((1, H3P)), rep((1, 1)),                              # w4t, b4
        ],
        out_specs=pl.BlockSpec((b_blk, t_pad), lambda b: (b, 0)),
        compiler_params=pltpu.CompilerParams(
            dimension_semantics=("parallel",)),
    )(dt, ts_flat, cur_p, x0_p, w1x, w1c, w1t, b1, W2, b2, W3p, b3p, w4t, b4)

    # TODO(synk): for very long time grids, chunk T into 128-step slabs (extra
    # "arbitrary" grid axis, state carried in VMEM scratch) instead of carrying
    # the full (b_blk, t_pad) trajectory as a loop value.
    return out[:B, :T][:, :, None]                                       # (B,T,1)


# ----------------------- deterministic parameter init -----------------------
def init_params(key):
    dims = [(3, 128), (128, 128), (128, 64), (64, 1)]
    params = []
    for fan_in, fan_out in dims:
        key, kw, kb = jax.random.split(key, 3)
        bound = 1.0 / np.sqrt(fan_in)
        W = jax.random.uniform(kw, (fan_in, fan_out), jnp.float32, -bound, bound)
        b = jax.random.uniform(kb, (1, fan_out), jnp.float32, -bound, bound)
        params += [W, b]
    return params


# ----------------------------- pure-JAX reference ----------------------------
def reference_forward(x0, current_profile, t, params):
    HIGH = jax.lax.Precision.HIGHEST
    W1, b1, W2, b2, W3, b3, W4, b4 = params

    def net(inp):
        h = jax.nn.relu(jnp.dot(inp, W1, precision=HIGH) + b1)
        h = jax.nn.relu(jnp.dot(h, W2, precision=HIGH) + b2)
        h = jax.nn.relu(jnp.dot(h, W3, precision=HIGH) + b3)
        return jnp.dot(h, W4, precision=HIGH) + b4

    def f(tt, x):
        idx = jnp.argmin(jnp.abs(t - tt))
        c = current_profile[:, idx, :]
        tvec = jnp.full((x.shape[0], 1), tt, jnp.float32)
        return net(jnp.concatenate([x, c, tvec], axis=-1))

    y = x0
    ys = [y]
    for i in range(t.shape[0] - 1):
        t0, t1 = t[i], t[i + 1]
        dt = t1 - t0
        k1 = f(t0, y)
        k2 = f(t0 + dt / 3.0, y + dt * k1 / 3.0)
        k3 = f(t0 + 2.0 * dt / 3.0, y + dt * (k2 - k1 / 3.0))
        k4 = f(t1, y + dt * (k1 - k2 + k3))
        y = y + (k1 + 3.0 * (k2 + k3) + k4) * dt * 0.125
        ys.append(y)
    return jnp.transpose(jnp.stack(ys, 0), (1, 0, 2))


if __name__ == "__main__":
    B, T = 2, 8  # batch=2, time points=8, state_dim=1

    key = jax.random.PRNGKey(0)
    kx, kc, kp = jax.random.split(key, 3)
    x0 = jax.random.normal(kx, (B, 1), jnp.float32)
    current_profile = jax.random.normal(kc, (B, T, 1), jnp.float32)
    t = jnp.linspace(0.0, 1.0, T, dtype=jnp.float32)
    params = init_params(kp)

    out = jax.block_until_ready(neural_ode_forward(x0, current_profile, t, params))
    ref = jax.block_until_ready(reference_forward(x0, current_profile, t, params))

    assert out.shape == (B, T, 1), out.shape
    assert np.allclose(np.asarray(out), np.asarray(ref), rtol=1e-3, atol=1e-4), (
        np.max(np.abs(np.asarray(out) - np.asarray(ref))))

    print("KERNEL_OK")
</pallas_src>

<mosaic_0001>
module attributes {stable_mosaic.version = 11 : i64} {
  func.func @_neural_ode_kernel(%arg0: i32, %arg1: memref<7xf32, #tpu.memory_space<smem>>, %arg2: memref<28xf32, #tpu.memory_space<smem>>, %arg3: memref<7x8x4xf32, #tpu.memory_space<vmem>>, %arg4: memref<8x1xf32, #tpu.memory_space<vmem>>, %arg5: memref<1x128xf32, #tpu.memory_space<vmem>>, %arg6: memref<1x128xf32, #tpu.memory_space<vmem>>, %arg7: memref<1x128xf32, #tpu.memory_space<vmem>>, %arg8: memref<1x128xf32, #tpu.memory_space<vmem>>, %arg9: memref<128x128xf32, #tpu.memory_space<vmem>>, %arg10: memref<1x128xf32, #tpu.memory_space<vmem>>, %arg11: memref<128x128xf32, #tpu.memory_space<vmem>>, %arg12: memref<1x128xf32, #tpu.memory_space<vmem>>, %arg13: memref<1x128xf32, #tpu.memory_space<vmem>>, %arg14: memref<1x1xf32, #tpu.memory_space<vmem>>, %arg15: memref<8x128xf32, #tpu.memory_space<vmem>>) attributes {dimension_semantics = [#tpu.dimension_semantics<parallel>], iteration_bounds = array<i64: 1>, scalar_prefetch = 0 : i64, scratch_operands = 0 : i64, tpu.core_type = #tpu.core_type<tc>, window_params = [{transform_indices = @transform_0, window_bounds = array<i64: 7>}, {transform_indices = @transform_1, window_bounds = array<i64: 28>}, {transform_indices = @transform_2, window_bounds = array<i64: 7, 8, 4>}, {transform_indices = @transform_3, window_bounds = array<i64: 8, 1>}, {pipeline_mode = #tpu.pipeline_mode<synchronous>, transform_indices = @transform_4, window_bounds = array<i64: 1, 128>}, {pipeline_mode = #tpu.pipeline_mode<synchronous>, transform_indices = @transform_5, window_bounds = array<i64: 1, 128>}, {pipeline_mode = #tpu.pipeline_mode<synchronous>, transform_indices = @transform_6, window_bounds = array<i64: 1, 128>}, {pipeline_mode = #tpu.pipeline_mode<synchronous>, transform_indices = @transform_7, window_bounds = array<i64: 1, 128>}, {pipeline_mode = #tpu.pipeline_mode<synchronous>, transform_indices = @transform_8, window_bounds = array<i64: 128, 128>}, {pipeline_mode = #tpu.pipeline_mode<synchronous>, transform_indices = @transform_9, window_bounds = array<i64: 1, 128>}, {pipeline_mode = #tpu.pipeline_mode<synchronous>, transform_indices = @transform_10, window_bounds = array<i64: 128, 128>}, {pipeline_mode = #tpu.pipeline_mode<synchronous>, transform_indices = @transform_11, window_bounds = array<i64: 1, 128>}, {pipeline_mode = #tpu.pipeline_mode<synchronous>, transform_indices = @transform_12, window_bounds = array<i64: 1, 128>}, {pipeline_mode = #tpu.pipeline_mode<synchronous>, transform_indices = @transform_13, window_bounds = array<i64: 1, 1>}, {transform_indices = @transform_14, window_bounds = array<i64: 8, 128>}]} {
    %c0 = arith.constant 0 : index
    %c0_0 = arith.constant 0 : index
    %0 = vector.load %arg5[%c0, %c0_0] : memref<1x128xf32, #tpu.memory_space<vmem>>, vector<1x128xf32>
    %c0_1 = arith.constant 0 : index
    %c0_2 = arith.constant 0 : index
    %1 = vector.load %arg6[%c0_1, %c0_2] : memref<1x128xf32, #tpu.memory_space<vmem>>, vector<1x128xf32>
    %c0_3 = arith.constant 0 : index
    %c0_4 = arith.constant 0 : index
    %2 = vector.load %arg7[%c0_3, %c0_4] : memref<1x128xf32, #tpu.memory_space<vmem>>, vector<1x128xf32>
    %c0_5 = arith.constant 0 : index
    %c0_6 = arith.constant 0 : index
    %3 = vector.load %arg8[%c0_5, %c0_6] : memref<1x128xf32, #tpu.memory_space<vmem>>, vector<1x128xf32>
    %c0_7 = arith.constant 0 : index
    %c0_8 = arith.constant 0 : index
    %4 = vector.load %arg9[%c0_7, %c0_8] : memref<128x128xf32, #tpu.memory_space<vmem>>, vector<128x128xf32>
    %c0_9 = arith.constant 0 : index
    %c0_10 = arith.constant 0 : index
    %5 = vector.load %arg10[%c0_9, %c0_10] : memref<1x128xf32, #tpu.memory_space<vmem>>, vector<1x128xf32>
    %c0_11 = arith.constant 0 : index
    %c0_12 = arith.constant 0 : index
    %6 = vector.load %arg11[%c0_11, %c0_12] : memref<128x128xf32, #tpu.memory_space<vmem>>, vector<128x128xf32>
    %c0_13 = arith.constant 0 : index
    %c0_14 = arith.constant 0 : index
    %7 = vector.load %arg12[%c0_13, %c0_14] : memref<1x128xf32, #tpu.memory_space<vmem>>, vector<1x128xf32>
    %c0_15 = arith.constant 0 : index
    %c0_16 = arith.constant 0 : index
    %8 = vector.load %arg13[%c0_15, %c0_16] : memref<1x128xf32, #tpu.memory_space<vmem>>, vector<1x128xf32>
    %c0_17 = arith.constant 0 : index
    %c0_18 = arith.constant 0 : index
    %9 = vector.load %arg14[%c0_17, %c0_18] : memref<1x1xf32, #tpu.memory_space<vmem>>, vector<1x1xf32>
    %10 = tpu.iota {dimensions = array<i32: 1>} : vector<8x128xi32>
    %c0_19 = arith.constant 0 : index
    %c0_20 = arith.constant 0 : index
    %11 = vector.load %arg4[%c0_19, %c0_20] : memref<8x1xf32, #tpu.memory_space<vmem>>, vector<8x1xf32>
    %c0_i32 = arith.constant 0 : i32
    %12 = vector.broadcast %c0_i32 : i32 to vector<8x128xi32>
    %13 = arith.cmpi eq, %10, %12 : vector<8x128xi32>
    %cst = arith.constant 0.000000e+00 : f32
    %14 = vector.shape_cast %11 : vector<8x1xf32> to vector<8x1xf32>
    %15 = vector.broadcast %14 : vector<8x1xf32> to vector<8x128xf32>
    %16 = vector.broadcast %cst : f32 to vector<8x128xf32>
    %17 = arith.select %13, %15, %16 : vector<8x128xi1>, vector<8x128xf32>
    %cst_21 = arith.constant 0.333333343 : f32
    %c0_i32_22 = arith.constant 0 : i32
    %c7_i32 = arith.constant 7 : i32
    %18 = arith.addi %c0_i32_22, %c7_i32 : i32
    %c1_i32 = arith.constant 1 : i32
    %19:2 = scf.for %arg16 = %c0_i32_22 to %18 step %c1_i32 iter_args(%arg17 = %11, %arg18 = %17) -> (vector<8x1xf32>, vector<8x128xf32>)  : i32 {
      %21 = arith.index_cast %arg16 : i32 to index
      %c0_26 = arith.constant 0 : index
      %c0_27 = arith.constant 0 : index
      %22 = vector.load %arg3[%21, %c0_26, %c0_27] : memref<7x8x4xf32, #tpu.memory_space<vmem>>, vector<1x8x4xf32>
      %23 = vector.shape_cast %22 : vector<1x8x4xf32> to vector<8x4xf32>
      %24 = arith.index_cast %arg16 : i32 to index
      %25 = memref.load %arg1[%24] : memref<7xf32, #tpu.memory_space<smem>>
      %c4_i32 = arith.constant 4 : i32
      %26 = arith.muli %c4_i32, %arg16 : i32
      %27 = arith.index_cast %26 : i32 to index
      %28 = memref.load %arg2[%27] : memref<28xf32, #tpu.memory_space<smem>>
      %c4_i32_28 = arith.constant 4 : i32
      %29 = arith.muli %c4_i32_28, %arg16 : i32
      %c1_i32_29 = arith.constant 1 : i32
      %30 = arith.addi %29, %c1_i32_29 : i32
      %31 = arith.index_cast %30 : i32 to index
      %32 = memref.load %arg2[%31] : memref<28xf32, #tpu.memory_space<smem>>
      %c4_i32_30 = arith.constant 4 : i32
      %33 = arith.muli %c4_i32_30, %arg16 : i32
      %c2_i32 = arith.constant 2 : i32
      %34 = arith.addi %33, %c2_i32 : i32
      %35 = arith.index_cast %34 : i32 to index
      %36 = memref.load %arg2[%35] : memref<28xf32, #tpu.memory_space<smem>>
      %c4_i32_31 = arith.constant 4 : i32
      %37 = arith.muli %c4_i32_31, %arg16 : i32
      %c3_i32 = arith.constant 3 : i32
      %38 = arith.addi %37, %c3_i32 : i32
      %39 = arith.index_cast %38 : i32 to index
      %40 = memref.load %arg2[%39] : memref<28xf32, #tpu.memory_space<smem>>
      %41 = vector.extract_strided_slice %23 {offsets = [0, 0], sizes = [8, 1], strides = [1, 1]} : vector<8x4xf32> to vector<8x1xf32>
      %42 = vector.broadcast %arg17 : vector<8x1xf32> to vector<8x128xf32>
      %43 = vector.broadcast %0 : vector<1x128xf32> to vector<8x128xf32>
      %44 = arith.mulf %42, %43 : vector<8x128xf32>
      %45 = vector.broadcast %41 : vector<8x1xf32> to vector<8x128xf32>
      %46 = vector.broadcast %1 : vector<1x128xf32> to vector<8x128xf32>
      %47 = arith.mulf %45, %46 : vector<8x128xf32>
      %48 = arith.addf %44, %47 : vector<8x128xf32>
      %49 = vector.broadcast %28 : f32 to vector<1x128xf32>
      %50 = arith.mulf %49, %2 : vector<1x128xf32>
      %51 = vector.broadcast %50 : vector<1x128xf32> to vector<8x128xf32>
      %52 = arith.addf %48, %51 : vector<8x128xf32>
      %53 = vector.broadcast %3 : vector<1x128xf32> to vector<8x128xf32>
      %54 = arith.addf %52, %53 : vector<8x128xf32>
      %cst_32 = arith.constant 0.000000e+00 : f32
      %55 = vector.broadcast %cst_32 : f32 to vector<8x128xf32>
      %56 = arith.maximumf %54, %55 : vector<8x128xf32>
      %cst_33 = arith.constant dense<0.000000e+00> : vector<8x128xf32>
      %57 = tpu.matmul %56, %4, %cst_33 {dimension_numbers = #tpu.dot_dimension_numbers<[1], [0], [0], [1], [0, 0, 1, 1], [], []>, precision = #tpu.contract_precision<fp32>} : vector<8x128xf32>, vector<128x128xf32>, vector<8x128xf32> -> vector<8x128xf32>
      %58 = vector.broadcast %5 : vector<1x128xf32> to vector<8x128xf32>
      %59 = arith.addf %57, %58 : vector<8x128xf32>
      %cst_34 = arith.constant 0.000000e+00 : f32
      %60 = vector.broadcast %cst_34 : f32 to vector<8x128xf32>
      %61 = arith.maximumf %59, %60 : vector<8x128xf32>
      %cst_35 = arith.constant dense<0.000000e+00> : vector<8x128xf32>
      %62 = tpu.matmul %61, %6, %cst_35 {dimension_numbers = #tpu.dot_dimension_numbers<[1], [0], [0], [1], [0, 0, 1, 1], [], []>, precision = #tpu.contract_precision<fp32>} : vector<8x128xf32>, vector<128x128xf32>, vector<8x128xf32> -> vector<8x128xf32>
      %63 = vector.broadcast %7 : vector<1x128xf32> to vector<8x128xf32>
      %64 = arith.addf %62, %63 : vector<8x128xf32>
      %cst_36 = arith.constant 0.000000e+00 : f32
      %65 = vector.broadcast %cst_36 : f32 to vector<8x128xf32>
      %66 = arith.maximumf %64, %65 : vector<8x128xf32>
      %67 = vector.broadcast %8 : vector<1x128xf32> to vector<8x128xf32>
      %68 = arith.mulf %66, %67 : vector<8x128xf32>
      %cst_37 = arith.constant dense<0.000000e+00> : vector<8xf32>
      %69 = vector.multi_reduction <add>, %68, %cst_37 [1] : vector<8x128xf32> to vector<8xf32>
      %70 = vector.shape_cast %69 : vector<8xf32> to vector<8x1xf32>
      %71 = vector.broadcast %9 : vector<1x1xf32> to vector<8x1xf32>
      %72 = arith.addf %70, %71 : vector<8x1xf32>
      %73 = vector.broadcast %25 : f32 to vector<8x1xf32>
      %74 = arith.mulf %73, %72 : vector<8x1xf32>
      %75 = vector.broadcast %cst_21 : f32 to vector<8x1xf32>
      %76 = arith.mulf %74, %75 : vector<8x1xf32>
      %77 = arith.addf %arg17, %76 : vector<8x1xf32>
      %78 = vector.extract_strided_slice %23 {offsets = [0, 1], sizes = [8, 1], strides = [1, 1]} : vector<8x4xf32> to vector<8x1xf32>
      %79 = vector.broadcast %77 : vector<8x1xf32> to vector<8x128xf32>
      %80 = vector.broadcast %0 : vector<1x128xf32> to vector<8x128xf32>
      %81 = arith.mulf %79, %80 : vector<8x128xf32>
      %82 = vector.broadcast %78 : vector<8x1xf32> to vector<8x128xf32>
      %83 = vector.broadcast %1 : vector<1x128xf32> to vector<8x128xf32>
      %84 = arith.mulf %82, %83 : vector<8x128xf32>
      %85 = arith.addf %81, %84 : vector<8x128xf32>
      %86 = vector.broadcast %32 : f32 to vector<1x128xf32>
      %87 = arith.mulf %86, %2 : vector<1x128xf32>
      %88 = vector.broadcast %87 : vector<1x128xf32> to vector<8x128xf32>
      %89 = arith.addf %85, %88 : vector<8x128xf32>
      %90 = vector.broadcast %3 : vector<1x128xf32> to vector<8x128xf32>
      %91 = arith.addf %89, %90 : vector<8x128xf32>
      %cst_38 = arith.constant 0.000000e+00 : f32
      %92 = vector.broadcast %cst_38 : f32 to vector<8x128xf32>
      %93 = arith.maximumf %91, %92 : vector<8x128xf32>
      %cst_39 = arith.constant dense<0.000000e+00> : vector<8x128xf32>
      %94 = tpu.matmul %93, %4, %cst_39 {dimension_numbers = #tpu.dot_dimension_numbers<[1], [0], [0], [1], [0, 0, 1, 1], [], []>, precision = #tpu.contract_precision<fp32>} : vector<8x128xf32>, vector<128x128xf32>, vector<8x128xf32> -> vector<8x128xf32>
      %95 = vector.broadcast %5 : vector<1x128xf32> to vector<8x128xf32>
      %96 = arith.addf %94, %95 : vector<8x128xf32>
      %cst_40 = arith.constant 0.000000e+00 : f32
      %97 = vector.broadcast %cst_40 : f32 to vector<8x128xf32>
      %98 = arith.maximumf %96, %97 : vector<8x128xf32>
      %cst_41 = arith.constant dense<0.000000e+00> : vector<8x128xf32>
      %99 = tpu.matmul %98, %6, %cst_41 {dimension_numbers = #tpu.dot_dimension_numbers<[1], [0], [0], [1], [0, 0, 1, 1], [], []>, precision = #tpu.contract_precision<fp32>} : vector<8x128xf32>, vector<128x128xf32>, vector<8x128xf32> -> vector<8x128xf32>
      %100 = vector.broadcast %7 : vector<1x128xf32> to vector<8x128xf32>
      %101 = arith.addf %99, %100 : vector<8x128xf32>
      %cst_42 = arith.constant 0.000000e+00 : f32
      %102 = vector.broadcast %cst_42 : f32 to vector<8x128xf32>
      %103 = arith.maximumf %101, %102 : vector<8x128xf32>
      %104 = vector.broadcast %8 : vector<1x128xf32> to vector<8x128xf32>
      %105 = arith.mulf %103, %104 : vector<8x128xf32>
      %cst_43 = arith.constant dense<0.000000e+00> : vector<8xf32>
      %106 = vector.multi_reduction <add>, %105, %cst_43 [1] : vector<8x128xf32> to vector<8xf32>
      %107 = vector.shape_cast %106 : vector<8xf32> to vector<8x1xf32>
      %108 = vector.broadcast %9 : vector<1x1xf32> to vector<8x1xf32>
      %109 = arith.addf %107, %108 : vector<8x1xf32>
      %110 = vector.broadcast %cst_21 : f32 to vector<8x1xf32>
      %111 = arith.mulf %72, %110 : vector<8x1xf32>
      %112 = arith.subf %109, %111 : vector<8x1xf32>
      %113 = vector.broadcast %25 : f32 to vector<8x1xf32>
      %114 = arith.mulf %113, %112 : vector<8x1xf32>
      %115 = arith.addf %arg17, %114 : vector<8x1xf32>
      %116 = vector.extract_strided_slice %23 {offsets = [0, 2], sizes = [8, 1], strides = [1, 1]} : vector<8x4xf32> to vector<8x1xf32>
      %117 = vector.broadcast %115 : vector<8x1xf32> to vector<8x128xf32>
      %118 = vector.broadcast %0 : vector<1x128xf32> to vector<8x128xf32>
      %119 = arith.mulf %117, %118 : vector<8x128xf32>
      %120 = vector.broadcast %116 : vector<8x1xf32> to vector<8x128xf32>
      %121 = vector.broadcast %1 : vector<1x128xf32> to vector<8x128xf32>
      %122 = arith.mulf %120, %121 : vector<8x128xf32>
      %123 = arith.addf %119, %122 : vector<8x128xf32>
      %124 = vector.broadcast %36 : f32 to vector<1x128xf32>
      %125 = arith.mulf %124, %2 : vector<1x128xf32>
      %126 = vector.broadcast %125 : vector<1x128xf32> to vector<8x128xf32>
      %127 = arith.addf %123, %126 : vector<8x128xf32>
      %128 = vector.broadcast %3 : vector<1x128xf32> to vector<8x128xf32>
      %129 = arith.addf %127, %128 : vector<8x128xf32>
      %cst_44 = arith.constant 0.000000e+00 : f32
      %130 = vector.broadcast %cst_44 : f32 to vector<8x128xf32>
      %131 = arith.maximumf %129, %130 : vector<8x128xf32>
      %cst_45 = arith.constant dense<0.000000e+00> : vector<8x128xf32>
      %132 = tpu.matmul %131, %4, %cst_45 {dimension_numbers = #tpu.dot_dimension_numbers<[1], [0], [0], [1], [0, 0, 1, 1], [], []>, precision = #tpu.contract_precision<fp32>} : vector<8x128xf32>, vector<128x128xf32>, vector<8x128xf32> -> vector<8x128xf32>
      %133 = vector.broadcast %5 : vector<1x128xf32> to vector<8x128xf32>
      %134 = arith.addf %132, %133 : vector<8x128xf32>
      %cst_46 = arith.constant 0.000000e+00 : f32
      %135 = vector.broadcast %cst_46 : f32 to vector<8x128xf32>
      %136 = arith.maximumf %134, %135 : vector<8x128xf32>
      %cst_47 = arith.constant dense<0.000000e+00> : vector<8x128xf32>
      %137 = tpu.matmul %136, %6, %cst_47 {dimension_numbers = #tpu.dot_dimension_numbers<[1], [0], [0], [1], [0, 0, 1, 1], [], []>, precision = #tpu.contract_precision<fp32>} : vector<8x128xf32>, vector<128x128xf32>, vector<8x128xf32> -> vector<8x128xf32>
      %138 = vector.broadcast %7 : vector<1x128xf32> to vector<8x128xf32>
      %139 = arith.addf %137, %138 : vector<8x128xf32>
      %cst_48 = arith.constant 0.000000e+00 : f32
      %140 = vector.broadcast %cst_48 : f32 to vector<8x128xf32>
      %141 = arith.maximumf %139, %140 : vector<8x128xf32>
      %142 = vector.broadcast %8 : vector<1x128xf32> to vector<8x128xf32>
      %143 = arith.mulf %141, %142 : vector<8x128xf32>
      %cst_49 = arith.constant dense<0.000000e+00> : vector<8xf32>
      %144 = vector.multi_reduction <add>, %143, %cst_49 [1] : vector<8x128xf32> to vector<8xf32>
      %145 = vector.shape_cast %144 : vector<8xf32> to vector<8x1xf32>
      %146 = vector.broadcast %9 : vector<1x1xf32> to vector<8x1xf32>
      %147 = arith.addf %145, %146 : vector<8x1xf32>
      %148 = arith.subf %72, %109 : vector<8x1xf32>
      %149 = arith.addf %148, %147 : vector<8x1xf32>
      %150 = vector.broadcast %25 : f32 to vector<8x1xf32>
      %151 = arith.mulf %150, %149 : vector<8x1xf32>
      %152 = arith.addf %arg17, %151 : vector<8x1xf32>
      %153 = vector.extract_strided_slice %23 {offsets = [0, 3], sizes = [8, 1], strides = [1, 1]} : vector<8x4xf32> to vector<8x1xf32>
      %154 = vector.broadcast %152 : vector<8x1xf32> to vector<8x128xf32>
      %155 = vector.broadcast %0 : vector<1x128xf32> to vector<8x128xf32>
      %156 = arith.mulf %154, %155 : vector<8x128xf32>
      %157 = vector.broadcast %153 : vector<8x1xf32> to vector<8x128xf32>
      %158 = vector.broadcast %1 : vector<1x128xf32> to vector<8x128xf32>
      %159 = arith.mulf %157, %158 : vector<8x128xf32>
      %160 = arith.addf %156, %159 : vector<8x128xf32>
      %161 = vector.broadcast %40 : f32 to vector<1x128xf32>
      %162 = arith.mulf %161, %2 : vector<1x128xf32>
      %163 = vector.broadcast %162 : vector<1x128xf32> to vector<8x128xf32>
      %164 = arith.addf %160, %163 : vector<8x128xf32>
      %165 = vector.broadcast %3 : vector<1x128xf32> to vector<8x128xf32>
      %166 = arith.addf %164, %165 : vector<8x128xf32>
      %cst_50 = arith.constant 0.000000e+00 : f32
      %167 = vector.broadcast %cst_50 : f32 to vector<8x128xf32>
      %168 = arith.maximumf %166, %167 : vector<8x128xf32>
      %cst_51 = arith.constant dense<0.000000e+00> : vector<8x128xf32>
      %169 = tpu.matmul %168, %4, %cst_51 {dimension_numbers = #tpu.dot_dimension_numbers<[1], [0], [0], [1], [0, 0, 1, 1], [], []>, precision = #tpu.contract_precision<fp32>} : vector<8x128xf32>, vector<128x128xf32>, vector<8x128xf32> -> vector<8x128xf32>
      %170 = vector.broadcast %5 : vector<1x128xf32> to vector<8x128xf32>
      %171 = arith.addf %169, %170 : vector<8x128xf32>
      %cst_52 = arith.constant 0.000000e+00 : f32
      %172 = vector.broadcast %cst_52 : f32 to vector<8x128xf32>
      %173 = arith.maximumf %171, %172 : vector<8x128xf32>
      %cst_53 = arith.constant dense<0.000000e+00> : vector<8x128xf32>
      %174 = tpu.matmul %173, %6, %cst_53 {dimension_numbers = #tpu.dot_dimension_numbers<[1], [0], [0], [1], [0, 0, 1, 1], [], []>, precision = #tpu.contract_precision<fp32>} : vector<8x128xf32>, vector<128x128xf32>, vector<8x128xf32> -> vector<8x128xf32>
      %175 = vector.broadcast %7 : vector<1x128xf32> to vector<8x128xf32>
      %176 = arith.addf %174, %175 : vector<8x128xf32>
      %cst_54 = arith.constant 0.000000e+00 : f32
      %177 = vector.broadcast %cst_54 : f32 to vector<8x128xf32>
      %178 = arith.maximumf %176, %177 : vector<8x128xf32>
      %179 = vector.broadcast %8 : vector<1x128xf32> to vector<8x128xf32>
      %180 = arith.mulf %178, %179 : vector<8x128xf32>
      %cst_55 = arith.constant dense<0.000000e+00> : vector<8xf32>
      %181 = vector.multi_reduction <add>, %180, %cst_55 [1] : vector<8x128xf32> to vector<8xf32>
      %182 = vector.shape_cast %181 : vector<8xf32> to vector<8x1xf32>
      %183 = vector.broadcast %9 : vector<1x1xf32> to vector<8x1xf32>
      %184 = arith.addf %182, %183 : vector<8x1xf32>
      %185 = arith.addf %109, %147 : vector<8x1xf32>
      %cst_56 = arith.constant 3.000000e+00 : f32
      %186 = vector.broadcast %cst_56 : f32 to vector<8x1xf32>
      %187 = arith.mulf %186, %185 : vector<8x1xf32>
      %188 = arith.addf %72, %187 : vector<8x1xf32>
      %189 = arith.addf %188, %184 : vector<8x1xf32>
      %190 = vector.broadcast %25 : f32 to vector<8x1xf32>
      %191 = arith.mulf %189, %190 : vector<8x1xf32>
      %cst_57 = arith.constant 1.250000e-01 : f32
      %192 = vector.broadcast %cst_57 : f32 to vector<8x1xf32>
      %193 = arith.mulf %191, %192 : vector<8x1xf32>
      %194 = arith.addf %arg17, %193 : vector<8x1xf32>
      %c1_i32_58 = arith.constant 1 : i32
      %195 = arith.addi %arg16, %c1_i32_58 : i32
      %196 = vector.broadcast %195 : i32 to vector<8x128xi32>
      %197 = arith.cmpi eq, %10, %196 : vector<8x128xi32>
      %198 = vector.shape_cast %194 : vector<8x1xf32> to vector<8x1xf32>
      %199 = vector.broadcast %198 : vector<8x1xf32> to vector<8x128xf32>
      %200 = arith.select %197, %199, %arg18 : vector<8x128xi1>, vector<8x128xf32>
      scf.yield %194, %200 : vector<8x1xf32>, vector<8x128xf32>
    }
    %c7_i32_23 = arith.constant 7 : i32
    %c0_24 = arith.constant 0 : index
    %c0_25 = arith.constant 0 : index
    %20 = vector.load %arg15[%c0_24, %c0_25] : memref<8x128xf32, #tpu.memory_space<vmem>>, vector<8x128xf32>
    tpu.vector_store %arg15[%c0_24, %c0_25], %19#1 {strides = array<i32>} : memref<8x128xf32, #tpu.memory_space<vmem>>, vector<8x128xf32>,
    return
  }
  func.func @transform_0(%arg0: i32) -> i32 {
    %c0_i32 = arith.constant 0 : i32
    %c0_i32_0 = arith.constant 0 : i32
    return %c0_i32 : i32
  }
  func.func @transform_1(%arg0: i32) -> i32 {
    %c0_i32 = arith.constant 0 : i32
    %c0_i32_0 = arith.constant 0 : i32
    return %c0_i32 : i32
  }
  func.func @transform_2(%arg0: i32) -> (i32, i32, i32) {
    %c0_i32 = arith.constant 0 : i32
    %c0_i32_0 = arith.constant 0 : i32
    %c0_i32_1 = arith.constant 0 : i32
    return %c0_i32, %arg0, %c0_i32_0 : i32, i32, i32
  }
  func.func @transform_3(%arg0: i32) -> (i32, i32) {
    %c0_i32 = arith.constant 0 : i32
    %c0_i32_0 = arith.constant 0 : i32
    return %arg0, %c0_i32 : i32, i32
  }
  func.func @transform_4(%arg0: i32) -> (i32, i32) {
    %c0_i32 = arith.constant 0 : i32
    %c0_i32_0 = arith.constant 0 : i32
    %c0_i32_1 = arith.constant 0 : i32
    return %c0_i32, %c0_i32_0 : i32, i32
  }
  func.func @transform_5(%arg0: i32) -> (i32, i32) {
    %c0_i32 = arith.constant 0 : i32
    %c0_i32_0 = arith.constant 0 : i32
    %c0_i32_1 = arith.constant 0 : i32
    return %c0_i32, %c0_i32_0 : i32, i32
  }
  func.func @transform_6(%arg0: i32) -> (i32, i32) {
    %c0_i32 = arith.constant 0 : i32
    %c0_i32_0 = arith.constant 0 : i32
    %c0_i32_1 = arith.constant 0 : i32
    return %c0_i32, %c0_i32_0 : i32, i32
  }
  func.func @transform_7(%arg0: i32) -> (i32, i32) {
    %c0_i32 = arith.constant 0 : i32
    %c0_i32_0 = arith.constant 0 : i32
    %c0_i32_1 = arith.constant 0 : i32
    return %c0_i32, %c0_i32_0 : i32, i32
  }
  func.func @transform_8(%arg0: i32) -> (i32, i32) {
    %c0_i32 = arith.constant 0 : i32
    %c0_i32_0 = arith.constant 0 : i32
    %c0_i32_1 = arith.constant 0 : i32
    return %c0_i32, %c0_i32_0 : i32, i32
  }
  func.func @transform_9(%arg0: i32) -> (i32, i32) {
    %c0_i32 = arith.constant 0 : i32
    %c0_i32_0 = arith.constant 0 : i32
    %c0_i32_1 = arith.constant 0 : i32
    return %c0_i32, %c0_i32_0 : i32, i32
  }
  func.func @transform_10(%arg0: i32) -> (i32, i32) {
    %c0_i32 = arith.constant 0 : i32
    %c0_i32_0 = arith.constant 0 : i32
    %c0_i32_1 = arith.constant 0 : i32
    return %c0_i32, %c0_i32_0 : i32, i32
  }
  func.func @transform_11(%arg0: i32) -> (i32, i32) {
    %c0_i32 = arith.constant 0 : i32
    %c0_i32_0 = arith.constant 0 : i32
    %c0_i32_1 = arith.constant 0 : i32
    return %c0_i32, %c0_i32_0 : i32, i32
  }
  func.func @transform_12(%arg0: i32) -> (i32, i32) {
    %c0_i32 = arith.constant 0 : i32
    %c0_i32_0 = arith.constant 0 : i32
    %c0_i32_1 = arith.constant 0 : i32
    return %c0_i32, %c0_i32_0 : i32, i32
  }
  func.func @transform_13(%arg0: i32) -> (i32, i32) {
    %c0_i32 = arith.constant 0 : i32
    %c0_i32_0 = arith.constant 0 : i32
    %c0_i32_1 = arith.constant 0 : i32
    return %c0_i32, %c0_i32_0 : i32, i32
  }
  func.func @transform_14(%arg0: i32) -> (i32, i32) {
    %c0_i32 = arith.constant 0 : i32
    %c0_i32_0 = arith.constant 0 : i32
    return %arg0, %c0_i32 : i32, i32
  }
}

</mosaic_0001>

<bundles_post_ra>
// kernel: tpu_custom_call.1
= control target key start
LH: loop header
LB: loop body
LE: loop exit
PB: predicated region body
PF: predicated region fallthrough
CT: control target
= control target key end

     0   :  { %s11296_s0 = inlined_call_operand.vmem [shape: f32[7], index: 0, kind: input, shape index: {}]   ;;  %s11297_s1 = inlined_call_operand.vmem [shape: f32[28], index: 1, kind: input, shape index: {}]   ;;  %s11298_s2 = inlined_call_operand.vmem [shape: f32[7,8,4], index: 2, kind: input, shape index: {}]   ;;  %s11299_s3 = inlined_call_operand.vmem [shape: f32[8,1], index: 3, kind: input, shape index: {}]   ;;  %s11300_s4 = inlined_call_operand.vmem [shape: f32[1,128], index: 4, kind: input, shape index: {}]   ;;  %s11301_s5 = inlined_call_operand.vmem [shape: f32[1,128], index: 5, kind: input, shape index: {}]   ;;  %s11302_s6 = inlined_call_operand.vmem [shape: f32[1,128], index: 6, kind: input, shape index: {}]   ;;  %s11303_s7 = inlined_call_operand.vmem [shape: f32[1,128], index: 7, kind: input, shape index: {}]   ;;  %s11304_s8 = inlined_call_operand.hbm [shape: f32[128,128], index: 8, kind: input, shape index: {}]   ;;  %s11305_s9 = inlined_call_operand.hbm [shape: f32[1,128], index: 9, kind: input, shape index: {}]   ;;  %s11306_s10 = inlined_call_operand.vmem [shape: f32[128,128], index: 10, kind: input, shape index: {}]   ;;  %s11307_s11 = inlined_call_operand.vmem [shape: f32[1,128], index: 11, kind: input, shape index: {}]   ;;  %s11308_s12 = inlined_call_operand.vmem [shape: f32[1,128], index: 12, kind: input, shape index: {}]   ;;  %s11309_s13 = inlined_call_operand.<no memory space> [shape: f32[1,1], index: 13, kind: input, shape index: {}]   ;;  %s11310_s14 = inlined_call_operand.hbm [shape: f32[8,128], index: 14, kind: output, shape index: {}]  }
   0x1   :  { %v19_v0 = vstv %s11309_s13 }
   0x2   :  { %20 = vst [vmem:[#allocation2] sm:$0x1] %v19_v0 }
   0x3   :  { %21 = vsyncpa [#allocation6], 0 }
   0x4   :  { %22 = vsyncpa [#allocation8], 0 }
   0x5   :  { %23 = vsyncpa [#allocation4], 0 }
   0x6   :  { %24 = vsyncpa [#allocation11], 0 }
   0x7   :  { %25 = vsyncpa [#allocation5], 0  ;;  %s32_s17 = sshll.u32 %s11296_s0, 4  ;;  %s42_s20 = sshll.u32 %s11297_s1, 4  ;;  %s33_s17 = int_to_ptr.vmem [resolvable:$true] %s32_s17  ;;  %s43_s20 = int_to_ptr.vmem [resolvable:$true] %s42_s20 }
   0x8   :  { %s9310_s21 = scalar_lea.vmem %s33_s17, 16  ;;  %p9315_p1 = scmp.lt.s32.totalorder %s33_s17, %s33_s17 }
   0x9   :  { %p9311_p0 = scmp.ne.s32.totalorder %s33_s17, %s9310_s21  ;;  %p9316_p2 = scmp.lt.s32.totalorder %s9310_s21, %s9310_s21 }
   0xb   :  { %p9317_p3 = por %p9316_p2, %p9315_p1 }
   0xd   :  { %p9318_p4 = pnand %p9317_p3, %p9311_p0 }
   0xf   :  { %9321 = shalt.err (!%p9318_p4)
}
  0x10   :  { %s9434_s13 = smov [#allocation3]   ;;  %s9322_s22 = scalar_lea.vmem %s43_s20, 16 }
  0x11   :  { %35 = dma.vmem_to_smem %s33_s17, 16, %s9434_s13, [#allocation6]  }
  0x12   :  { %p9323_p5 = scmp.ne.s32.totalorder %s43_s20, %s9322_s22  ;;  %p9327_p6 = scmp.lt.s32.totalorder %s43_s20, %s43_s20 }
  0x13   :  { %p9328_p7 = scmp.lt.s32.totalorder %s9322_s22, %s9322_s22 }
  0x15   :  { %p9329_p8 = por %p9328_p7, %p9327_p6 }
  0x17   :  { %p9330_p9 = pnand %p9329_p8, %p9323_p5 }
  0x19   :  { %9333 = shalt.err (!%p9330_p9)
}
  0x1a   :  { %s9435_s0 = smov [#allocation7]   ;;  %s9436_s1 = smov [#allocation9]  }
  0x1b   :  { %45 = dma.vmem_to_smem %s43_s20, 16, %s9435_s0, [#allocation8]  }
  0x1c   :  { %s63_s23 = sshll.u32 %s9436_s1, 4  ;;  %s9334_s26 = scalar_lea.hbm %s11304_s8, 2048  ;;  %s64_s23 = int_to_ptr.vmem [resolvable:$true] %s63_s23 }
  0x1d   :  { %p9335_p10 = scmp.ne.s32.totalorder %s11304_s8, %s9334_s26  ;;  %p9338_p11 = scmp.lt.u32.totalorder %s9334_s26, %s11304_s8 }
  0x1f   :  { %p9340_p12 = pnand %p9338_p11, %p9335_p10 }
  0x21   :  { %9343 = shalt.err (!%p9340_p12)
}
  0x22   :  { %s9344_s15 = scalar_lea.vmem %s64_s23, 2048  ;;  %p9349_p0 = scmp.lt.s32.totalorder %s64_s23, %s64_s23 }
  0x23   :  { %p9345_p13 = scmp.ne.s32.totalorder %s64_s23, %s9344_s15  ;;  %p9350_p1 = scmp.lt.s32.totalorder %s9344_s15, %s9344_s15 }
  0x25   :  { %p9351_p2 = por %p9350_p1, %p9349_p0 }
  0x27   :  { %p9352_p3 = pnand %p9351_p2, %p9345_p13 }
  0x29   :  { %9355 = shalt.err (!%p9352_p3)
}
  0x2a   :  { %s9437_s16 = smov 128   ;;  %s9438_s17 = smov 8  }
  0x2b   :  { %69 = dma.hbm_to_vmem [thread:$0]  %s11304_s8, 2048, %s64_s23, [#allocation4], %s9437_s16, %s9437_s16, %s9438_s17  }
  0x2c   :  { %s9439_s20 = smov [#allocation10]   ;;  %s9356_s0 = scalar_lea.hbm %s11305_s9, 16 }
  0x2d   :  { %s76_s21 = sshll.u32 %s9439_s20, 4  ;;  %p9357_p4 = scmp.ne.s32.totalorder %s11305_s9, %s9356_s0  ;;  %s77_s21 = int_to_ptr.vmem [resolvable:$true] %s76_s21 }
  0x2e   :  { %p9360_p5 = scmp.lt.u32.totalorder %s9356_s0, %s11305_s9 }
  0x30   :  { %p9362_p6 = pnand %p9360_p5, %p9357_p4 }
  0x32   :  { %9365 = shalt.err (!%p9362_p6)
}
  0x33   :  { %s9366_s27 = scalar_lea.vmem %s77_s21, 16  ;;  %s9370_s8 = scalar_lea.vmem %s77_s21, 32 }
  0x34   :  { %p9367_p7 = scmp.ne.s32.totalorder %s77_s21, %s9366_s27  ;;  %p9371_p8 = scmp.lt.s32.totalorder %s77_s21, %s77_s21 }
  0x35   :  { %p9372_p9 = scmp.lt.s32.totalorder %s9370_s8, %s9366_s27 }
  0x37   :  { %p9373_p10 = por %p9372_p9, %p9371_p8 }
  0x39   :  { %p9374_p11 = pnand %p9373_p10, %p9367_p7 }
  0x3b   :  { %9377 = shalt.err (!%p9374_p11)
}
  0x3c   :  { %79 = dma.hbm_to_vmem [thread:$0]  %s11305_s9, 16, %s77_s21, [#allocation11]  }
  0x3d   :  { %9412 = dma.done.wait [#allocation6], 16  }
  0x3e   :  { %9413 = vsyncadd [#allocation6], 4294967280 }
  0x3f   :  { %9414 = dma.done.wait [#allocation8], 16  }
  0x40   :  { %9415 = vsyncadd [#allocation8], 4294967280 }
  0x41   :  { %9416 = dma.done.wait [#allocation4], 2048  }
  0x42   :  { %9417 = vsyncadd [#allocation4], 4294965248 }
  0x43   :  { %9418 = dma.done.wait [#allocation11], 16  }
  0x44   :  { %9419 = vsyncadd [#allocation11], 4294967280 }
  0x45   :  { %100 = sfence }
  0x46   :  { %v143_v1 = vld [vmem:[%s11299_s3] sm:$0xff]   ;;  %v9440_v2 = vmov 0   ;;  %v9582_v8 = vld [vmem:[#allocation9 + $0x8] sm:$0xff]  ;;  %v9584_v9 = vld [vmem:[#allocation9 + $0x10] sm:$0xff]  ;;  %v11312_v43 = vlaneseq }
  0x47   :  { %9302 = vset.pattern.permute.xlu0 %v9440_v2  ;;  %v9563_v3 = vld [vmem:[%s11300_s4] ss:$0 sm:$0xff]  ;;  %v9570_v5 = vld [vmem:[#allocation9] sm:$0xff]  ;;  %11499 = vst [vmem:[#allocation19_spill] sm:$0xff] %v9582_v8  ;;  %11500 = vst [vmem:[#allocation20_spill] sm:$0xff] %v9584_v9 }
  0x48   :  { %147 = vperm.xlu0 %9302, %v143_v1   ;;  %v9568_v4 = vld [vmem:[%s11301_s5] ss:$0 sm:$0xff]  ;;  %11498 = vst [vmem:[#allocation18_spill] sm:$0xff] %v9570_v5  ;;  %v9588_v11 = vld [vmem:[#allocation9 + $0x20] sm:$0xff]  ;;  %v9590_v12 = vld [vmem:[#allocation9 + $0x28] sm:$0xff]  ;;  %v9707_v44 = vand.u32 127, %v11312_v43 }
  0x49   :  { %v9575_v6 = vld [vmem:[%s11302_s6] sm:$0x1]  ;;  %11502 = vst [vmem:[#allocation22_spill] sm:$0xff] %v9588_v11  ;;  %11503 = vst [vmem:[#allocation23_spill] sm:$0xff] %v9590_v12  ;;  %v9592_v13 = vld [vmem:[#allocation9 + $0x30] sm:$0xff] }
  0x4a   :  { %v9580_v7 = vld [vmem:[%s11303_s7] ss:$0 sm:$0xff]  ;;  %11504 = vst [vmem:[#allocation24_spill] sm:$0xff] %v9592_v13  ;;  %v9596_v15 = vld [vmem:[#allocation9 + $0x40] sm:$0xff]  ;;  %v9598_v16 = vld [vmem:[#allocation9 + $0x48] sm:$0xff]  ;;  %vm144_vm0 = vcmp.eq.s32.totalorder %v9707_v44, 0 }
  0x4b   :  { %v9586_v10 = vld [vmem:[#allocation9 + $0x18] sm:$0xff]  ;;  %11506 = vst [vmem:[#allocation26_spill] sm:$0xff] %v9596_v15  ;;  %11507 = vst [vmem:[#allocation27_spill] sm:$0xff] %v9598_v16  ;;  %v9600_v17 = vld [vmem:[#allocation9 + $0x50] sm:$0xff] }
  0x4c   :  { %11501 = vst [vmem:[#allocation21_spill] sm:$0xff] %v9586_v10  ;;  %v9594_v14 = vld [vmem:[#allocation9 + $0x38] sm:$0xff]  ;;  %11508 = vst [vmem:[#allocation28_spill] sm:$0xff] %v9600_v17  ;;  %v9604_v19 = vld [vmem:[#allocation9 + $0x60] sm:$0xff] }
  0x4d   :  { %11505 = vst [vmem:[#allocation25_spill] sm:$0xff] %v9594_v14  ;;  %v9602_v18 = vld [vmem:[#allocation9 + $0x58] sm:$0xff]  ;;  %11510 = vst [vmem:[#allocation30_spill] sm:$0xff] %v9604_v19  ;;  %v9606_v20 = vld [vmem:[#allocation9 + $0x68] sm:$0xff] }
  0x4e   :  { %11509 = vst [vmem:[#allocation29_spill] sm:$0xff] %v9602_v18  ;;  %11511 = vst [vmem:[#allocation31_spill] sm:$0xff] %v9606_v20  ;;  %v9608_v21 = vld [vmem:[#allocation9 + $0x70] sm:$0xff]  ;;  %v9610_v22 = vld [vmem:[#allocation9 + $0x78] sm:$0xff] }
  0x4f   :  { %11512 = vst [vmem:[#allocation32_spill] sm:$0xff] %v9608_v21  ;;  %11513 = vst [vmem:[#allocation33_spill] sm:$0xff] %v9610_v22  ;;  %v9612_v23 = vld [vmem:[#allocation10] ss:$0 sm:$0xff]  ;;  %v9622_v25 = vld [vmem:[%s11306_s10 + $0x8] sm:$0xff] }
  0x50   :  { %11514 = vst [vmem:[#allocation34_spill] sm:$0xff] %v9612_v23  ;;  %v9617_v24 = vld [vmem:[%s11306_s10] sm:$0xff]  ;;  %11516 = vst [vmem:[#allocation36_spill] sm:$0xff] %v9622_v25  ;;  %v9627_v26 = vld [vmem:[%s11306_s10 + $0x10] sm:$0xff] }
  0x51   :  { %11515 = vst [vmem:[#allocation35_spill] sm:$0xff] %v9617_v24  ;;  %11517 = vst [vmem:[#allocation37_spill] sm:$0xff] %v9627_v26  ;;  %v9632_v27 = vld [vmem:[%s11306_s10 + $0x18] sm:$0xff]  ;;  %v9637_v28 = vld [vmem:[%s11306_s10 + $0x20] sm:$0xff] }
  0x52   :  { %11518 = vst [vmem:[#allocation38_spill] sm:$0xff] %v9632_v27  ;;  %11519 = vst [vmem:[#allocation39_spill] sm:$0xff] %v9637_v28  ;;  %v9642_v29 = vld [vmem:[%s11306_s10 + $0x28] sm:$0xff]  ;;  %v9647_v30 = vld [vmem:[%s11306_s10 + $0x30] sm:$0xff] }
  0x53   :  { %11520 = vst [vmem:[#allocation40_spill] sm:$0xff] %v9642_v29  ;;  %11521 = vst [vmem:[#allocation41_spill] sm:$0xff] %v9647_v30  ;;  %v9652_v31 = vld [vmem:[%s11306_s10 + $0x38] sm:$0xff]  ;;  %v9657_v32 = vld [vmem:[%s11306_s10 + $0x40] sm:$0xff] }
  0x54   :  { %11522 = vst [vmem:[#allocation42_spill] sm:$0xff] %v9652_v31  ;;  %11523 = vst [vmem:[#allocation43_spill] sm:$0xff] %v9657_v32  ;;  %v9662_v33 = vld [vmem:[%s11306_s10 + $0x48] sm:$0xff]  ;;  %v9667_v34 = vld [vmem:[%s11306_s10 + $0x50] sm:$0xff] }
  0x55   :  { %11524 = vst [vmem:[#allocation44_spill] sm:$0xff] %v9662_v33  ;;  %11525 = vst [vmem:[#allocation45_spill] sm:$0xff] %v9667_v34  ;;  %v9672_v35 = vld [vmem:[%s11306_s10 + $0x58] sm:$0xff]  ;;  %v9677_v36 = vld [vmem:[%s11306_s10 + $0x60] sm:$0xff] }
  0x56   :  { %11526 = vst [vmem:[#allocation46_spill] sm:$0xff] %v9672_v35  ;;  %11527 = vst [vmem:[#allocation47_spill] sm:$0xff] %v9677_v36  ;;  %v9682_v37 = vld [vmem:[%s11306_s10 + $0x68] sm:$0xff]  ;;  %v9687_v38 = vld [vmem:[%s11306_s10 + $0x70] sm:$0xff] }
  0x57   :  { %11528 = vst [vmem:[#allocation48_spill] sm:$0xff] %v9682_v37  ;;  %11529 = vst [vmem:[#allocation49_spill] sm:$0xff] %v9687_v38  ;;  %v9692_v39 = vld [vmem:[%s11306_s10 + $0x78] sm:$0xff]  ;;  %v9697_v40 = vld [vmem:[%s11307_s11] ss:$0 sm:$0xff]  ;;  %s9714_s10 = smov 0  }
  0x58   :  { %11530 = vst [vmem:[#allocation50_spill] sm:$0xff] %v9692_v39  ;;  %11531 = vst [vmem:[#allocation51_spill] sm:$0xff] %v9697_v40  ;;  %v9702_v41 = vld [vmem:[%s11308_s12] ss:$0 sm:$0xff] }
  0x59   :  { %11532 = vst [vmem:[#allocation52_spill] sm:$0xff] %v9702_v41  ;;  %v9704_v42 = vld [vmem:[#allocation2] ss:$0 sm:$0xff]  ;;  %11534 = vst [vmem:[#allocation54_spill] sm:$0xff] %v9707_v44 }
  0x5a   :  { %11533 = vst [vmem:[#allocation53_spill] sm:$0xff] %v9704_v42 }
  0xc7   :  { %v148_v45 = vpop.permute.xlu0 %147 }
  0xc8   :  { %v150_v46 = vsel %vm144_vm0, %v148_v45, 0.0  }
  0xc9 LB: > { %v11535_v33 = vld [vmem:[#allocation44_spill] sm:$0xff]  ;;  %v11536_v32 = vld [vmem:[#allocation43_spill] sm:$0xff]  ;;  %v11537_v31 = vld [vmem:[#allocation42_spill] sm:$0xff]  ;;  %11561 = vst [vmem:[#allocation55_spill] sm:$0xff] %v9424_v46  ;;  %v11311_v48 = vmov 0   ;;  %v11314_v49 = vmov 0.0|0.0   ;;  %v9428_v1 = vphi %v143_v1, %v5476_v1   ;;  %v9424_v46 = vphi %v150_v46, %v11781_v46   ;;  %s9432_s10 = sphi %s9714_s10, %s5477_s10  }
  0xca   : > { %v11538_v30 = vld [vmem:[#allocation41_spill] sm:$0xff]  ;;  %v11539_v29 = vld [vmem:[#allocation40_spill] sm:$0xff]  ;;  %v11540_v28 = vld [vmem:[#allocation39_spill] sm:$0xff]  ;;  %11562 = vst [vmem:[#allocation56_spill] sm:$0xff] %v9428_v1  ;;  %9303 = vset.pattern.permute.xlu0 %v11311_v48  ;;  %8023 = vmatprep.subr.bf16.mxu0 %v11314_v49  ;;  %s5518_s11 = sshll.u32 %s9432_s10, 3  ;;  %vm9443_vm1 = vmmov 0  }
  0xcb   : > { %v11541_v27 = vld [vmem:[#allocation38_spill] sm:$0xff]  ;;  %v11542_v26 = vld [vmem:[#allocation37_spill] sm:$0xff]  ;;  %v11543_v25 = vld [vmem:[#allocation36_spill] sm:$0xff]  ;;  %173 = vperm.xlu0 %9303, %v9428_v1   ;;  %8167 = vmatprep.subr.bf16.mxu1 %v11314_v49  ;;  %s9737_s26 = scalar_lea.vmem %s11298_s2, %s5518_s11  ;;  %v11318_v46 = vmov 0.0   ;;  %s9961_s27 = sshll.u32 %s9432_s10, 2 }
  0xcc   : > { %v11544_v24 = vld [vmem:[#allocation35_spill] sm:$0xff]  ;;  %v11545_v22 = vld [vmem:[#allocation33_spill] sm:$0xff]  ;;  %v11546_v21 = vld [vmem:[#allocation32_spill] sm:$0xff]  ;;  %9304 = vset.pattern.permute.xlu1 %v11311_v48  ;;  %6375 = vmatprep.mubr.msk.f32.mxu0 %vm9443_vm1, %v11318_v46  ;;  %s164_s8 = sld [smem:[#allocation7 + %s9961_s27]]  ;;  %s165_s28 = sadd.s32 1, %s9961_s27 }
  0xcd   : > { %v11547_v20 = vld [vmem:[#allocation31_spill] sm:$0xff]  ;;  %v11548_v19 = vld [vmem:[#allocation30_spill] sm:$0xff]  ;;  %v11549_v18 = vld [vmem:[#allocation29_spill] sm:$0xff]  ;;  %6585 = vmatprep.mubr.msk.f32.mxu1 %vm9443_vm1, %v11318_v46  ;;  %s162_s23 = sld [smem:[#allocation3 + %s9432_s10]]  ;;  %s167_s30 = sadd.s32 2, %s9961_s27 }
  0xce   : > { %v11550_v17 = vld [vmem:[#allocation28_spill] sm:$0xff]  ;;  %v11551_v16 = vld [vmem:[#allocation27_spill] sm:$0xff]  ;;  %v11552_v15 = vld [vmem:[#allocation26_spill] sm:$0xff]  ;;  %s166_s29 = sld [smem:[#allocation7 + %s165_s28]]  ;;  %s169_s16 = sadd.s32 3, %s9961_s27 }
  0xcf   : > { %v11553_v14 = vld [vmem:[#allocation25_spill] sm:$0xff]  ;;  %v11554_v13 = vld [vmem:[#allocation24_spill] sm:$0xff]  ;;  %v11555_v12 = vld [vmem:[#allocation23_spill] sm:$0xff]  ;;  %v244_v62 = vand.u32 4294901760, %v11552_v15  ;;  %v247_v63 = vand.u32 4294901760, %v11551_v16  ;;  %s168_s15 = sld [smem:[#allocation7 + %s167_s30]] }
  0xd0   : > { %v11556_v11 = vld [vmem:[#allocation22_spill] sm:$0xff]  ;;  %v11557_v10 = vld [vmem:[#allocation21_spill] sm:$0xff]  ;;  %v11558_v9 = vld [vmem:[#allocation20_spill] sm:$0xff]  ;;  %v235_v57 = vand.u32 4294901760, %v11555_v12  ;;  %v238_v59 = vand.u32 4294901760, %v11554_v13  ;;  %v241_v60 = vand.u32 4294901760, %v11553_v14 }
  0xd1   : > { %v11559_v8 = vld [vmem:[#allocation19_spill] sm:$0xff]  ;;  %v11560_v5 = vld [vmem:[#allocation18_spill] sm:$0xff]  ;;  %v226_v51 = vand.u32 4294901760, %v11558_v9  ;;  %v229_v52 = vand.u32 4294901760, %v11557_v10  ;;  %v9743_v54 = vld [vmem:[%s9737_s26] sm:$0xff]  ;;  %v232_v56 = vand.u32 4294901760, %v11556_v11  ;;  %v9773_v43 = vpack.c.bf16 %v247_v63, %v244_v62 }
  0xd2   : > { %v220_v47 = vand.u32 4294901760, %v11560_v5  ;;  %v223_v50 = vand.u32 4294901760, %v11559_v8  ;;  %11564 = vst [vmem:[#allocation58_spill] sm:$0xff] %v9743_v54  ;;  %185 = vperm.xlu0 %9303, %v9743_v54   ;;  %v9759_v61 = vpack.c.bf16 %v241_v60, %v238_v59  ;;  %s170_s9 = sld [smem:[#allocation7 + %s169_s16]]  ;;  %s5477_s10 = sadd.s32 1, %s9432_s10  }
  0xd3   : > { %v9746_v55 = vpack.c.bf16 %v229_v52, %v226_v51  ;;  %v9753_v58 = vpack.c.bf16 %v235_v57, %v232_v56  ;;  %11568 = vst [vmem:[#allocation62_spill] sm:$0xff] %v9773_v43  ;;  %v9798_v1 = vsub.f32 %v11558_v9, %v226_v51  ;;  %v9824_v9 = vsub.f32 %v11555_v12, %v235_v57  ;;  %p153_p12 = scmp.ge.s32.totalorder %s5477_s10, 7  }
  0xd4   : > { %v9739_v53 = vpack.c.bf16 %v223_v50, %v220_v47  ;;  %11567 = vst [vmem:[#allocation61_spill] sm:$0xff] %v9759_v61  ;;  %v9767_v45 = vsub.f32 %v11560_v5, %v220_v47  ;;  %v9770_v48 = vsub.f32 %v11559_v8, %v223_v50  ;;  %v11569_v47 = vand.u32 4294901760, %v11550_v17  ;;  %s9448_s17 = smov (%p153_p12), [#allocation12]  }
  0xd5   : > { %11565 = vst [vmem:[#allocation59_spill] sm:$0xff] %v9746_v55  ;;  %11566 = vst [vmem:[#allocation60_spill] sm:$0xff] %v9753_v58  ;;  %v11570_v50 = vand.u32 4294901760, %v11549_v18  ;;  %v259_v8 = vand.u32 4294901760, %v11547_v20  ;;  %v11332_v41 = vand.u32 4294901760, %v9798_v1  ;;  %v9840_v57 = vsub.f32 %v11553_v14, %v241_v60  ;;  %s5493_s18 = sshll.u32 (%p153_p12), %s9448_s17, 4  ;;  %s5494_s18 = int_to_ptr.vmem [resolvable:$true] %s5493_s18 }
  0xd6   : > { %11563 = vst [vmem:[#allocation57_spill] sm:$0xff] %v9739_v53  ;;  %8025 = vmatpush3.bf16.msra.mxu0 %v9739_v53  ;;  %v11327_v0 = vand.u32 4294901760, %v9767_v45  ;;  %v11328_v2 = vand.u32 4294901760, %v9770_v48  ;;  %s9378_s19 = scalar_lea.vmem (%p153_p12), %s5494_s18, 128  ;;  %p9383_p0 = scmp.lt.s32.totalorder (%p153_p12), %s5494_s18, %s5494_s18 }
  0xd7   : > { %8026 = vmatprep.subr.bf16.mxu0 %v11314_v49  ;;  %v9786_v5 = vpack.c.bf16 %v11570_v50, %v11569_v47  ;;  %v9801_v47 = vsub.f32 %v11557_v10, %v229_v52  ;;  %v11572_v50 = vmov 0.0|0.0   ;;  %v328_v52 = vsub.f32 %v9798_v1, %v11332_v41  ;;  %p9379_p13 = scmp.ne.s32.totalorder (%p153_p12), %s5494_s18, %s9378_s19  ;;  %p9384_p1 = scmp.lt.s32.totalorder (%p153_p12), %s9378_s19, %s9378_s19 }
  0xd8   : > { %v314_v44 = vsub.f32 %v9767_v45, %v11327_v0  ;;  %v321_v46 = vsub.f32 %v9770_v48, %v11328_v2  ;;  %v262_v0 = vand.u32 4294901760, %v11546_v21  ;;  %v265_v2 = vand.u32 4294901760, %v11545_v22 }
  0xd9   : > { %11571 = vst [vmem:[#allocation63_spill] sm:$0xff] %v9786_v5  ;;  %v11334_v40 = vand.u32 4294901760, %v9801_v47  ;;  %v329_v10 = vand.u32 4294901760, %v328_v52  ;;  %v11337_v41 = vand.u32 4294901760, %v9824_v9  ;;  %p9385_p2 = por (%p153_p12), %p9384_p1, %p9383_p0 }
  0xda   : > { %8028 = vmatpush3.bf16.msra.mxu0 %v9746_v55  ;;  %v315_v42 = vand.u32 4294901760, %v314_v44  ;;  %v322_v54 = vand.u32 4294901760, %v321_v46  ;;  %v9820_v46 = vsub.f32 %v11556_v11, %v232_v56 }
  0xdb   : > { %8029 = vmatprep.subr.bf16.mxu0 %v11314_v49  ;;  %v335_v44 = vsub.f32 %v9801_v47, %v11334_v40  ;;  %v9837_v40 = vsub.f32 %v11554_v13, %v238_v59  ;;  %v349_v52 = vsub.f32 %v9824_v9, %v11337_v41  ;;  %p9386_p3 = pnand (%p153_p12), %p9385_p2, %p9379_p13 }
  0xdc   : > { %v9811_v51 = vpack.c.bf16 %v322_v54, %v315_v42  ;;  %v11336_v42 = vand.u32 4294901760, %v9820_v46  ;;  %v9827_v54 = vpack.c.bf16 %v265_v2, %v262_v0 }
  0xdd   : > { %v336_v39 = vand.u32 4294901760, %v335_v44  ;;  %v350_v11 = vand.u32 4294901760, %v349_v52 }
  0xde   : > { %8031 = vmatpush3.bf16.msra.mxu0 %v9753_v58  ;;  %11574 = vst [vmem:[#allocation65_spill] sm:$0xff] %v9827_v54  ;;  %v342_v56 = vsub.f32 %v9820_v46, %v11336_v42  ;;  %v9856_v42 = vsub.f32 %v11552_v15, %v244_v62 }
  0xdf   : > { %8032 = vmatprep.subr.bf16.mxu0 %v11314_v49  ;;  %v9831_v38 = vpack.c.bf16 %v336_v39, %v329_v10  ;;  %v11340_v10 = vand.u32 4294901760, %v9837_v40  ;;  %v11342_v39 = vand.u32 4294901760, %v9840_v57 }
  0xe0   : > { %v343_v44 = vand.u32 4294901760, %v342_v56  ;;  %v9859_v56 = vsub.f32 %v11551_v16, %v247_v63  ;;  %v11343_v13 = vand.u32 4294901760, %v9856_v42  ;;  %v9895_v16 = vsub.f32 %v11547_v20, %v259_v8 }
  0xe1   : > { %v356_v59 = vsub.f32 %v9837_v40, %v11340_v10  ;;  %v363_v60 = vsub.f32 %v9840_v57, %v11342_v39  ;;  %v11575_v39 = vand.u32 4294901760, %v11550_v17  ;;  %v196_v20 = vstv %s164_s8 }
  0xe2   : > { %8034 = vmatpush3.bf16.msra.mxu0 %v9759_v61  ;;  %v9862_v41 = vpack.c.bf16 %v350_v11, %v343_v44  ;;  %v11345_v10 = vand.u32 4294901760, %v9859_v56  ;;  %v370_v62 = vsub.f32 %v9856_v42, %v11343_v13  ;;  %v11577_v44 = vand.u32 4294901760, %v11549_v18  ;;  %11580 = vst [vmem:[#allocation69_spill] sm:$0xff] %v9895_v16 }
  0xe3   : > { %8035 = vmatprep.subr.bf16.mxu0 %v11314_v49  ;;  %v256_v49 = vand.u32 4294901760, %v11548_v19  ;;  %v357_v52 = vand.u32 4294901760, %v356_v59  ;;  %v364_v12 = vand.u32 4294901760, %v363_v60  ;;  %v9877_v11 = vsub.f32 %v11550_v17, %v11575_v39 }
  0xe4   : > { %v377_v63 = vsub.f32 %v9859_v56, %v11345_v10  ;;  %v9882_v59 = vsub.f32 %v11549_v18, %v11577_v44  ;;  %v9912_v17 = vsub.f32 %v11545_v22, %v265_v2  ;;  %v197_v22 = vmul.f32 %v196_v20, %v9575_v6 }
  0xe5   : > { %v9806_v23 = vpack.c.bf16 %v259_v8, %v256_v49  ;;  %v9866_v14 = vpack.c.bf16 %v364_v12, %v357_v52  ;;  %11576 = vst [vmem:[#allocation66_spill] sm:$0xff] %v9877_v11  ;;  %v371_v12 = vand.u32 4294901760, %v370_v62  ;;  %v11347_v52 = vand.u32 4294901760, %v9877_v11 }
  0xe6   : > { %8037 = vmatpush3.bf16.msra.mxu0 %v9773_v43  ;;  %11578 = vst [vmem:[#allocation67_spill] sm:$0xff] %v9882_v59  ;;  %v378_v60 = vand.u32 4294901760, %v377_v63  ;;  %v11349_v13 = vand.u32 4294901760, %v9882_v59  ;;  %v9892_v39 = vsub.f32 %v11548_v19, %v256_v49  ;;  %v9909_v8 = vsub.f32 %v11546_v21, %v262_v0  ;;  %11582 = vst [vmem:[#allocation71_spill] sm:$0xff] %v9912_v17 }
  0xe7   : > { %8038 = vmatprep.subr.bf16.mxu0 %v11572_v50  ;;  %11573 = vst [vmem:[#allocation64_spill] sm:$0xff] %v9806_v23  ;;  %v384_v10 = vsub.f32 %v9877_v11, %v11347_v52  ;;  %v11354_v19 = vand.u32 4294901760, %v9912_v17 }
  0xe8   : > { %v9886_v15 = vpack.c.bf16 %v378_v60, %v371_v12  ;;  %11579 = vst [vmem:[#allocation68_spill] sm:$0xff] %v9892_v39  ;;  %v391_v62 = vsub.f32 %v9882_v59, %v11349_v13  ;;  %v11352_v44 = vand.u32 4294901760, %v9892_v39  ;;  %v11353_v12 = vand.u32 4294901760, %v9895_v16  ;;  %11581 = vst [vmem:[#allocation70_spill] sm:$0xff] %v9909_v8 }
  0xe9   : > { %v385_v63 = vand.u32 4294901760, %v384_v10  ;;  %v419_v0 = vsub.f32 %v9912_v17, %v11354_v19  ;;  %v11591_v19 = vlaneseq }
  0xea   : > { %8040 = vmatpush3.bf16.msra.mxu0 %v9786_v5  ;;  %v392_v60 = vand.u32 4294901760, %v391_v62  ;;  %v398_v52 = vsub.f32 %v9892_v39, %v11352_v44  ;;  %v405_v49 = vsub.f32 %v9895_v16, %v11353_v12  ;;  %v11355_v62 = vand.u32 4294901760, %v9909_v8 }
  0xeb   : > { %8041 = vmatprep.subr.bf16.mxu0 %v11572_v50 }
  0xec   : > { %v9914_v10 = vpack.c.bf16 %v392_v60, %v385_v63  ;;  %v399_v13 = vand.u32 4294901760, %v398_v52  ;;  %v406_v18 = vand.u32 4294901760, %v405_v49  ;;  %v412_v12 = vsub.f32 %v9909_v8, %v11355_v62 }
  0xed   : > { %v420_v63 = vand.u32 4294901760, %v419_v0  ;;  %v9930_v52 = vpack.c.bf16 %v9770_v48, %v9767_v45  ;;  %v9942_v49 = vpack.c.bf16 %v9840_v57, %v9837_v40  ;;  %v9950_v0 = vpack.c.bf16 %v9882_v59, %v9877_v11 }
  0xee   : > { %8043 = vmatpush3.bf16.msra.mxu0 %v9806_v23  ;;  %v9918_v44 = vpack.c.bf16 %v406_v18, %v399_v13  ;;  %v413_v2 = vand.u32 4294901760, %v412_v12  ;;  %v9934_v13 = vpack.c.bf16 %v9801_v47, %v9798_v1  ;;  %v9938_v18 = vpack.c.bf16 %v9824_v9, %v9820_v46 }
  0xef   : > { %8044 = vmatprep.subr.bf16.mxu0 %v11572_v50  ;;  %11583 = vst [vmem:[#allocation72_spill] sm:$0xff] %v9930_v52  ;;  %11586 = vst [vmem:[#allocation75_spill] sm:$0xff] %v9942_v49  ;;  %v9946_v12 = vpack.c.bf16 %v9859_v56, %v9856_v42  ;;  %v200_v62 = vshrl.u32 %v11591_v19, 7 }
  0xf0   : > { %v9926_v60 = vpack.c.bf16 %v420_v63, %v413_v2  ;;  %11584 = vst [vmem:[#allocation73_spill] sm:$0xff] %v9934_v13  ;;  %11585 = vst [vmem:[#allocation74_spill] sm:$0xff] %v9938_v18  ;;  %v9954_v2 = vpack.c.bf16 %v9895_v16, %v9892_v39  ;;  %v9958_v63 = vpack.c.bf16 %v9912_v17, %v9909_v8 }
  0xf1   : > { %11587 = vst [vmem:[#allocation76_spill] sm:$0xff] %v9946_v12  ;;  %11588 = vst [vmem:[#allocation77_spill] sm:$0xff] %v9950_v0  ;;  %v9966_v37 = vsub.s32 0, %v200_v62 }
  0xf2   : > { %8046 = vmatpush3.bf16.msra.mxu0 %v9827_v54  ;;  %11589 = vst [vmem:[#allocation78_spill] sm:$0xff] %v9954_v2  ;;  %11590 = vst [vmem:[#allocation79_spill] sm:$0xff] %v9958_v63 }
  0xf3   : > { %8047 = vmatprep.subr.bf16.mxu0 %v11572_v50  ;;  %v202_v34 = vrot.slane %v197_v22, %v9966_v37  ;;  %v11373_v22 = vand.u32 4294901760, %v11543_v25 }
 0x14a   : > { %v174_v21 = vpop.permute.xlu0 %173 }
 0x14b   : > { %v182_v35 = vmul.f32 %v9563_v3, %v174_v21 }
 0x151   : > { %v186_v36 = vpop.permute.xlu0 %185 }
 0x152   : > { %v194_v17 = vmul.f32 %v9568_v4, %v186_v36 }
 0x154   : > { %v195_v8 = vadd.f32 %v194_v17, %v182_v35  ;;  %v11592_v17 = vmov 0.0   ;;  %v11369_v35 = vand.u32 4294901760, %v11541_v27 }
 0x156   : > { %v204_v16 = vadd.f32 %v202_v34, %v195_v8  ;;  %v11370_v34 = vand.u32 4294901760, %v11542_v26  ;;  %v11371_v8 = vand.u32 4294901760, %v11539_v29 }
 0x158   : > { %v211_v39 = vadd.f32 %v9580_v7, %v204_v16  ;;  %v11378_v16 = vand.u32 4294901760, %v11544_v24 }
 0x15a   : > { %v212_v59 = vmax.f32 %v211_v39, 0.0  ;;  %v10012_v36 = vpack.c.bf16 %v11373_v22, %v11378_v16  ;;  %v11372_v39 = vand.u32 4294901760, %v11540_v28  ;;  %v11600_v16 = vand.u32 4294901760, %v9801_v47 }
 0x15b   : > { %v11606_v47 = vand.u32 4294901760, %v9840_v57 }
 0x15c   : > { %v9972_v11 = vand.u32 4294901760, %v212_v59  ;;  %8169 = vmatpush3.bf16.msra.mxu1 %v10012_v36 }
 0x15d   : > { %8170 = vmatprep.subr.bf16.mxu1 %v11572_v50 }
 0x15e   : > { %v9975_v19 = vsub.f32 %v212_v59, %v9972_v11  ;;  %v10019_v59 = vpack.c.bf16 %v11369_v35, %v11370_v34  ;;  %v11376_v35 = vand.u32 4294901760, %v11537_v31 }
 0x160   : > { %v302_v20 = vand.u32 4294901760, %v9975_v19  ;;  %8172 = vmatpush3.bf16.msra.mxu1 %v10019_v59 }
 0x161   : > { %8173 = vmatprep.subr.bf16.mxu1 %v11572_v50 }
 0x162   : > { %v303_v21 = vsub.f32 %v9975_v19, %v302_v20 }
 0x164   : > { %v304_v62 = vand.u32 4294901760, %v303_v21  ;;  %v10031_v21 = vpack.c.bf16 %v11371_v8, %v11372_v39  ;;  %v11375_v8 = vand.u32 4294901760, %v11536_v32  ;;  %v11374_v39 = vand.u32 4294901760, %v11535_v33 }
 0x166   : > { %6376 = vmatmul.mubr.f32.vlgmr.msra.gmra.mrb[0].mxu0 %v304_v62  ;;  %11593 = vst [vmem:[#allocation80_spill] sm:$0xff] %v10031_v21  ;;  %v11377_v62 = vand.u32 4294901760, %v11538_v30  ;;  %8175 = vmatpush3.bf16.msra.mxu1 %v10031_v21  ;;  %v10055_v22 = vpack.c.bf16 %v11374_v39, %v11375_v8  ;;  %v11596_v39 = vand.u32 4294901760, %v9767_v45  ;;  %v11597_v8 = vand.u32 4294901760, %v9770_v48 }
 0x167   : > { %8049 = vmatpush3.bf16.msra.mxu0 %v9811_v51  ;;  %6410 = vmatprep.mubr.msk.f32.mxu0 %vm9443_vm1, %v11592_v17  ;;  %v11602_v48 = vand.u32 4294901760, %v9820_v46  ;;  %v11603_v45 = vand.u32 4294901760, %v9824_v9  ;;  %v11608_v46 = vand.u32 4294901760, %v9856_v42  ;;  %v11609_v9 = vand.u32 4294901760, %v9859_v56 }
 0x168   : > { %8050 = vmatprep.subr.bf16.mxu0 %v11572_v50  ;;  %v10043_v34 = vpack.c.bf16 %v11376_v35, %v11377_v62  ;;  %8176 = vmatprep.subr.bf16.mxu1 %v11572_v50  ;;  %11595 = vst [vmem:[#allocation82_spill] sm:$0xff] %v10055_v22  ;;  %v10090_v35 = vpack.c.bf16 %v11597_v8, %v11596_v39  ;;  %v11599_v62 = vand.u32 4294901760, %v9798_v1  ;;  %v11605_v1 = vand.u32 4294901760, %v9837_v40  ;;  %v11611_v39 = vld [vmem:[#allocation66_spill] sm:$0xff]  ;;  %v11613_v8 = vld [vmem:[#allocation67_spill] sm:$0xff] }
 0x169   : > { %v11612_v40 = vand.u32 4294901760, %v11611_v39  ;;  %v11614_v57 = vand.u32 4294901760, %v11613_v8 }
 0x16a   : > { %11594 = vst [vmem:[#allocation81_spill] sm:$0xff] %v10043_v34  ;;  %8178 = vmatpush3.bf16.msra.mxu1 %v10043_v34  ;;  %11598 = vst [vmem:[#allocation83_spill] sm:$0xff] %v10090_v35 }
 0x16b   : > { %8052 = vmatpush3.bf16.msra.mxu0 %v9831_v38  ;;  %8179 = vmatprep.subr.bf16.mxu1 %v11572_v50 }
 0x16c   : > { %8053 = vmatprep.subr.bf16.mxu0 %v11572_v50 }
 0x16e   : > { %8181 = vmatpush3.bf16.msra.mxu1 %v10055_v22 }
 0x16f   : > { %8055 = vmatpush3.bf16.msra.mxu0 %v9862_v41  ;;  %8182 = vmatprep.subr.bf16.mxu1 %v11572_v50 }
 0x170   : > { %8056 = vmatprep.subr.bf16.mxu0 %v11572_v50 }
 0x173   : > { %8058 = vmatpush3.bf16.msra.mxu0 %v9866_v14 }
 0x174   : > { %8059 = vmatprep.subr.bf16.mxu0 %v11572_v50 }
 0x177   : > { %8061 = vmatpush3.bf16.msra.mxu0 %v9886_v15 }
 0x178   : > { %8062 = vmatprep.subr.bf16.mxu0 %v11572_v50 }
 0x17b   : > { %8064 = vmatpush3.bf16.msra.mxu0 %v9914_v10 }
 0x17c   : > { %8065 = vmatprep.subr.bf16.mxu0 %v11572_v50 }
 0x17f   : > { %8067 = vmatpush3.bf16.msra.mxu0 %v9918_v44 }
 0x180   : > { %8068 = vmatprep.subr.bf16.mxu0 %v11572_v50 }
 0x183   : > { %8070 = vmatpush3.bf16.msra.mxu0 %v9926_v60 }
 0x184   : > { %8071 = vmatprep.subr.bf16.mxu0 %v11572_v50 }
 0x186   : > { %6411 = vmatmul.mubr.f32.vlgmr.msra.gmra.mrb[0].mxu0 %v9972_v11 }
 0x187   : > { %8073 = vmatpush3.bf16.msra.mxu0 %v9930_v52  ;;  %6445 = vmatprep.mubr.msk.f32.mxu0 %vm9443_vm1, %v11592_v17 }
 0x188   : > { %8074 = vmatprep.subr.bf16.mxu0 %v11572_v50 }
 0x18b   : > { %8076 = vmatpush3.bf16.msra.mxu0 %v9934_v13 }
 0x18c   : > { %8077 = vmatprep.subr.bf16.mxu0 %v11572_v50 }
 0x18f   : > { %8079 = vmatpush3.bf16.msra.mxu0 %v9938_v18 }
 0x190   : > { %8080 = vmatprep.subr.bf16.mxu0 %v11572_v50 }
 0x193   : > { %8082 = vmatpush3.bf16.msra.mxu0 %v9942_v49 }
 0x194   : > { %8083 = vmatprep.subr.bf16.mxu0 %v11572_v50 }
 0x197   : > { %8085 = vmatpush3.bf16.msra.mxu0 %v9946_v12 }
 0x198   : > { %8086 = vmatprep.subr.bf16.mxu0 %v11572_v50 }
 0x19b   : > { %8088 = vmatpush3.bf16.msra.mxu0 %v9950_v0 }
 0x19c   : > { %8089 = vmatprep.subr.bf16.mxu0 %v11572_v50 }
 0x19f   : > { %8091 = vmatpush3.bf16.msra.mxu0 %v9954_v2 }
 0x1a0   : > { %8092 = vmatprep.subr.bf16.mxu0 %v11572_v50 }
 0x1a3   : > { %8094 = vmatpush3.bf16.msra.mxu0 %v9958_v63  ;;  %v10100_v63 = vpack.c.bf16 %v11600_v16, %v11599_v62  ;;  %v10126_v16 = vpack.c.bf16 %v11609_v9, %v11608_v46  ;;  %v10134_v62 = vpack.c.bf16 %v11614_v57, %v11612_v40  ;;  %v11623_v9 = vld [vmem:[#allocation71_spill] sm:$0xff]  ;;  %v11627_v57 = vld [vmem:[#allocation46_spill] sm:$0xff] }
 0x1a4   : > { %8095 = vmatprep.subr.bf16.mxu0 %v11572_v50  ;;  %v11624_v39 = vand.u32 4294901760, %v11623_v9 }
 0x1a5   : > { %11601 = vst [vmem:[#allocation84_spill] sm:$0xff] %v10100_v63  ;;  %11610 = vst [vmem:[#allocation87_spill] sm:$0xff] %v10126_v16 }
 0x1a6   : > { %6446 = vmatmul.mubr.f32.vlgmr.msra.gmra.mrb[0].mxu0 %v9975_v19  ;;  %v10110_v19 = vpack.c.bf16 %v11603_v45, %v11602_v48  ;;  %11615 = vst [vmem:[#allocation66_spill] sm:$0xff] %v10134_v62  ;;  %v11616_v48 = vld [vmem:[#allocation68_spill] sm:$0xff]  ;;  %v11618_v45 = vld [vmem:[#allocation69_spill] sm:$0xff] }
 0x1a7   : > { %8097 = vmatpush3.bf16.msra.mxu0 %v9739_v53  ;;  %6480 = vmatprep.mubr.msk.f32.mxu0 %vm9443_vm1, %v11592_v17  ;;  %v11617_v42 = vand.u32 4294901760, %v11616_v48  ;;  %v11619_v56 = vand.u32 4294901760, %v11618_v45  ;;  %v901_v48 = vand.u32 4294901760, %v11627_v57  ;;  %v11629_v45 = vld [vmem:[#allocation47_spill] sm:$0xff] }
 0x1a8   : > { %8098 = vmatprep.subr.bf16.mxu0 %v11572_v50  ;;  %11604 = vst [vmem:[#allocation85_spill] sm:$0xff] %v10110_v19 }
 0x1ab   : > { %8100 = vmatpush3.bf16.msra.mxu0 %v9746_v55 }
 0x1ac   : > { %8101 = vmatprep.subr.bf16.mxu0 %v11572_v50 }
 0x1af   : > { %8103 = vmatpush3.bf16.msra.mxu0 %v9753_v58 }
 0x1b0   : > { %8104 = vmatprep.subr.bf16.mxu0 %v11572_v50 }
 0x1b3   : > { %8106 = vmatpush3.bf16.msra.mxu0 %v9759_v61 }
 0x1b4   : > { %8107 = vmatprep.subr.bf16.mxu0 %v11572_v50 }
 0x1b7   : > { %8109 = vmatpush3.bf16.msra.mxu0 %v9773_v43 }
 0x1b8   : > { %8110 = vmatprep.subr.bf16.mxu0 %v11572_v50 }
 0x1bb   : > { %8112 = vmatpush3.bf16.msra.mxu0 %v9786_v5 }
 0x1bc   : > { %8113 = vmatprep.subr.bf16.mxu0 %v11572_v50 }
 0x1bf   : > { %8115 = vmatpush3.bf16.msra.mxu0 %v9806_v23 }
 0x1c0   : > { %8116 = vmatprep.subr.bf16.mxu0 %v11572_v50 }
 0x1c3   : > { %8118 = vmatpush3.bf16.msra.mxu0 %v9827_v54 }
 0x1c4   : > { %8119 = vmatprep.subr.bf16.mxu0 %v11572_v50 }
 0x1c6   : > { %6481 = vmatmul.mubr.f32.vlgmr.msra.gmra.mrb[0].mxu0 %v302_v20  ;;  %v10118_v20 = vpack.c.bf16 %v11606_v47, %v11605_v1  ;;  %v10142_v1 = vpack.c.bf16 %v11619_v56, %v11617_v42  ;;  %v11621_v47 = vld [vmem:[#allocation70_spill] sm:$0xff]  ;;  %v904_v56 = vand.u32 4294901760, %v11629_v45 }
 0x1c7   : > { %8121 = vmatpush3.bf16.msra.mxu0 %v10090_v35  ;;  %6515 = vmatprep.mubr.msk.f32.mxu0 %vm9443_vm1, %v11592_v17  ;;  %v11622_v46 = vand.u32 4294901760, %v11621_v47  ;;  %v11630_v47 = vld [vmem:[#allocation48_spill] sm:$0xff] }
 0x1c8   : > { %8122 = vmatprep.subr.bf16.mxu0 %v11572_v50  ;;  %11607 = vst [vmem:[#allocation86_spill] sm:$0xff] %v10118_v20  ;;  %11620 = vst [vmem:[#allocation67_spill] sm:$0xff] %v10142_v1 }
 0x1c9   : > { %v10150_v40 = vpack.c.bf16 %v11624_v39, %v11622_v46  ;;  %v907_v46 = vand.u32 4294901760, %v11630_v47  ;;  %v11632_v39 = vld [vmem:[#allocation49_spill] sm:$0xff] }
 0x1cb   : > { %8124 = vmatpush3.bf16.msra.mxu0 %v10100_v63  ;;  %11625 = vst [vmem:[#allocation68_spill] sm:$0xff] %v10150_v40  ;;  %v10201_v9 = vpack.c.bf16 %v907_v46, %v904_v56  ;;  %v10215_v63 = vsub.f32 %v11627_v57, %v901_v48 }
 0x1cc   : > { %8125 = vmatprep.subr.bf16.mxu0 %v11572_v50 }
 0x1cd   : > { %11631 = vst [vmem:[#allocation70_spill] sm:$0xff] %v10201_v9 }
 0x1cf   : > { %8127 = vmatpush3.bf16.msra.mxu0 %v10110_v19 }
 0x1d0   : > { %8128 = vmatprep.subr.bf16.mxu0 %v11572_v50 }
 0x1d3   : > { %8130 = vmatpush3.bf16.msra.mxu0 %v10118_v20 }
 0x1d4   : > { %8131 = vmatprep.subr.bf16.mxu0 %v11572_v50 }
 0x1d7   : > { %8133 = vmatpush3.bf16.msra.mxu0 %v10126_v16 }
 0x1d8   : > { %8134 = vmatprep.subr.bf16.mxu0 %v11572_v50 }
 0x1db   : > { %8136 = vmatpush3.bf16.msra.mxu0 %v10134_v62 }
 0x1dc   : > { %8137 = vmatprep.subr.bf16.mxu0 %v11572_v50 }
 0x1df   : > { %8139 = vmatpush3.bf16.msra.mxu0 %v10142_v1  ;;  %v11633_v1 = vld [vmem:[#allocation50_spill] sm:$0xff] }
 0x1e0   : > { %8140 = vmatprep.subr.bf16.mxu0 %v11572_v50  ;;  %v11634_v62 = vmov %v11633_v1  ;;  %v913_v16 = vand.u32 4294901760, %v11633_v1 }
 0x1e3   : > { %8142 = vmatpush3.bf16.msra.mxu0 %v10150_v40  ;;  %v910_v40 = vand.u32 4294901760, %v11632_v39 }
 0x1e4   : > { %8143 = vmatprep.subr.bf16.mxu0 %v11572_v50 }
 0x1e5   : > { %v10207_v20 = vpack.c.bf16 %v913_v16, %v910_v40 }
 0x1e6   : > { %6516 = vmatmul.mubr.f32.vlgmr.msra.gmra.mrb[0].mxu0 %v9972_v11 }
 0x1e7   : > { %8145 = vmatpush3.bf16.msra.mxu0 %v9739_v53  ;;  %6550 = vmatprep.mubr.msk.f32.mxu0 %vm9443_vm1, %v11592_v17  ;;  %11635 = vst [vmem:[#allocation71_spill] sm:$0xff] %v10207_v20 }
 0x1e8   : > { %8146 = vmatprep.subr.bf16.mxu0 %v11572_v50 }
 0x1eb   : > { %8148 = vmatpush3.bf16.msra.mxu0 %v9746_v55 }
 0x1ec   : > { %8149 = vmatprep.subr.bf16.mxu0 %v11572_v50 }
 0x1ef   : > { %8151 = vmatpush3.bf16.msra.mxu0 %v9753_v58 }
 0x1f0   : > { %8152 = vmatprep.subr.bf16.mxu0 %v11572_v50 }
 0x1f3   : > { %8154 = vmatpush3.bf16.msra.mxu0 %v9759_v61 }
 0x1f4   : > { %8155 = vmatprep.subr.bf16.mxu0 %v11572_v50 }
 0x1f7   : > { %8157 = vmatpush3.bf16.msra.mxu0 %v9773_v43 }
 0x1f8   : > { %8158 = vmatprep.subr.bf16.mxu0 %v11572_v50 }
 0x1fb   : > { %8160 = vmatpush3.bf16.msra.mxu0 %v9786_v5 }
 0x1fc   : > { %8161 = vmatprep.subr.bf16.mxu0 %v11572_v50 }
 0x1ff   : > { %8163 = vmatpush3.bf16.msra.mxu0 %v9806_v23 }
 0x200   : > { %8164 = vmatprep.subr.bf16.mxu0 %v11572_v50 }
 0x203   : > { %8166 = vmatpush3.bf16.msra.mxu0 %v9827_v54 }
 0x204   : > { %8311 = vmatprep.subr.bf16.mxu0 %v11572_v50 }
 0x206   : > { %6551 = vmatmul.mubr.f32.vlgmr.msra.gmra.mrb[0].mxu0 %v9972_v11  ;;  %v11626_v11 = vld [vmem:[#allocation45_spill] sm:$0xff] }
 0x207   : > { %8313 = vmatpush3.bf16.msra.mxu0 %v9739_v53  ;;  %6795 = vmatprep.mubr.msk.f32.mxu0 %vm9443_vm1, %v11592_v17  ;;  %v898_v8 = vand.u32 4294901760, %v11626_v11 }
 0x208   : > { %8314 = vmatprep.subr.bf16.mxu0 %v11572_v50 }
 0x209   : > { %v10195_v42 = vpack.c.bf16 %v901_v48, %v898_v8  ;;  %v10212_v19 = vsub.f32 %v11626_v11, %v898_v8  ;;  %v10229_v8 = vsub.f32 %v11630_v47, %v907_v46 }
 0x20b   : > { %8316 = vmatpush3.bf16.msra.mxu0 %v9746_v55  ;;  %11628 = vst [vmem:[#allocation69_spill] sm:$0xff] %v10195_v42  ;;  %8184 = vmatpush3.bf16.msra.mxu1 %v10195_v42  ;;  %v11409_v35 = vand.u32 4294901760, %v10212_v19 }
 0x20c   : > { %8317 = vmatprep.subr.bf16.mxu0 %v11572_v50  ;;  %8185 = vmatprep.subr.bf16.mxu1 %v11572_v50 }
 0x20d   : > { %v1032_v1 = vsub.f32 %v10212_v19, %v11409_v35 }
 0x20f   : > { %8319 = vmatpush3.bf16.msra.mxu0 %v9753_v58  ;;  %8187 = vmatpush3.bf16.msra.mxu1 %v10201_v9  ;;  %v1033_v48 = vand.u32 4294901760, %v1032_v1 }
 0x210   : > { %8320 = vmatprep.subr.bf16.mxu0 %v11572_v50  ;;  %8188 = vmatprep.subr.bf16.mxu1 %v11572_v50 }
 0x213   : > { %8322 = vmatpush3.bf16.msra.mxu0 %v9759_v61  ;;  %8190 = vmatpush3.bf16.msra.mxu1 %v10207_v20 }
 0x214   : > { %8323 = vmatprep.subr.bf16.mxu0 %v11572_v50  ;;  %8191 = vmatprep.subr.bf16.mxu1 %v11572_v50 }
 0x217   : > { %8325 = vmatpush3.bf16.msra.mxu0 %v9773_v43  ;;  %v11417_v43 = vand.u32 4294901760, %v10229_v8 }
 0x218   : > { %8326 = vmatprep.subr.bf16.mxu0 %v11572_v50 }
 0x21b   : > { %8328 = vmatpush3.bf16.msra.mxu0 %v9786_v5  ;;  %v10226_v5 = vsub.f32 %v11629_v45, %v904_v56  ;;  %v10242_v56 = vsub.f32 %v11634_v62, %v913_v16  ;;  %v11639_v62 = vand.u32 4294901760, %v11541_v27 }
 0x21c   : > { %8329 = vmatprep.subr.bf16.mxu0 %v11572_v50 }
 0x21d   : > { %v11411_v57 = vand.u32 4294901760, %v10226_v5  ;;  %v10291_v58 = vsub.f32 %v11541_v27, %v11639_v62  ;;  %v11641_v62 = vand.u32 4294901760, %v11540_v28 }
 0x21f   : > { %8331 = vmatpush3.bf16.msra.mxu0 %v9806_v23  ;;  %v1046_v35 = vsub.f32 %v10226_v5, %v11411_v57  ;;  %v11442_v2 = vand.u32 4294901760, %v10291_v58  ;;  %v10305_v27 = vsub.f32 %v11540_v28, %v11641_v62 }
 0x220   : > { %8332 = vmatprep.subr.bf16.mxu0 %v11572_v50 }
 0x221   : > { %v1047_v46 = vand.u32 4294901760, %v1046_v35  ;;  %v10261_v35 = vpack.c.bf16 %v10215_v63, %v10212_v19  ;;  %v983_v62 = vsub.f32 %v10291_v58, %v11442_v2  ;;  %v11448_v28 = vand.u32 4294901760, %v10305_v27 }
 0x223   : > { %8334 = vmatpush3.bf16.msra.mxu0 %v9827_v54  ;;  %v11410_v54 = vand.u32 4294901760, %v10215_v63 }
 0x224   : > { %8335 = vmatprep.subr.bf16.mxu0 %v11572_v50 }
 0x225   : > { %v1039_v23 = vsub.f32 %v10215_v63, %v11410_v54  ;;  %v10239_v54 = vsub.f32 %v11632_v39, %v910_v40 }
 0x227   : > { %v1040_v11 = vand.u32 4294901760, %v1039_v23  ;;  %v1053_v23 = vsub.f32 %v10229_v8, %v11417_v43  ;;  %v11415_v1 = vand.u32 4294901760, %v10239_v54 }
 0x229   : > { %v10233_v61 = vpack.c.bf16 %v1040_v11, %v1033_v48  ;;  %v11416_v11 = vand.u32 4294901760, %v10242_v56  ;;  %v1054_v48 = vand.u32 4294901760, %v1053_v23  ;;  %v1060_v57 = vsub.f32 %v10239_v54, %v11415_v1 }
 0x22a   : > { %v10265_v23 = vpack.c.bf16 %v10229_v8, %v10226_v5  ;;  %v10269_v1 = vpack.c.bf16 %v10242_v56, %v10239_v54 }
 0x22b   : > { %v1067_v40 = vsub.f32 %v10242_v56, %v11416_v11  ;;  %v10255_v16 = vpack.c.bf16 %v1054_v48, %v1047_v46  ;;  %v1061_v39 = vand.u32 4294901760, %v1060_v57  ;;  %v11636_v11 = vand.u32 4294901760, %v11544_v24 }
 0x22c   : > { %v11637_v57 = vand.u32 4294901760, %v11543_v25 }
 0x22d   : > { %v1068_v45 = vand.u32 4294901760, %v1067_v40  ;;  %v10274_v46 = vsub.f32 %v11544_v24, %v11636_v11  ;;  %v11638_v40 = vand.u32 4294901760, %v11542_v26  ;;  %v11640_v24 = vld [vmem:[#allocation34_spill] sm:$0xff] }
 0x22f   : > { %v10257_v47 = vpack.c.bf16 %v1068_v45, %v1061_v39  ;;  %v10279_v45 = vsub.f32 %v11543_v25, %v11637_v57  ;;  %v11431_v39 = vand.u32 4294901760, %v10274_v46  ;;  %v10286_v43 = vsub.f32 %v11542_v26, %v11638_v40 }
 0x231   : > { %v11434_v48 = vand.u32 4294901760, %v10279_v45  ;;  %v962_v57 = vsub.f32 %v10274_v46, %v11431_v39  ;;  %v11437_v40 = vand.u32 4294901760, %v10286_v43 }
 0x233   : > { %v969_v25 = vsub.f32 %v10279_v45, %v11434_v48 }
 0x235   : > { %v970_v0 = vand.u32 4294901760, %v969_v25  ;;  %v11644_v25 = vand.u32 4294901760, %v11537_v31 }
 0x2d9   : > { %v856_v11 = vpop.f32.mrb[0].mxu0 }
 0x2da   : > { %v9175_v55 = vadd.f32 %v11640_v24, %v856_v11  ;;  %v6552_v53 = vpop.f32.mrb[1].mxu0  ;;  %v963_v24 = vand.u32 4294901760, %v962_v57 }
 0x2db   : > { %v11642_v53 = vand.u32 4294901760, %v11539_v29 }
 0x2dc   : > { %v860_v26 = vmax.f32 %v9175_v55, 0.0  ;;  %v976_v55 = vsub.f32 %v10286_v43, %v11437_v40  ;;  %v10333_v40 = vsub.f32 %v11537_v31, %v11644_v25  ;;  %v10336_v12 = vpack.c.bf16 %v970_v0, %v963_v24 }
 0x2dd   : > { %v10310_v11 = vsub.f32 %v11539_v29, %v11642_v53  ;;  %v11643_v29 = vand.u32 4294901760, %v11538_v30  ;;  %v984_v53 = vand.u32 4294901760, %v983_v62  ;;  %v11646_v24 = vand.u32 4294901760, %v11536_v32 }
 0x2de   : > { %v10312_v39 = vand.u32 4294901760, %v860_v26  ;;  %v977_v49 = vand.u32 4294901760, %v976_v55  ;;  %v11647_v55 = vand.u32 4294901760, %v11535_v33 }
 0x2df   : > { %v10328_v57 = vsub.f32 %v11538_v30, %v11643_v29  ;;  %v990_v29 = vsub.f32 %v10305_v27, %v11448_v28  ;;  %v11645_v30 = vand.u32 4294901760, %v10310_v11  ;;  %v10352_v0 = vsub.f32 %v11536_v32, %v11646_v24 }
 0x2e0   : > { %v10318_v48 = vsub.f32 %v860_v26, %v10312_v39  ;;  %v10357_v62 = vsub.f32 %v11535_v33, %v11647_v55  ;;  %v10359_v28 = vpack.c.bf16 %v984_v53, %v977_v49  ;;  %v11648_v24 = vand.u32 4294901760, %v10333_v40 }
 0x2e1   : > { %v997_v18 = vsub.f32 %v10310_v11, %v11645_v30  ;;  %v11456_v25 = vand.u32 4294901760, %v10328_v57  ;;  %v991_v13 = vand.u32 4294901760, %v990_v29  ;;  %v11455_v52 = vand.u32 4294901760, %v10352_v0 }
 0x2e2   : > { %v11447_v26 = vand.u32 4294901760, %v10318_v48  ;;  %v1011_v32 = vsub.f32 %v10333_v40, %v11648_v24  ;;  %v11454_v55 = vand.u32 4294901760, %v10357_v62  ;;  %v10407_v24 = vpack.c.bf16 %v10291_v58, %v10286_v43 }
 0x2e3   : > { %v998_v30 = vand.u32 4294901760, %v997_v18  ;;  %v1004_v31 = vsub.f32 %v10328_v57, %v11456_v25  ;;  %v1018_v53 = vsub.f32 %v10352_v0, %v11455_v52  ;;  %v11653_v52 = vand.u32 4294901760, %v10286_v43 }
 0x2e4   : > { %v951_v2 = vsub.f32 %v10318_v48, %v11447_v26  ;;  %v11654_v25 = vand.u32 4294901760, %v10291_v58  ;;  %v11659_v43 = vand.u32 4294901760, %v10328_v57  ;;  %v11660_v58 = vand.u32 4294901760, %v10333_v40 }
 0x2e5   : > { %v10373_v18 = vpack.c.bf16 %v998_v30, %v991_v13  ;;  %v1005_v49 = vand.u32 4294901760, %v1004_v31  ;;  %v1019_v13 = vand.u32 4294901760, %v1018_v53  ;;  %v10427_v53 = vpack.c.bf16 %v10357_v62, %v10352_v0 }
 0x2e6   : > { %v952_v26 = vand.u32 4294901760, %v951_v2  ;;  %v1012_v2 = vand.u32 4294901760, %v1011_v32  ;;  %v10400_v32 = vpack.c.bf16 %v10279_v45, %v10274_v46  ;;  %v10470_v33 = vpack.c.bf16 %v11654_v25, %v11653_v52 }
 0x2e7   : > { %v10488_v52 = vpack.c.bf16 %v11660_v58, %v11659_v43  ;;  %v9445_v58 = vmov 1  }
 0x2e8   : > { %6586 = vmatmul.mubr.f32.vlgmr.msra.gmra.mrb[0].mxu1 %v952_v26  ;;  %v1025_v26 = vsub.f32 %v10357_v62, %v11454_v55  ;;  %v10384_v29 = vpack.c.bf16 %v1012_v2, %v1005_v49  ;;  %v10415_v49 = vpack.c.bf16 %v10310_v11, %v10305_v27  ;;  %v10421_v2 = vpack.c.bf16 %v10333_v40, %v10328_v57 }
 0x2e9   : > { %8193 = vmatpush3.bf16.msra.mxu1 %v10336_v12  ;;  %6620 = vmatprep.mubr.msk.f32.mxu1 %vm9443_vm1, %v11592_v17  ;;  %v11652_v55 = vand.u32 4294901760, %v10318_v48  ;;  %11655 = vst [vmem:[#allocation89_spill] sm:$0xff] %v10470_v33  ;;  %11661 = vst [vmem:[#allocation91_spill] sm:$0xff] %v10488_v52  ;;  %v11665_v57 = vand.u32 4294901760, %v10212_v19  ;;  %v11666_v40 = vand.u32 4294901760, %v10215_v63  ;;  %v11671_v19 = vand.u32 4294901760, %v10239_v54 }
 0x2ea   : > { %8194 = vmatprep.subr.bf16.mxu1 %v11572_v50  ;;  %v1026_v30 = vand.u32 4294901760, %v1025_v26  ;;  %v11649_v26 = vand.u32 4294901760, %v10274_v46  ;;  %v11656_v46 = vand.u32 4294901760, %v10305_v27  ;;  %v11662_v27 = vand.u32 4294901760, %v10352_v0  ;;  %v11674_v54 = vld [vmem:[#allocation51_spill] sm:$0xff]  ;;  %9305 = vset.pattern.permute.xlu0 %v9445_v58 }
 0x2eb   : > { %v11668_v0 = vand.u32 4294901760, %v10226_v5  ;;  %v11672_v63 = vand.u32 4294901760, %v10242_v56 }
 0x2ec   : > { %v10388_v31 = vpack.c.bf16 %v1026_v30, %v1019_v13  ;;  %v11650_v13 = vand.u32 4294901760, %v10279_v45  ;;  %v11657_v45 = vand.u32 4294901760, %v10310_v11  ;;  %v11663_v11 = vand.u32 4294901760, %v10357_v62 }
 0x2ed   : > { %8196 = vmatpush3.bf16.msra.mxu1 %v10359_v28  ;;  %v11669_v62 = vand.u32 4294901760, %v10229_v8 }
 0x2ee   : > { %8197 = vmatprep.subr.bf16.mxu1 %v11572_v50  ;;  %v10460_v30 = vpack.c.bf16 %v11650_v13, %v11649_v26  ;;  %v10496_v25 = vpack.c.bf16 %v11663_v11, %v11662_v27  ;;  %v10520_v13 = vpack.c.bf16 %v11672_v63, %v11671_v19  ;;  %v11676_v27 = vld [vmem:[#allocation58_spill] sm:$0xff]  ;;  %v11677_v11 = vmov 0  }
 0x2ef   : > { %v10512_v26 = vpack.c.bf16 %v11669_v62, %v11668_v0  ;;  %1536 = vperm.xlu0 %9305, %v11676_v27   ;;  %v11679_v0 = vld [vmem:[#allocation53_spill] sm:$0xff] }
 0x2f0   : > { %11651 = vst [vmem:[#allocation88_spill] sm:$0xff] %v10460_v30  ;;  %11664 = vst [vmem:[#allocation92_spill] sm:$0xff] %v10496_v25 }
 0x2f1   : > { %8199 = vmatpush3.bf16.msra.mxu1 %v10373_v18  ;;  %11670 = vst [vmem:[#allocation94_spill] sm:$0xff] %v10512_v26  ;;  %11673 = vst [vmem:[#allocation95_spill] sm:$0xff] %v10520_v13 }
 0x2f2   : > { %8200 = vmatprep.subr.bf16.mxu1 %v11572_v50 }
 0x2f3   : > { %9307 = vset.pattern.permute.xlu0 %v11677_v11 }
 0x2f5   : > { %8202 = vmatpush3.bf16.msra.mxu1 %v10384_v29 }
 0x2f6   : > { %8203 = vmatprep.subr.bf16.mxu1 %v11572_v50 }
 0x2f9   : > { %8205 = vmatpush3.bf16.msra.mxu1 %v10388_v31 }
 0x2fa   : > { %8206 = vmatprep.subr.bf16.mxu1 %v11572_v50 }
 0x2fd   : > { %8208 = vmatpush3.bf16.msra.mxu1 %v10233_v61 }
 0x2fe   : > { %8209 = vmatprep.subr.bf16.mxu1 %v11572_v50 }
 0x301   : > { %8211 = vmatpush3.bf16.msra.mxu1 %v10255_v16 }
 0x302   : > { %8212 = vmatprep.subr.bf16.mxu1 %v11572_v50 }
 0x305   : > { %8214 = vmatpush3.bf16.msra.mxu1 %v10257_v47 }
 0x306   : > { %8215 = vmatprep.subr.bf16.mxu1 %v11572_v50 }
 0x308   : > { %6621 = vmatmul.mubr.f32.vlgmr.msra.gmra.mrb[0].mxu1 %v10312_v39 }
 0x309   : > { %8217 = vmatpush3.bf16.msra.mxu1 %v10400_v32  ;;  %6655 = vmatprep.mubr.msk.f32.mxu1 %vm9443_vm1, %v11592_v17 }
 0x30a   : > { %8218 = vmatprep.subr.bf16.mxu1 %v11572_v50 }
 0x30d   : > { %8220 = vmatpush3.bf16.msra.mxu1 %v10407_v24 }
 0x30e   : > { %8221 = vmatprep.subr.bf16.mxu1 %v11572_v50 }
 0x311   : > { %8223 = vmatpush3.bf16.msra.mxu1 %v10415_v49 }
 0x312   : > { %8224 = vmatprep.subr.bf16.mxu1 %v11572_v50 }
 0x315   : > { %8226 = vmatpush3.bf16.msra.mxu1 %v10421_v2 }
 0x316   : > { %8227 = vmatprep.subr.bf16.mxu1 %v11572_v50 }
 0x319   : > { %8229 = vmatpush3.bf16.msra.mxu1 %v10427_v53 }
 0x31a   : > { %8230 = vmatprep.subr.bf16.mxu1 %v11572_v50 }
 0x31d   : > { %8232 = vmatpush3.bf16.msra.mxu1 %v10261_v35 }
 0x31e   : > { %8233 = vmatprep.subr.bf16.mxu1 %v11572_v50 }
 0x321   : > { %8235 = vmatpush3.bf16.msra.mxu1 %v10265_v23 }
 0x322   : > { %8236 = vmatprep.subr.bf16.mxu1 %v11572_v50 }
 0x325   : > { %8238 = vmatpush3.bf16.msra.mxu1 %v10269_v1 }
 0x326   : > { %8239 = vmatprep.subr.bf16.mxu1 %v11572_v50 }
 0x328   : > { %6656 = vmatmul.mubr.f32.vlgmr.msra.gmra.mrb[0].mxu1 %v10318_v48  ;;  %v10480_v48 = vpack.c.bf16 %v11657_v45, %v11656_v46  ;;  %v11675_v46 = vld [vmem:[#allocation52_spill] sm:$0xff] }
 0x329   : > { %8241 = vmatpush3.bf16.msra.mxu1 %v10012_v36  ;;  %6690 = vmatprep.mubr.msk.f32.mxu1 %vm9443_vm1, %v11592_v17 }
 0x32a   : > { %8242 = vmatprep.subr.bf16.mxu1 %v11572_v50  ;;  %11658 = vst [vmem:[#allocation90_spill] sm:$0xff] %v10480_v48 }
 0x32d   : > { %8244 = vmatpush3.bf16.msra.mxu1 %v10019_v59 }
 0x32e   : > { %8245 = vmatprep.subr.bf16.mxu1 %v11572_v50 }
 0x331   : > { %8247 = vmatpush3.bf16.msra.mxu1 %v10031_v21 }
 0x332   : > { %8248 = vmatprep.subr.bf16.mxu1 %v11572_v50 }
 0x335   : > { %8250 = vmatpush3.bf16.msra.mxu1 %v10043_v34 }
 0x336   : > { %8251 = vmatprep.subr.bf16.mxu1 %v11572_v50 }
 0x339   : > { %8253 = vmatpush3.bf16.msra.mxu1 %v10055_v22 }
 0x33a   : > { %8254 = vmatprep.subr.bf16.mxu1 %v11572_v50 }
 0x33d   : > { %8256 = vmatpush3.bf16.msra.mxu1 %v10195_v42 }
 0x33e   : > { %8257 = vmatprep.subr.bf16.mxu1 %v11572_v50 }
 0x341   : > { %8259 = vmatpush3.bf16.msra.mxu1 %v10201_v9 }
 0x342   : > { %8260 = vmatprep.subr.bf16.mxu1 %v11572_v50 }
 0x345   : > { %8262 = vmatpush3.bf16.msra.mxu1 %v10207_v20 }
 0x346   : > { %8263 = vmatprep.subr.bf16.mxu1 %v11572_v50 }
 0x348   : > { %6691 = vmatmul.mubr.f32.vlgmr.msra.gmra.mrb[0].mxu1 %v11652_v55  ;;  %v10504_v55 = vpack.c.bf16 %v11666_v40, %v11665_v57  ;;  %v10568_v40 = vstv %s162_s23 }
 0x349   : > { %8265 = vmatpush3.bf16.msra.mxu1 %v10460_v30  ;;  %6725 = vmatprep.mubr.msk.f32.mxu1 %vm9443_vm1, %v11592_v17  ;;  %11678 = vst [vmem:[#allocation58_spill] sm:$0xff] %v10568_v40 }
 0x34a   : > { %8266 = vmatprep.subr.bf16.mxu1 %v11572_v50  ;;  %11667 = vst [vmem:[#allocation93_spill] sm:$0xff] %v10504_v55 }
 0x34d   : > { %8268 = vmatpush3.bf16.msra.mxu1 %v10470_v33 }
 0x34e   : > { %8269 = vmatprep.subr.bf16.mxu1 %v11572_v50 }
 0x351   : > { %8271 = vmatpush3.bf16.msra.mxu1 %v10480_v48 }
 0x352   : > { %8272 = vmatprep.subr.bf16.mxu1 %v11572_v50 }
 0x355   : > { %8274 = vmatpush3.bf16.msra.mxu1 %v10488_v52 }
 0x356   : > { %8275 = vmatprep.subr.bf16.mxu1 %v11572_v50 }
 0x359   : > { %8277 = vmatpush3.bf16.msra.mxu1 %v10496_v25 }
 0x35a   : > { %8278 = vmatprep.subr.bf16.mxu1 %v11572_v50 }
 0x35d   : > { %8280 = vmatpush3.bf16.msra.mxu1 %v10504_v55 }
 0x35e   : > { %8281 = vmatprep.subr.bf16.mxu1 %v11572_v50 }
 0x361   : > { %8283 = vmatpush3.bf16.msra.mxu1 %v10512_v26 }
 0x362   : > { %8284 = vmatprep.subr.bf16.mxu1 %v11572_v50 }
 0x365   : > { %8286 = vmatpush3.bf16.msra.mxu1 %v10520_v13 }
 0x366   : > { %8287 = vmatprep.subr.bf16.mxu1 %v11572_v50 }
 0x368   : > { %6726 = vmatmul.mubr.f32.vlgmr.msra.gmra.mrb[0].mxu1 %v10312_v39 }
 0x369   : > { %8289 = vmatpush3.bf16.msra.mxu1 %v10012_v36  ;;  %6760 = vmatprep.mubr.msk.f32.mxu1 %vm9443_vm1, %v11592_v17 }
 0x36a   : > { %8290 = vmatprep.subr.bf16.mxu1 %v11572_v50 }
 0x36d   : > { %8292 = vmatpush3.bf16.msra.mxu1 %v10019_v59 }
 0x36e   : > { %8293 = vmatprep.subr.bf16.mxu1 %v11572_v50 }
 0x371   : > { %8295 = vmatpush3.bf16.msra.mxu1 %v10031_v21 }
 0x372   : > { %8296 = vmatprep.subr.bf16.mxu1 %v11572_v50 }
 0x375   : > { %8298 = vmatpush3.bf16.msra.mxu1 %v10043_v34 }
 0x376   : > { %8299 = vmatprep.subr.bf16.mxu1 %v11572_v50 }
 0x379   : > { %8301 = vmatpush3.bf16.msra.mxu1 %v10055_v22 }
 0x37a   : > { %8302 = vmatprep.subr.bf16.mxu1 %v11572_v50 }
 0x37d   : > { %8304 = vmatpush3.bf16.msra.mxu1 %v10195_v42 }
 0x37e   : > { %8305 = vmatprep.subr.bf16.mxu1 %v11572_v50 }
 0x381   : > { %8307 = vmatpush3.bf16.msra.mxu1 %v10201_v9 }
 0x382   : > { %8308 = vmatprep.subr.bf16.mxu1 %v11572_v50 }
 0x385   : > { %8310 = vmatpush3.bf16.msra.mxu1 %v10207_v20 }
 0x386   : > { %8455 = vmatprep.subr.bf16.mxu1 %v11572_v50 }
 0x388   : > { %6761 = vmatmul.mubr.f32.vlgmr.msra.gmra.mrb[0].mxu1 %v10312_v39 }
 0x389   : > { %8457 = vmatpush3.bf16.msra.mxu1 %v10012_v36  ;;  %7005 = vmatprep.mubr.msk.f32.mxu1 %vm9443_vm1, %v11592_v17 }
 0x38a   : > { %8458 = vmatprep.subr.bf16.mxu1 %v11572_v50 }
 0x38d   : > { %8460 = vmatpush3.bf16.msra.mxu1 %v10019_v59 }
 0x38e   : > { %8461 = vmatprep.subr.bf16.mxu1 %v11572_v50 }
 0x391   : > { %8463 = vmatpush3.bf16.msra.mxu1 %v10031_v21 }
 0x392   : > { %8464 = vmatprep.subr.bf16.mxu1 %v11572_v50 }
 0x395   : > { %8466 = vmatpush3.bf16.msra.mxu1 %v10043_v34 }
 0x396   : > { %8467 = vmatprep.subr.bf16.mxu1 %v11572_v50 }
 0x399   : > { %8469 = vmatpush3.bf16.msra.mxu1 %v10055_v22 }
 0x39a   : > { %8470 = vmatprep.subr.bf16.mxu1 %v11572_v50 }
 0x39d   : > { %8472 = vmatpush3.bf16.msra.mxu1 %v10195_v42 }
 0x39e   : > { %8473 = vmatprep.subr.bf16.mxu1 %v11572_v50 }
 0x3a1   : > { %8475 = vmatpush3.bf16.msra.mxu1 %v10201_v9 }
 0x3a2   : > { %8476 = vmatprep.subr.bf16.mxu1 %v11572_v50 }
 0x3a5   : > { %8478 = vmatpush3.bf16.msra.mxu1 %v10207_v20 }
 0x3a6   : > { %8479 = vmatprep.subr.bf16.mxu1 %v11572_v50 }
 0x45b   : > { %v1504_v5 = vpop.f32.mrb[0].mxu1 }
 0x45c   : > { %v9176_v8 = vadd.f32 %v11674_v54, %v1504_v5  ;;  %v6762_v56 = vpop.f32.mrb[1].mxu1  ;;  %v11681_v5 = vld [vmem:[#allocation56_spill] sm:$0xff] }
 0x45d   : > { %v1541_v56 = vstv %s166_s29 }
 0x45e   : > { %v1508_v39 = vmax.f32 %v9176_v8, 0.0 }
 0x460   : > { %v1515_v43 = vmul.f32 %v11675_v46, %v1508_v39  ;;  %v1537_v39 = vpop.permute.xlu0 %1536  ;;  %v1542_v46 = vmul.f32 %v1541_v56, %v9575_v6  ;;  %v11686_v56 = vld [vmem:[#allocation76_spill] sm:$0xff] }
 0x462   : > { %1516 = vadd.xlane.f32.xlu1 %v1515_v43  ;;  %v1539_v43 = vmul.f32 %v9568_v4, %v1537_v39  ;;  %v1547_v11 = vrot.slane %v1542_v46, %v9966_v37  ;;  %v11687_v39 = vld [vmem:[#allocation77_spill] sm:$0xff]  ;;  %v11688_v46 = vld [vmem:[#allocation78_spill] sm:$0xff] }
 0x4ef   : > { %v1517_v57 = vpop.xlane.xlu1 %1516 }
 0x4f0   : > { %v10571_v62 = vadd.f32 %v11679_v0, %v1517_v57 }
 0x4f2   : > { %11680 = vst [vmem:[#allocation96_spill] sm:$0xff] %v10571_v62  ;;  %v1526_v19 = vmul.f32 %v10568_v40, %v10571_v62 }
 0x4f4   : > { %v1527_v63 = vmul.f32 0.33333334, %v1526_v19 }
 0x4f6   : > { %v1528_v8 = vadd.f32 %v11681_v5, %v1527_v63 }
 0x4f8   : > { %1531 = vperm.xlu1 %9304, %v1528_v8  }
 0x577   : > { %v1532_v58 = vpop.permute.xlu1 %1531 }
 0x578   : > { %v1534_v27 = vmul.f32 %v9563_v3, %v1532_v58  ;;  %v11690_v58 = vld [vmem:[#allocation57_spill] sm:$0xff] }
 0x57a   : > { %v1540_v57 = vadd.f32 %v1539_v43, %v1534_v27  ;;  %v11689_v43 = vld [vmem:[#allocation79_spill] sm:$0xff] }
 0x57b   : > { %v11691_v27 = vld [vmem:[#allocation59_spill] sm:$0xff] }
 0x57c   : > { %v1549_v0 = vadd.f32 %v1547_v11, %v1540_v57  ;;  %v11692_v11 = vld [vmem:[#allocation60_spill] sm:$0xff]  ;;  %v11693_v57 = vld [vmem:[#allocation61_spill] sm:$0xff] }
 0x57e   : > { %v1550_v19 = vadd.f32 %v9580_v7, %v1549_v0  ;;  %v11684_v0 = vld [vmem:[#allocation74_spill] sm:$0xff] }
 0x580   : > { %v1551_v40 = vmax.f32 %v1550_v19, 0.0  ;;  %v11694_v19 = vld [vmem:[#allocation62_spill] sm:$0xff] }
 0x582   : > { %v10582_v63 = vand.u32 4294901760, %v1551_v40 }
 0x584   : > { %v1634_v8 = vsub.f32 %v1551_v40, %v10582_v63  ;;  %v11683_v40 = vld [vmem:[#allocation73_spill] sm:$0xff] }
 0x586   : > { %v1635_v5 = vand.u32 4294901760, %v1634_v8 }
 0x588   : > { %v1636_v62 = vsub.f32 %v1634_v8, %v1635_v5 }
 0x58a   : > { %v1637_v45 = vand.u32 4294901760, %v1636_v62  ;;  %v11685_v62 = vld [vmem:[#allocation75_spill] sm:$0xff] }
 0x58c   : > { %6796 = vmatmul.mubr.f32.vlgmr.msra.gmra.mrb[2].mxu0 %v1637_v45  ;;  %v11682_v45 = vld [vmem:[#allocation72_spill] sm:$0xff] }
 0x58d   : > { %8337 = vmatpush3.bf16.msra.mxu0 %v9811_v51  ;;  %6830 = vmatprep.mubr.msk.f32.mxu0 %vm9443_vm1, %v11592_v17 }
 0x58e   : > { %8338 = vmatprep.subr.bf16.mxu0 %v11572_v50 }
 0x591   : > { %8340 = vmatpush3.bf16.msra.mxu0 %v9831_v38 }
 0x592   : > { %8341 = vmatprep.subr.bf16.mxu0 %v11572_v50 }
 0x595   : > { %8343 = vmatpush3.bf16.msra.mxu0 %v9862_v41 }
 0x596   : > { %8344 = vmatprep.subr.bf16.mxu0 %v11572_v50 }
 0x599   : > { %8346 = vmatpush3.bf16.msra.mxu0 %v9866_v14 }
 0x59a   : > { %8347 = vmatprep.subr.bf16.mxu0 %v11572_v50 }
 0x59d   : > { %8349 = vmatpush3.bf16.msra.mxu0 %v9886_v15 }
 0x59e   : > { %8350 = vmatprep.subr.bf16.mxu0 %v11572_v50 }
 0x5a1   : > { %8352 = vmatpush3.bf16.msra.mxu0 %v9914_v10 }
 0x5a2   : > { %8353 = vmatprep.subr.bf16.mxu0 %v11572_v50 }
 0x5a5   : > { %8355 = vmatpush3.bf16.msra.mxu0 %v9918_v44 }
 0x5a6   : > { %8356 = vmatprep.subr.bf16.mxu0 %v11572_v50 }
 0x5a9   : > { %8358 = vmatpush3.bf16.msra.mxu0 %v9926_v60 }
 0x5aa   : > { %8359 = vmatprep.subr.bf16.mxu0 %v11572_v50 }
 0x5ac   : > { %6831 = vmatmul.mubr.f32.vlgmr.msra.gmra.mrb[2].mxu0 %v10582_v63 }
 0x5ad   : > { %8361 = vmatpush3.bf16.msra.mxu0 %v11682_v45  ;;  %6865 = vmatprep.mubr.msk.f32.mxu0 %vm9443_vm1, %v11592_v17 }
 0x5ae   : > { %8362 = vmatprep.subr.bf16.mxu0 %v11572_v50 }
 0x5b1   : > { %8364 = vmatpush3.bf16.msra.mxu0 %v11683_v40  ;;  %v11704_v40 = vld [vmem:[#allocation67_spill] sm:$0xff] }
 0x5b2   : > { %8365 = vmatprep.subr.bf16.mxu0 %v11572_v50 }
 0x5b5   : > { %8367 = vmatpush3.bf16.msra.mxu0 %v11684_v0  ;;  %v11701_v0 = vld [vmem:[#allocation86_spill] sm:$0xff] }
 0x5b6   : > { %8368 = vmatprep.subr.bf16.mxu0 %v11572_v50 }
 0x5b9   : > { %8370 = vmatpush3.bf16.msra.mxu0 %v11685_v62  ;;  %v11700_v62 = vld [vmem:[#allocation85_spill] sm:$0xff] }
 0x5ba   : > { %8371 = vmatprep.subr.bf16.mxu0 %v11572_v50 }
 0x5bd   : > { %8373 = vmatpush3.bf16.msra.mxu0 %v11686_v56  ;;  %v11699_v56 = vld [vmem:[#allocation84_spill] sm:$0xff] }
 0x5be   : > { %8374 = vmatprep.subr.bf16.mxu0 %v11572_v50 }
 0x5c1   : > { %8376 = vmatpush3.bf16.msra.mxu0 %v11687_v39  ;;  %v11698_v39 = vld [vmem:[#allocation83_spill] sm:$0xff] }
 0x5c2   : > { %8377 = vmatprep.subr.bf16.mxu0 %v11572_v50 }
 0x5c5   : > { %8379 = vmatpush3.bf16.msra.mxu0 %v11688_v46  ;;  %v11697_v46 = vld [vmem:[#allocation65_spill] sm:$0xff] }
 0x5c6   : > { %8380 = vmatprep.subr.bf16.mxu0 %v11572_v50 }
 0x5c9   : > { %8382 = vmatpush3.bf16.msra.mxu0 %v11689_v43  ;;  %v11696_v43 = vld [vmem:[#allocation64_spill] sm:$0xff] }
 0x5ca   : > { %8383 = vmatprep.subr.bf16.mxu0 %v11572_v50 }
 0x5cc   : > { %6866 = vmatmul.mubr.f32.vlgmr.msra.gmra.mrb[2].mxu0 %v1634_v8  ;;  %v11695_v8 = vld [vmem:[#allocation63_spill] sm:$0xff] }
 0x5cd   : > { %8385 = vmatpush3.bf16.msra.mxu0 %v11690_v58  ;;  %6900 = vmatprep.mubr.msk.f32.mxu0 %vm9443_vm1, %v11592_v17 }
 0x5ce   : > { %8386 = vmatprep.subr.bf16.mxu0 %v11572_v50 }
 0x5d1   : > { %8388 = vmatpush3.bf16.msra.mxu0 %v11691_v27 }
 0x5d2   : > { %8389 = vmatprep.subr.bf16.mxu0 %v11572_v50 }
 0x5d5   : > { %8391 = vmatpush3.bf16.msra.mxu0 %v11692_v11 }
 0x5d6   : > { %8392 = vmatprep.subr.bf16.mxu0 %v11572_v50 }
 0x5d9   : > { %8394 = vmatpush3.bf16.msra.mxu0 %v11693_v57 }
 0x5da   : > { %8395 = vmatprep.subr.bf16.mxu0 %v11572_v50 }
 0x5dd   : > { %8397 = vmatpush3.bf16.msra.mxu0 %v11694_v19 }
 0x5de   : > { %8398 = vmatprep.subr.bf16.mxu0 %v11572_v50 }
 0x5e1   : > { %8400 = vmatpush3.bf16.msra.mxu0 %v11695_v8 }
 0x5e2   : > { %8401 = vmatprep.subr.bf16.mxu0 %v11572_v50 }
 0x5e5   : > { %8403 = vmatpush3.bf16.msra.mxu0 %v11696_v43 }
 0x5e6   : > { %8404 = vmatprep.subr.bf16.mxu0 %v11572_v50 }
 0x5e9   : > { %8406 = vmatpush3.bf16.msra.mxu0 %v11697_v46 }
 0x5ea   : > { %8407 = vmatprep.subr.bf16.mxu0 %v11572_v50 }
 0x5ec   : > { %6901 = vmatmul.mubr.f32.vlgmr.msra.gmra.mrb[2].mxu0 %v1635_v5  ;;  %v11702_v5 = vld [vmem:[#allocation87_spill] sm:$0xff] }
 0x5ed   : > { %8409 = vmatpush3.bf16.msra.mxu0 %v11698_v39  ;;  %6935 = vmatprep.mubr.msk.f32.mxu0 %vm9443_vm1, %v11592_v17  ;;  %v11703_v39 = vld [vmem:[#allocation66_spill] sm:$0xff] }
 0x5ee   : > { %8410 = vmatprep.subr.bf16.mxu0 %v11572_v50 }
 0x5f1   : > { %8412 = vmatpush3.bf16.msra.mxu0 %v11699_v56  ;;  %v11705_v56 = vld [vmem:[#allocation68_spill] sm:$0xff] }
 0x5f2   : > { %8413 = vmatprep.subr.bf16.mxu0 %v11572_v50 }
 0x5f5   : > { %8415 = vmatpush3.bf16.msra.mxu0 %v11700_v62 }
 0x5f6   : > { %8416 = vmatprep.subr.bf16.mxu0 %v11572_v50 }
 0x5f9   : > { %8418 = vmatpush3.bf16.msra.mxu0 %v11701_v0 }
 0x5fa   : > { %8419 = vmatprep.subr.bf16.mxu0 %v11572_v50 }
 0x5fd   : > { %8421 = vmatpush3.bf16.msra.mxu0 %v11702_v5 }
 0x5fe   : > { %8422 = vmatprep.subr.bf16.mxu0 %v11572_v50 }
 0x601   : > { %8424 = vmatpush3.bf16.msra.mxu0 %v11703_v39 }
 0x602   : > { %8425 = vmatprep.subr.bf16.mxu0 %v11572_v50 }
 0x605   : > { %8427 = vmatpush3.bf16.msra.mxu0 %v11704_v40 }
 0x606   : > { %8428 = vmatprep.subr.bf16.mxu0 %v11572_v50 }
 0x609   : > { %8430 = vmatpush3.bf16.msra.mxu0 %v11705_v56  ;;  %v11706_v56 = vld [vmem:[#allocation34_spill] sm:$0xff] }
 0x60a   : > { %8431 = vmatprep.subr.bf16.mxu0 %v11572_v50 }
 0x60c   : > { %6936 = vmatmul.mubr.f32.vlgmr.msra.gmra.mrb[2].mxu0 %v10582_v63 }
 0x60d   : > { %8433 = vmatpush3.bf16.msra.mxu0 %v11690_v58  ;;  %6970 = vmatprep.mubr.msk.f32.mxu0 %vm9443_vm1, %v11592_v17 }
 0x60e   : > { %8434 = vmatprep.subr.bf16.mxu0 %v11572_v50 }
 0x611   : > { %8436 = vmatpush3.bf16.msra.mxu0 %v11691_v27 }
 0x612   : > { %8437 = vmatprep.subr.bf16.mxu0 %v11572_v50 }
 0x615   : > { %8439 = vmatpush3.bf16.msra.mxu0 %v11692_v11 }
 0x616   : > { %8440 = vmatprep.subr.bf16.mxu0 %v11572_v50 }
 0x619   : > { %8442 = vmatpush3.bf16.msra.mxu0 %v11693_v57 }
 0x61a   : > { %8443 = vmatprep.subr.bf16.mxu0 %v11572_v50 }
 0x61d   : > { %8445 = vmatpush3.bf16.msra.mxu0 %v11694_v19 }
 0x61e   : > { %8446 = vmatprep.subr.bf16.mxu0 %v11572_v50 }
 0x621   : > { %8448 = vmatpush3.bf16.msra.mxu0 %v11695_v8 }
 0x622   : > { %8449 = vmatprep.subr.bf16.mxu0 %v11572_v50 }
 0x625   : > { %8451 = vmatpush3.bf16.msra.mxu0 %v11696_v43 }
 0x626   : > { %8452 = vmatprep.subr.bf16.mxu0 %v11572_v50 }
 0x629   : > { %8454 = vmatpush3.bf16.msra.mxu0 %v11697_v46 }
 0x62a   : > { %8599 = vmatprep.subr.bf16.mxu0 %v11572_v50 }
 0x62c   : > { %6971 = vmatmul.mubr.f32.vlgmr.msra.gmra.mrb[2].mxu0 %v10582_v63 }
 0x62d   : > { %8601 = vmatpush3.bf16.msra.mxu0 %v11690_v58  ;;  %7215 = vmatprep.mubr.msk.f32.mxu0 %vm9443_vm1, %v11592_v17 }
 0x62e   : > { %8602 = vmatprep.subr.bf16.mxu0 %v11572_v50 }
 0x631   : > { %8604 = vmatpush3.bf16.msra.mxu0 %v11691_v27 }
 0x632   : > { %8605 = vmatprep.subr.bf16.mxu0 %v11572_v50 }
 0x635   : > { %8607 = vmatpush3.bf16.msra.mxu0 %v11692_v11 }
 0x636   : > { %8608 = vmatprep.subr.bf16.mxu0 %v11572_v50 }
 0x639   : > { %8610 = vmatpush3.bf16.msra.mxu0 %v11693_v57 }
 0x63a   : > { %8611 = vmatprep.subr.bf16.mxu0 %v11572_v50 }
 0x63d   : > { %8613 = vmatpush3.bf16.msra.mxu0 %v11694_v19 }
 0x63e   : > { %8614 = vmatprep.subr.bf16.mxu0 %v11572_v50 }
 0x641   : > { %8616 = vmatpush3.bf16.msra.mxu0 %v11695_v8 }
 0x642   : > { %8617 = vmatprep.subr.bf16.mxu0 %v11572_v50 }
 0x645   : > { %8619 = vmatpush3.bf16.msra.mxu0 %v11696_v43 }
 0x646   : > { %8620 = vmatprep.subr.bf16.mxu0 %v11572_v50 }
 0x649   : > { %8622 = vmatpush3.bf16.msra.mxu0 %v11697_v46 }
 0x64a   : > { %8623 = vmatprep.subr.bf16.mxu0 %v11572_v50 }
 0x6ff   : > { %v2189_v63 = vpop.f32.mrb[2].mxu0 }
 0x700   : > { %v9177_v40 = vadd.f32 %v11706_v56, %v2189_v63  ;;  %v6972_v39 = vpop.f32.mrb[3].mxu0 }
 0x702   : > { %v2193_v5 = vmax.f32 %v9177_v40, 0.0 }
 0x704   : > { %v10697_v0 = vand.u32 4294901760, %v2193_v5 }
 0x706   : > { %v2276_v62 = vsub.f32 %v2193_v5, %v10697_v0  ;;  %v11708_v5 = vld [vmem:[#allocation96_spill] sm:$0xff] }
 0x707   : > { %v2840_v63 = vmul.f32 0.33333334, %v11708_v5 }
 0x708   : > { %v2277_v8 = vand.u32 4294901760, %v2276_v62 }
 0x70a   : > { %v2278_v19 = vsub.f32 %v2276_v62, %v2277_v8 }
 0x70c   : > { %v2279_v57 = vand.u32 4294901760, %v2278_v19 }
 0x70e   : > { %7006 = vmatmul.mubr.f32.vlgmr.msra.gmra.mrb[2].mxu1 %v2279_v57  ;;  %v11707_v57 = vld [vmem:[#allocation52_spill] sm:$0xff] }
 0x70f   : > { %8481 = vmatpush3.bf16.msra.mxu1 %v10336_v12  ;;  %7040 = vmatprep.mubr.msk.f32.mxu1 %vm9443_vm1, %v11592_v17 }
 0x710   : > { %8482 = vmatprep.subr.bf16.mxu1 %v11572_v50 }
 0x713   : > { %8484 = vmatpush3.bf16.msra.mxu1 %v10359_v28 }
 0x714   : > { %8485 = vmatprep.subr.bf16.mxu1 %v11572_v50 }
 0x717   : > { %8487 = vmatpush3.bf16.msra.mxu1 %v10373_v18 }
 0x718   : > { %8488 = vmatprep.subr.bf16.mxu1 %v11572_v50 }
 0x71b   : > { %8490 = vmatpush3.bf16.msra.mxu1 %v10384_v29 }
 0x71c   : > { %8491 = vmatprep.subr.bf16.mxu1 %v11572_v50 }
 0x71f   : > { %8493 = vmatpush3.bf16.msra.mxu1 %v10388_v31 }
 0x720   : > { %8494 = vmatprep.subr.bf16.mxu1 %v11572_v50 }
 0x723   : > { %8496 = vmatpush3.bf16.msra.mxu1 %v10233_v61 }
 0x724   : > { %8497 = vmatprep.subr.bf16.mxu1 %v11572_v50 }
 0x727   : > { %8499 = vmatpush3.bf16.msra.mxu1 %v10255_v16 }
 0x728   : > { %8500 = vmatprep.subr.bf16.mxu1 %v11572_v50 }
 0x72b   : > { %8502 = vmatpush3.bf16.msra.mxu1 %v10257_v47 }
 0x72c   : > { %8503 = vmatprep.subr.bf16.mxu1 %v11572_v50 }
 0x72e   : > { %7041 = vmatmul.mubr.f32.vlgmr.msra.gmra.mrb[2].mxu1 %v10697_v0 }
 0x72f   : > { %8505 = vmatpush3.bf16.msra.mxu1 %v10400_v32  ;;  %7075 = vmatprep.mubr.msk.f32.mxu1 %vm9443_vm1, %v11592_v17 }
 0x730   : > { %8506 = vmatprep.subr.bf16.mxu1 %v11572_v50 }
 0x733   : > { %8508 = vmatpush3.bf16.msra.mxu1 %v10407_v24 }
 0x734   : > { %8509 = vmatprep.subr.bf16.mxu1 %v11572_v50 }
 0x737   : > { %8511 = vmatpush3.bf16.msra.mxu1 %v10415_v49 }
 0x738   : > { %8512 = vmatprep.subr.bf16.mxu1 %v11572_v50 }
 0x73b   : > { %8514 = vmatpush3.bf16.msra.mxu1 %v10421_v2 }
 0x73c   : > { %8515 = vmatprep.subr.bf16.mxu1 %v11572_v50 }
 0x73f   : > { %8517 = vmatpush3.bf16.msra.mxu1 %v10427_v53 }
 0x740   : > { %8518 = vmatprep.subr.bf16.mxu1 %v11572_v50 }
 0x743   : > { %8520 = vmatpush3.bf16.msra.mxu1 %v10261_v35 }
 0x744   : > { %8521 = vmatprep.subr.bf16.mxu1 %v11572_v50 }
 0x747   : > { %8523 = vmatpush3.bf16.msra.mxu1 %v10265_v23 }
 0x748   : > { %8524 = vmatprep.subr.bf16.mxu1 %v11572_v50 }
 0x74b   : > { %8526 = vmatpush3.bf16.msra.mxu1 %v10269_v1 }
 0x74c   : > { %8527 = vmatprep.subr.bf16.mxu1 %v11572_v50 }
 0x74e   : > { %7076 = vmatmul.mubr.f32.vlgmr.msra.gmra.mrb[2].mxu1 %v2276_v62 }
 0x74f   : > { %8529 = vmatpush3.bf16.msra.mxu1 %v10012_v36  ;;  %7110 = vmatprep.mubr.msk.f32.mxu1 %vm9443_vm1, %v11592_v17 }
 0x750   : > { %8530 = vmatprep.subr.bf16.mxu1 %v11572_v50 }
 0x753   : > { %8532 = vmatpush3.bf16.msra.mxu1 %v10019_v59 }
 0x754   : > { %8533 = vmatprep.subr.bf16.mxu1 %v11572_v50 }
 0x757   : > { %8535 = vmatpush3.bf16.msra.mxu1 %v10031_v21 }
 0x758   : > { %8536 = vmatprep.subr.bf16.mxu1 %v11572_v50 }
 0x75b   : > { %8538 = vmatpush3.bf16.msra.mxu1 %v10043_v34 }
 0x75c   : > { %8539 = vmatprep.subr.bf16.mxu1 %v11572_v50 }
 0x75f   : > { %8541 = vmatpush3.bf16.msra.mxu1 %v10055_v22 }
 0x760   : > { %8542 = vmatprep.subr.bf16.mxu1 %v11572_v50 }
 0x763   : > { %8544 = vmatpush3.bf16.msra.mxu1 %v10195_v42 }
 0x764   : > { %8545 = vmatprep.subr.bf16.mxu1 %v11572_v50 }
 0x767   : > { %8547 = vmatpush3.bf16.msra.mxu1 %v10201_v9 }
 0x768   : > { %8548 = vmatprep.subr.bf16.mxu1 %v11572_v50 }
 0x76b   : > { %8550 = vmatpush3.bf16.msra.mxu1 %v10207_v20 }
 0x76c   : > { %8551 = vmatprep.subr.bf16.mxu1 %v11572_v50 }
 0x76e   : > { %7111 = vmatmul.mubr.f32.vlgmr.msra.gmra.mrb[2].mxu1 %v2277_v8 }
 0x76f   : > { %8553 = vmatpush3.bf16.msra.mxu1 %v10460_v30  ;;  %7145 = vmatprep.mubr.msk.f32.mxu1 %vm9443_vm1, %v11592_v17 }
 0x770   : > { %8554 = vmatprep.subr.bf16.mxu1 %v11572_v50 }
 0x773   : > { %8556 = vmatpush3.bf16.msra.mxu1 %v10470_v33 }
 0x774   : > { %8557 = vmatprep.subr.bf16.mxu1 %v11572_v50 }
 0x777   : > { %8559 = vmatpush3.bf16.msra.mxu1 %v10480_v48  ;;  %v11712_v48 = vld [vmem:[#allocation56_spill] sm:$0xff] }
 0x778   : > { %8560 = vmatprep.subr.bf16.mxu1 %v11572_v50 }
 0x77b   : > { %8562 = vmatpush3.bf16.msra.mxu1 %v10488_v52 }
 0x77c   : > { %8563 = vmatprep.subr.bf16.mxu1 %v11572_v50 }
 0x77f   : > { %8565 = vmatpush3.bf16.msra.mxu1 %v10496_v25  ;;  %v11711_v25 = vld [vmem:[#allocation58_spill] sm:$0xff] }
 0x780   : > { %8566 = vmatprep.subr.bf16.mxu1 %v11572_v50 }
 0x783   : > { %8568 = vmatpush3.bf16.msra.mxu1 %v10504_v55 }
 0x784   : > { %8569 = vmatprep.subr.bf16.mxu1 %v11572_v50 }
 0x787   : > { %8571 = vmatpush3.bf16.msra.mxu1 %v10512_v26 }
 0x788   : > { %8572 = vmatprep.subr.bf16.mxu1 %v11572_v50 }
 0x78b   : > { %8574 = vmatpush3.bf16.msra.mxu1 %v10520_v13  ;;  %v11709_v13 = vld [vmem:[#allocation53_spill] sm:$0xff] }
 0x78c   : > { %8575 = vmatprep.subr.bf16.mxu1 %v11572_v50 }
 0x78e   : > { %7146 = vmatmul.mubr.f32.vlgmr.msra.gmra.mrb[2].mxu1 %v10697_v0 }
 0x78f   : > { %8577 = vmatpush3.bf16.msra.mxu1 %v10012_v36  ;;  %7180 = vmatprep.mubr.msk.f32.mxu1 %vm9443_vm1, %v11592_v17 }
 0x790   : > { %8578 = vmatprep.subr.bf16.mxu1 %v11572_v50 }
 0x793   : > { %8580 = vmatpush3.bf16.msra.mxu1 %v10019_v59 }
 0x794   : > { %8581 = vmatprep.subr.bf16.mxu1 %v11572_v50 }
 0x797   : > { %8583 = vmatpush3.bf16.msra.mxu1 %v10031_v21 }
 0x798   : > { %8584 = vmatprep.subr.bf16.mxu1 %v11572_v50 }
 0x79b   : > { %8586 = vmatpush3.bf16.msra.mxu1 %v10043_v34 }
 0x79c   : > { %8587 = vmatprep.subr.bf16.mxu1 %v11572_v50 }
 0x79f   : > { %8589 = vmatpush3.bf16.msra.mxu1 %v10055_v22 }
 0x7a0   : > { %8590 = vmatprep.subr.bf16.mxu1 %v11572_v50 }
 0x7a3   : > { %8592 = vmatpush3.bf16.msra.mxu1 %v10195_v42 }
 0x7a4   : > { %8593 = vmatprep.subr.bf16.mxu1 %v11572_v50 }
 0x7a7   : > { %8595 = vmatpush3.bf16.msra.mxu1 %v10201_v9 }
 0x7a8   : > { %8596 = vmatprep.subr.bf16.mxu1 %v11572_v50 }
 0x7ab   : > { %8598 = vmatpush3.bf16.msra.mxu1 %v10207_v20 }
 0x7ac   : > { %8743 = vmatprep.subr.bf16.mxu1 %v11572_v50 }
 0x7ae   : > { %7181 = vmatmul.mubr.f32.vlgmr.msra.gmra.mrb[2].mxu1 %v10697_v0 }
 0x7af   : > { %8745 = vmatpush3.bf16.msra.mxu1 %v10012_v36  ;;  %7425 = vmatprep.mubr.msk.f32.mxu1 %vm9443_vm1, %v11592_v17 }
 0x7b0   : > { %8746 = vmatprep.subr.bf16.mxu1 %v11572_v50 }
 0x7b3   : > { %8748 = vmatpush3.bf16.msra.mxu1 %v10019_v59 }
 0x7b4   : > { %8749 = vmatprep.subr.bf16.mxu1 %v11572_v50 }
 0x7b7   : > { %8751 = vmatpush3.bf16.msra.mxu1 %v10031_v21 }
 0x7b8   : > { %8752 = vmatprep.subr.bf16.mxu1 %v11572_v50 }
 0x7bb   : > { %8754 = vmatpush3.bf16.msra.mxu1 %v10043_v34 }
 0x7bc   : > { %8755 = vmatprep.subr.bf16.mxu1 %v11572_v50 }
 0x7bf   : > { %8757 = vmatpush3.bf16.msra.mxu1 %v10055_v22 }
 0x7c0   : > { %8758 = vmatprep.subr.bf16.mxu1 %v11572_v50 }
 0x7c3   : > { %8760 = vmatpush3.bf16.msra.mxu1 %v10195_v42 }
 0x7c4   : > { %8761 = vmatprep.subr.bf16.mxu1 %v11572_v50 }
 0x7c7   : > { %8763 = vmatpush3.bf16.msra.mxu1 %v10201_v9 }
 0x7c8   : > { %8764 = vmatprep.subr.bf16.mxu1 %v11572_v50 }
 0x7cb   : > { %8766 = vmatpush3.bf16.msra.mxu1 %v10207_v20 }
 0x7cc   : > { %8767 = vmatprep.subr.bf16.mxu1 %v11572_v50 }
 0x881   : > { %v2831_v40 = vpop.f32.mrb[2].mxu1 }
 0x882   : > { %v9178_v0 = vadd.f32 %v11674_v54, %v2831_v40  ;;  %v7182_v62 = vpop.f32.mrb[3].mxu1  ;;  %v9446_v40 = vmov 2  }
 0x883   : > { %v10821_v62 = vld [vmem:[%s9737_s26] sm:$0xff] }
 0x884   : > { %v2835_v39 = vmax.f32 %v9178_v0, 0.0  ;;  %11713 = vst [vmem:[#allocation57_spill] sm:$0xff] %v10821_v62  ;;  %v2856_v0 = vstv %s168_s15 }
 0x886   : > { %v2836_v19 = vmul.f32 %v11707_v57, %v2835_v39 }
 0x888   : > { %2837 = vadd.xlane.f32.xlu0 %v2836_v19  ;;  %v2857_v19 = vmul.f32 %v2856_v0, %v9575_v6  ;;  %v11718_v0 = vld [vmem:[#allocation77_spill] sm:$0xff] }
 0x915   : > { %v2838_v8 = vpop.xlane.xlu0 %2837 }
 0x916   : > { %v10815_v26 = vadd.f32 %v11709_v13, %v2838_v8 }
 0x918   : > { %11710 = vst [vmem:[#allocation72_spill] sm:$0xff] %v10815_v26  ;;  %v2841_v55 = vsub.f32 %v10815_v26, %v2840_v63 }
 0x91a   : > { %v2842_v52 = vmul.f32 %v2841_v55, %v11711_v25  ;;  %v2862_v55 = vrot.slane %v2857_v19, %v9966_v37  ;;  %v11720_v19 = vld [vmem:[#allocation79_spill] sm:$0xff] }
 0x91c   : > { %v2843_v33 = vadd.f32 %v11712_v48, %v2842_v52 }
 0x91e   : > { %2846 = vperm.xlu1 %9304, %v2843_v33  }
 0x922   : > { %9306 = vset.pattern.permute.xlu1 %v9446_v40 }
 0x923   : > { %2851 = vperm.xlu1 %9306, %v10821_v62  }
 0x99d   : > { %v2847_v39 = vpop.permute.xlu1 %2846 }
 0x99e   : > { %v2849_v63 = vmul.f32 %v9563_v3, %v2847_v39  ;;  %v11719_v39 = vld [vmem:[#allocation78_spill] sm:$0xff] }
 0x9a2   : > { %v2852_v8 = vpop.permute.xlu1 %2851 }
 0x9a3   : > { %v2854_v52 = vmul.f32 %v9568_v4, %v2852_v8  ;;  %v11721_v8 = vld [vmem:[#allocation61_spill] sm:$0xff] }
 0x9a5   : > { %v2855_v33 = vadd.f32 %v2854_v52, %v2849_v63  ;;  %v11723_v63 = vld [vmem:[#allocation63_spill] sm:$0xff]  ;;  %v11725_v52 = vld [vmem:[#allocation84_spill] sm:$0xff] }
 0x9a7   : > { %v2864_v48 = vadd.f32 %v2862_v55, %v2855_v33  ;;  %v11724_v55 = vld [vmem:[#allocation83_spill] sm:$0xff]  ;;  %v11726_v33 = vld [vmem:[#allocation85_spill] sm:$0xff] }
 0x9a9   : > { %v2865_v40 = vadd.f32 %v9580_v7, %v2864_v48  ;;  %v11714_v48 = vld [vmem:[#allocation73_spill] sm:$0xff] }
 0x9ab   : > { %v2866_v25 = vmax.f32 %v2865_v40, 0.0  ;;  %v11727_v40 = vld [vmem:[#allocation86_spill] sm:$0xff] }
 0x9ad   : > { %v10830_v13 = vand.u32 4294901760, %v2866_v25 }
 0x9af   : > { %v2949_v5 = vsub.f32 %v2866_v25, %v10830_v13  ;;  %v11715_v25 = vld [vmem:[#allocation74_spill] sm:$0xff] }
 0x9b1   : > { %v2950_v26 = vand.u32 4294901760, %v2949_v5 }
 0x9b3   : > { %v2951_v62 = vsub.f32 %v2949_v5, %v2950_v26 }
 0x9b5   : > { %v2952_v57 = vand.u32 4294901760, %v2951_v62  ;;  %v11717_v62 = vld [vmem:[#allocation76_spill] sm:$0xff] }
 0x9b7   : > { %7216 = vmatmul.mubr.f32.vlgmr.msra.gmra.mrb[4].mxu0 %v2952_v57  ;;  %v11716_v57 = vld [vmem:[#allocation75_spill] sm:$0xff] }
 0x9b8   : > { %8625 = vmatpush3.bf16.msra.mxu0 %v9811_v51  ;;  %7250 = vmatprep.mubr.msk.f32.mxu0 %vm9443_vm1, %v11592_v17 }
 0x9b9   : > { %8626 = vmatprep.subr.bf16.mxu0 %v11572_v50 }
 0x9bc   : > { %8628 = vmatpush3.bf16.msra.mxu0 %v9831_v38 }
 0x9bd   : > { %8629 = vmatprep.subr.bf16.mxu0 %v11572_v50 }
 0x9c0   : > { %8631 = vmatpush3.bf16.msra.mxu0 %v9862_v41 }
 0x9c1   : > { %8632 = vmatprep.subr.bf16.mxu0 %v11572_v50 }
 0x9c4   : > { %8634 = vmatpush3.bf16.msra.mxu0 %v9866_v14 }
 0x9c5   : > { %8635 = vmatprep.subr.bf16.mxu0 %v11572_v50 }
 0x9c8   : > { %8637 = vmatpush3.bf16.msra.mxu0 %v9886_v15 }
 0x9c9   : > { %8638 = vmatprep.subr.bf16.mxu0 %v11572_v50 }
 0x9cc   : > { %8640 = vmatpush3.bf16.msra.mxu0 %v9914_v10 }
 0x9cd   : > { %8641 = vmatprep.subr.bf16.mxu0 %v11572_v50 }
 0x9d0   : > { %8643 = vmatpush3.bf16.msra.mxu0 %v9918_v44 }
 0x9d1   : > { %8644 = vmatprep.subr.bf16.mxu0 %v11572_v50 }
 0x9d4   : > { %8646 = vmatpush3.bf16.msra.mxu0 %v9926_v60 }
 0x9d5   : > { %8647 = vmatprep.subr.bf16.mxu0 %v11572_v50 }
 0x9d7   : > { %7251 = vmatmul.mubr.f32.vlgmr.msra.gmra.mrb[4].mxu0 %v10830_v13 }
 0x9d8   : > { %8649 = vmatpush3.bf16.msra.mxu0 %v11682_v45  ;;  %7285 = vmatprep.mubr.msk.f32.mxu0 %vm9443_vm1, %v11592_v17 }
 0x9d9   : > { %8650 = vmatprep.subr.bf16.mxu0 %v11572_v50 }
 0x9dc   : > { %8652 = vmatpush3.bf16.msra.mxu0 %v11714_v48 }
 0x9dd   : > { %8653 = vmatprep.subr.bf16.mxu0 %v11572_v50 }
 0x9e0   : > { %8655 = vmatpush3.bf16.msra.mxu0 %v11715_v25 }
 0x9e1   : > { %8656 = vmatprep.subr.bf16.mxu0 %v11572_v50 }
 0x9e4   : > { %8658 = vmatpush3.bf16.msra.mxu0 %v11716_v57 }
 0x9e5   : > { %8659 = vmatprep.subr.bf16.mxu0 %v11572_v50 }
 0x9e8   : > { %8661 = vmatpush3.bf16.msra.mxu0 %v11717_v62 }
 0x9e9   : > { %8662 = vmatprep.subr.bf16.mxu0 %v11572_v50 }
 0x9ec   : > { %8664 = vmatpush3.bf16.msra.mxu0 %v11718_v0 }
 0x9ed   : > { %8665 = vmatprep.subr.bf16.mxu0 %v11572_v50 }
 0x9f0   : > { %8667 = vmatpush3.bf16.msra.mxu0 %v11719_v39 }
 0x9f1   : > { %8668 = vmatprep.subr.bf16.mxu0 %v11572_v50 }
 0x9f4   : > { %8670 = vmatpush3.bf16.msra.mxu0 %v11720_v19  ;;  %v11730_v19 = vld [vmem:[#allocation67_spill] sm:$0xff] }
 0x9f5   : > { %8671 = vmatprep.subr.bf16.mxu0 %v11572_v50 }
 0x9f7   : > { %7286 = vmatmul.mubr.f32.vlgmr.msra.gmra.mrb[4].mxu0 %v2949_v5  ;;  %v11722_v5 = vld [vmem:[#allocation62_spill] sm:$0xff] }
 0x9f8   : > { %8673 = vmatpush3.bf16.msra.mxu0 %v11690_v58  ;;  %7320 = vmatprep.mubr.msk.f32.mxu0 %vm9443_vm1, %v11592_v17 }
 0x9f9   : > { %8674 = vmatprep.subr.bf16.mxu0 %v11572_v50 }
 0x9fc   : > { %8676 = vmatpush3.bf16.msra.mxu0 %v11691_v27 }
 0x9fd   : > { %8677 = vmatprep.subr.bf16.mxu0 %v11572_v50 }
 0xa00   : > { %8679 = vmatpush3.bf16.msra.mxu0 %v11692_v11 }
 0xa01   : > { %8680 = vmatprep.subr.bf16.mxu0 %v11572_v50 }
 0xa04   : > { %8682 = vmatpush3.bf16.msra.mxu0 %v11721_v8 }
 0xa05   : > { %8683 = vmatprep.subr.bf16.mxu0 %v11572_v50 }
 0xa08   : > { %8685 = vmatpush3.bf16.msra.mxu0 %v11722_v5 }
 0xa09   : > { %8686 = vmatprep.subr.bf16.mxu0 %v11572_v50 }
 0xa0c   : > { %8688 = vmatpush3.bf16.msra.mxu0 %v11723_v63 }
 0xa0d   : > { %8689 = vmatprep.subr.bf16.mxu0 %v11572_v50 }
 0xa10   : > { %8691 = vmatpush3.bf16.msra.mxu0 %v11696_v43 }
 0xa11   : > { %8692 = vmatprep.subr.bf16.mxu0 %v11572_v50 }
 0xa14   : > { %8694 = vmatpush3.bf16.msra.mxu0 %v11697_v46 }
 0xa15   : > { %8695 = vmatprep.subr.bf16.mxu0 %v11572_v50 }
 0xa17   : > { %7321 = vmatmul.mubr.f32.vlgmr.msra.gmra.mrb[4].mxu0 %v2950_v26  ;;  %v11728_v26 = vld [vmem:[#allocation87_spill] sm:$0xff] }
 0xa18   : > { %8697 = vmatpush3.bf16.msra.mxu0 %v11724_v55  ;;  %7355 = vmatprep.mubr.msk.f32.mxu0 %vm9443_vm1, %v11592_v17  ;;  %v11729_v55 = vld [vmem:[#allocation66_spill] sm:$0xff] }
 0xa19   : > { %8698 = vmatprep.subr.bf16.mxu0 %v11572_v50 }
 0xa1c   : > { %8700 = vmatpush3.bf16.msra.mxu0 %v11725_v52  ;;  %v11731_v52 = vld [vmem:[#allocation68_spill] sm:$0xff] }
 0xa1d   : > { %8701 = vmatprep.subr.bf16.mxu0 %v11572_v50 }
 0xa20   : > { %8703 = vmatpush3.bf16.msra.mxu0 %v11726_v33 }
 0xa21   : > { %8704 = vmatprep.subr.bf16.mxu0 %v11572_v50 }
 0xa24   : > { %8706 = vmatpush3.bf16.msra.mxu0 %v11727_v40 }
 0xa25   : > { %8707 = vmatprep.subr.bf16.mxu0 %v11572_v50 }
 0xa28   : > { %8709 = vmatpush3.bf16.msra.mxu0 %v11728_v26 }
 0xa29   : > { %8710 = vmatprep.subr.bf16.mxu0 %v11572_v50 }
 0xa2c   : > { %8712 = vmatpush3.bf16.msra.mxu0 %v11729_v55 }
 0xa2d   : > { %8713 = vmatprep.subr.bf16.mxu0 %v11572_v50 }
 0xa30   : > { %8715 = vmatpush3.bf16.msra.mxu0 %v11730_v19 }
 0xa31   : > { %8716 = vmatprep.subr.bf16.mxu0 %v11572_v50 }
 0xa34   : > { %8718 = vmatpush3.bf16.msra.mxu0 %v11731_v52 }
 0xa35   : > { %8719 = vmatprep.subr.bf16.mxu0 %v11572_v50 }
 0xa37   : > { %7356 = vmatmul.mubr.f32.vlgmr.msra.gmra.mrb[4].mxu0 %v10830_v13 }
 0xa38   : > { %8721 = vmatpush3.bf16.msra.mxu0 %v11690_v58  ;;  %7390 = vmatprep.mubr.msk.f32.mxu0 %vm9443_vm1, %v11592_v17 }
 0xa39   : > { %8722 = vmatprep.subr.bf16.mxu0 %v11572_v50 }
 0xa3c   : > { %8724 = vmatpush3.bf16.msra.mxu0 %v11691_v27 }
 0xa3d   : > { %8725 = vmatprep.subr.bf16.mxu0 %v11572_v50 }
 0xa40   : > { %8727 = vmatpush3.bf16.msra.mxu0 %v11692_v11 }
 0xa41   : > { %8728 = vmatprep.subr.bf16.mxu0 %v11572_v50 }
 0xa44   : > { %8730 = vmatpush3.bf16.msra.mxu0 %v11721_v8 }
 0xa45   : > { %8731 = vmatprep.subr.bf16.mxu0 %v11572_v50 }
 0xa48   : > { %8733 = vmatpush3.bf16.msra.mxu0 %v11722_v5 }
 0xa49   : > { %8734 = vmatprep.subr.bf16.mxu0 %v11572_v50 }
 0xa4c   : > { %8736 = vmatpush3.bf16.msra.mxu0 %v11723_v63 }
 0xa4d   : > { %8737 = vmatprep.subr.bf16.mxu0 %v11572_v50 }
 0xa50   : > { %8739 = vmatpush3.bf16.msra.mxu0 %v11696_v43 }
 0xa51   : > { %8740 = vmatprep.subr.bf16.mxu0 %v11572_v50 }
 0xa54   : > { %8742 = vmatpush3.bf16.msra.mxu0 %v11697_v46 }
 0xa55   : > { %8887 = vmatprep.subr.bf16.mxu0 %v11572_v50 }
 0xa57   : > { %7391 = vmatmul.mubr.f32.vlgmr.msra.gmra.mrb[4].mxu0 %v10830_v13 }
 0xa58   : > { %8889 = vmatpush3.bf16.msra.mxu0 %v11690_v58  ;;  %7635 = vmatprep.mubr.msk.f32.mxu0 %vm9443_vm1, %v11592_v17 }
 0xa59   : > { %8890 = vmatprep.subr.bf16.mxu0 %v11572_v50 }
 0xa5c   : > { %8892 = vmatpush3.bf16.msra.mxu0 %v11691_v27 }
 0xa5d   : > { %8893 = vmatprep.subr.bf16.mxu0 %v11572_v50 }
 0xa60   : > { %8895 = vmatpush3.bf16.msra.mxu0 %v11692_v11 }
 0xa61   : > { %8896 = vmatprep.subr.bf16.mxu0 %v11572_v50 }
 0xa64   : > { %8898 = vmatpush3.bf16.msra.mxu0 %v11721_v8 }
 0xa65   : > { %8899 = vmatprep.subr.bf16.mxu0 %v11572_v50 }
 0xa68   : > { %8901 = vmatpush3.bf16.msra.mxu0 %v11722_v5 }
 0xa69   : > { %8902 = vmatprep.subr.bf16.mxu0 %v11572_v50 }
 0xa6c   : > { %8904 = vmatpush3.bf16.msra.mxu0 %v11723_v63 }
 0xa6d   : > { %8905 = vmatprep.subr.bf16.mxu0 %v11572_v50 }
 0xa70   : > { %8907 = vmatpush3.bf16.msra.mxu0 %v11696_v43 }
 0xa71   : > { %8908 = vmatprep.subr.bf16.mxu0 %v11572_v50 }
 0xa74   : > { %8910 = vmatpush3.bf16.msra.mxu0 %v11697_v46 }
 0xa75   : > { %8911 = vmatprep.subr.bf16.mxu0 %v11572_v50 }
 0xb2a   : > { %v3504_v13 = vpop.f32.mrb[4].mxu0 }
 0xb2b   : > { %v9179_v52 = vadd.f32 %v11706_v56, %v3504_v13  ;;  %v7392_v19 = vpop.f32.mrb[5].mxu0 }
 0xb2c   : > { %v11732_v19 = vld [vmem:[#allocation89_spill] sm:$0xff] }
 0xb2d   : > { %v3508_v55 = vmax.f32 %v9179_v52, 0.0  ;;  %v11736_v52 = vld [vmem:[#allocation93_spill] sm:$0xff] }
 0xb2f   : > { %v10945_v26 = vand.u32 4294901760, %v3508_v55 }
 0xb31   : > { %v3591_v40 = vsub.f32 %v3508_v55, %v10945_v26  ;;  %v11735_v55 = vld [vmem:[#allocation92_spill] sm:$0xff] }
 0xb33   : > { %v3592_v33 = vand.u32 4294901760, %v3591_v40 }
 0xb35   : > { %v3593_v63 = vsub.f32 %v3591_v40, %v3592_v33 }
 0xb37   : > { %v3594_v5 = vand.u32 4294901760, %v3593_v63  ;;  %v11734_v63 = vld [vmem:[#allocation91_spill] sm:$0xff] }
 0xb39   : > { %7426 = vmatmul.mubr.f32.vlgmr.msra.gmra.mrb[4].mxu1 %v3594_v5  ;;  %v11733_v5 = vld [vmem:[#allocation90_spill] sm:$0xff] }
 0xb3a   : > { %8769 = vmatpush3.bf16.msra.mxu1 %v10336_v12  ;;  %7460 = vmatprep.mubr.msk.f32.mxu1 %vm9443_vm1, %v11592_v17 }
 0xb3b   : > { %8770 = vmatprep.subr.bf16.mxu1 %v11572_v50 }
 0xb3e   : > { %8772 = vmatpush3.bf16.msra.mxu1 %v10359_v28 }
 0xb3f   : > { %8773 = vmatprep.subr.bf16.mxu1 %v11572_v50 }
 0xb42   : > { %8775 = vmatpush3.bf16.msra.mxu1 %v10373_v18 }
 0xb43   : > { %8776 = vmatprep.subr.bf16.mxu1 %v11572_v50 }
 0xb46   : > { %8778 = vmatpush3.bf16.msra.mxu1 %v10384_v29 }
 0xb47   : > { %8779 = vmatprep.subr.bf16.mxu1 %v11572_v50 }
 0xb4a   : > { %8781 = vmatpush3.bf16.msra.mxu1 %v10388_v31 }
 0xb4b   : > { %8782 = vmatprep.subr.bf16.mxu1 %v11572_v50 }
 0xb4e   : > { %8784 = vmatpush3.bf16.msra.mxu1 %v10233_v61 }
 0xb4f   : > { %8785 = vmatprep.subr.bf16.mxu1 %v11572_v50 }
 0xb52   : > { %8787 = vmatpush3.bf16.msra.mxu1 %v10255_v16 }
 0xb53   : > { %8788 = vmatprep.subr.bf16.mxu1 %v11572_v50 }
 0xb56   : > { %8790 = vmatpush3.bf16.msra.mxu1 %v10257_v47 }
 0xb57   : > { %8791 = vmatprep.subr.bf16.mxu1 %v11572_v50 }
 0xb59   : > { %7461 = vmatmul.mubr.f32.vlgmr.msra.gmra.mrb[4].mxu1 %v10945_v26 }
 0xb5a   : > { %8793 = vmatpush3.bf16.msra.mxu1 %v10400_v32  ;;  %7495 = vmatprep.mubr.msk.f32.mxu1 %vm9443_vm1, %v11592_v17 }
 0xb5b   : > { %8794 = vmatprep.subr.bf16.mxu1 %v11572_v50 }
 0xb5e   : > { %8796 = vmatpush3.bf16.msra.mxu1 %v10407_v24 }
 0xb5f   : > { %8797 = vmatprep.subr.bf16.mxu1 %v11572_v50 }
 0xb62   : > { %8799 = vmatpush3.bf16.msra.mxu1 %v10415_v49 }
 0xb63   : > { %8800 = vmatprep.subr.bf16.mxu1 %v11572_v50 }
 0xb66   : > { %8802 = vmatpush3.bf16.msra.mxu1 %v10421_v2 }
 0xb67   : > { %8803 = vmatprep.subr.bf16.mxu1 %v11572_v50 }
 0xb6a   : > { %8805 = vmatpush3.bf16.msra.mxu1 %v10427_v53 }
 0xb6b   : > { %8806 = vmatprep.subr.bf16.mxu1 %v11572_v50 }
 0xb6e   : > { %8808 = vmatpush3.bf16.msra.mxu1 %v10261_v35 }
 0xb6f   : > { %8809 = vmatprep.subr.bf16.mxu1 %v11572_v50 }
 0xb72   : > { %8811 = vmatpush3.bf16.msra.mxu1 %v10265_v23 }
 0xb73   : > { %8812 = vmatprep.subr.bf16.mxu1 %v11572_v50 }
 0xb76   : > { %8814 = vmatpush3.bf16.msra.mxu1 %v10269_v1 }
 0xb77   : > { %8815 = vmatprep.subr.bf16.mxu1 %v11572_v50 }
 0xb79   : > { %7496 = vmatmul.mubr.f32.vlgmr.msra.gmra.mrb[4].mxu1 %v3591_v40  ;;  %v11738_v40 = vld [vmem:[#allocation95_spill] sm:$0xff] }
 0xb7a   : > { %8817 = vmatpush3.bf16.msra.mxu1 %v10012_v36  ;;  %7530 = vmatprep.mubr.msk.f32.mxu1 %vm9443_vm1, %v11592_v17 }
 0xb7b   : > { %8818 = vmatprep.subr.bf16.mxu1 %v11572_v50 }
 0xb7e   : > { %8820 = vmatpush3.bf16.msra.mxu1 %v10019_v59 }
 0xb7f   : > { %8821 = vmatprep.subr.bf16.mxu1 %v11572_v50 }
 0xb82   : > { %8823 = vmatpush3.bf16.msra.mxu1 %v10031_v21 }
 0xb83   : > { %8824 = vmatprep.subr.bf16.mxu1 %v11572_v50 }
 0xb86   : > { %8826 = vmatpush3.bf16.msra.mxu1 %v10043_v34 }
 0xb87   : > { %8827 = vmatprep.subr.bf16.mxu1 %v11572_v50 }
 0xb8a   : > { %8829 = vmatpush3.bf16.msra.mxu1 %v10055_v22 }
 0xb8b   : > { %8830 = vmatprep.subr.bf16.mxu1 %v11572_v50 }
 0xb8e   : > { %8832 = vmatpush3.bf16.msra.mxu1 %v10195_v42 }
 0xb8f   : > { %8833 = vmatprep.subr.bf16.mxu1 %v11572_v50 }
 0xb92   : > { %8835 = vmatpush3.bf16.msra.mxu1 %v10201_v9 }
 0xb93   : > { %8836 = vmatprep.subr.bf16.mxu1 %v11572_v50 }
 0xb96   : > { %8838 = vmatpush3.bf16.msra.mxu1 %v10207_v20 }
 0xb97   : > { %8839 = vmatprep.subr.bf16.mxu1 %v11572_v50 }
 0xb99   : > { %7531 = vmatmul.mubr.f32.vlgmr.msra.gmra.mrb[4].mxu1 %v3592_v33  ;;  %v11737_v33 = vld [vmem:[#allocation94_spill] sm:$0xff] }
 0xb9a   : > { %8841 = vmatpush3.bf16.msra.mxu1 %v10460_v30  ;;  %7565 = vmatprep.mubr.msk.f32.mxu1 %vm9443_vm1, %v11592_v17  ;;  %v11741_v30 = vld [vmem:[#allocation72_spill] sm:$0xff] }
 0xb9b   : > { %8842 = vmatprep.subr.bf16.mxu1 %v11572_v50 }
 0xb9e   : > { %8844 = vmatpush3.bf16.msra.mxu1 %v11732_v19 }
 0xb9f   : > { %8845 = vmatprep.subr.bf16.mxu1 %v11572_v50 }
 0xba2   : > { %8847 = vmatpush3.bf16.msra.mxu1 %v11733_v5  ;;  %v11740_v5 = vld [vmem:[#allocation57_spill] sm:$0xff] }
 0xba3   : > { %8848 = vmatprep.subr.bf16.mxu1 %v11572_v50 }
 0xba6   : > { %8850 = vmatpush3.bf16.msra.mxu1 %v11734_v63  ;;  %v9447_v63 = vmov 3  }
 0xba7   : > { %8851 = vmatprep.subr.bf16.mxu1 %v11572_v50  ;;  %9308 = vset.pattern.permute.xlu1 %v9447_v63 }
 0xbaa   : > { %8853 = vmatpush3.bf16.msra.mxu1 %v11735_v55 }
 0xbab   : > { %8854 = vmatprep.subr.bf16.mxu1 %v11572_v50 }
 0xbae   : > { %8856 = vmatpush3.bf16.msra.mxu1 %v11736_v52  ;;  %v11739_v52 = vld [vmem:[#allocation52_spill] sm:$0xff] }
 0xbaf   : > { %8857 = vmatprep.subr.bf16.mxu1 %v11572_v50 }
 0xbb2   : > { %8859 = vmatpush3.bf16.msra.mxu1 %v11737_v33 }
 0xbb3   : > { %8860 = vmatprep.subr.bf16.mxu1 %v11572_v50 }
 0xbb6   : > { %8862 = vmatpush3.bf16.msra.mxu1 %v11738_v40 }
 0xbb7   : > { %8863 = vmatprep.subr.bf16.mxu1 %v11572_v50 }
 0xbb9   : > { %7566 = vmatmul.mubr.f32.vlgmr.msra.gmra.mrb[4].mxu1 %v10945_v26 }
 0xbba   : > { %8865 = vmatpush3.bf16.msra.mxu1 %v10012_v36  ;;  %7600 = vmatprep.mubr.msk.f32.mxu1 %vm9443_vm1, %v11592_v17 }
 0xbbb   : > { %8866 = vmatprep.subr.bf16.mxu1 %v11572_v50 }
 0xbbe   : > { %8868 = vmatpush3.bf16.msra.mxu1 %v10019_v59 }
 0xbbf   : > { %8869 = vmatprep.subr.bf16.mxu1 %v11572_v50 }
 0xbc2   : > { %8871 = vmatpush3.bf16.msra.mxu1 %v10031_v21 }
 0xbc3   : > { %8872 = vmatprep.subr.bf16.mxu1 %v11572_v50 }
 0xbc6   : > { %8874 = vmatpush3.bf16.msra.mxu1 %v10043_v34 }
 0xbc7   : > { %8875 = vmatprep.subr.bf16.mxu1 %v11572_v50 }
 0xbca   : > { %8877 = vmatpush3.bf16.msra.mxu1 %v10055_v22 }
 0xbcb   : > { %8878 = vmatprep.subr.bf16.mxu1 %v11572_v50 }
 0xbce   : > { %8880 = vmatpush3.bf16.msra.mxu1 %v10195_v42 }
 0xbcf   : > { %8881 = vmatprep.subr.bf16.mxu1 %v11572_v50 }
 0xbd2   : > { %8883 = vmatpush3.bf16.msra.mxu1 %v10201_v9 }
 0xbd3   : > { %8884 = vmatprep.subr.bf16.mxu1 %v11572_v50 }
 0xbd6   : > { %8886 = vmatpush3.bf16.msra.mxu1 %v10207_v20 }
 0xbd7   : > { %9031 = vmatprep.subr.bf16.mxu1 %v11572_v50 }
 0xbd9   : > { %7601 = vmatmul.mubr.f32.vlgmr.msra.gmra.mrb[4].mxu1 %v10945_v26 }
 0xbda   : > { %9033 = vmatpush3.bf16.msra.mxu1 %v10012_v36  ;;  %7845 = vmatprep.mubr.msk.f32.mxu1 %vm9443_vm1, %v11592_v17 }
 0xbdb   : > { %9034 = vmatprep.subr.bf16.mxu1 %v11572_v50 }
 0xbde   : > { %9036 = vmatpush3.bf16.msra.mxu1 %v10019_v59 }
 0xbdf   : > { %9037 = vmatprep.subr.bf16.mxu1 %v11572_v50 }
 0xbe2   : > { %9039 = vmatpush3.bf16.msra.mxu1 %v10031_v21  ;;  %v11745_v21 = vld [vmem:[#allocation58_spill] sm:$0xff] }
 0xbe3   : > { %9040 = vmatprep.subr.bf16.mxu1 %v11572_v50 }
 0xbe6   : > { %9042 = vmatpush3.bf16.msra.mxu1 %v10043_v34 }
 0xbe7   : > { %9043 = vmatprep.subr.bf16.mxu1 %v11572_v50 }
 0xbea   : > { %9045 = vmatpush3.bf16.msra.mxu1 %v10055_v22 }
 0xbeb   : > { %9046 = vmatprep.subr.bf16.mxu1 %v11572_v50 }
 0xbee   : > { %9048 = vmatpush3.bf16.msra.mxu1 %v10195_v42 }
 0xbef   : > { %9049 = vmatprep.subr.bf16.mxu1 %v11572_v50 }
 0xbf2   : > { %9051 = vmatpush3.bf16.msra.mxu1 %v10201_v9  ;;  %v11742_v9 = vld [vmem:[#allocation96_spill] sm:$0xff] }
 0xbf3   : > { %9052 = vmatprep.subr.bf16.mxu1 %v11572_v50  ;;  %v4155_v42 = vsub.f32 %v11742_v9, %v11741_v30 }
 0xbf6   : > { %9054 = vmatpush3.bf16.msra.mxu1 %v10207_v20  ;;  %v11743_v20 = vld [vmem:[#allocation53_spill] sm:$0xff] }
 0xbf7   : > { %9055 = vmatprep.subr.bf16.mxu1 %v11572_v50 }
 0xcac   : > { %v4146_v26 = vpop.f32.mrb[4].mxu1 }
 0xcad   : > { %v9180_v13 = vadd.f32 %v11674_v54, %v4146_v26  ;;  %v7602_v40 = vpop.f32.mrb[5].mxu1 }
 0xcae   : > { %v11746_v40 = vld [vmem:[#allocation56_spill] sm:$0xff] }
 0xcaf   : > { %v4150_v33 = vmax.f32 %v9180_v13, 0.0 }
 0xcb1   : > { %v4151_v55 = vmul.f32 %v11739_v52, %v4150_v33 }
 0xcb3   : > { %4152 = vadd.xlane.f32.xlu1 %v4151_v55  ;;  %v4171_v55 = vstv %s170_s9 }
 0xcc4   : > { %4166 = vperm.xlu1 %9308, %v11740_v5   ;;  %v4172_v5 = vmul.f32 %v4171_v55, %v9575_v6 }
 0xd40   : > { %v4153_v19 = vpop.xlane.xlu1 %4152 }
 0xd41   : > { %v11065_v22 = vadd.f32 %v11743_v20, %v4153_v19  ;;  %v4177_v19 = vrot.slane %v4172_v5, %v9966_v37  ;;  %v11749_v37 = vld [vmem:[#allocation63_spill] sm:$0xff] }
 0xd43   : > { %11744 = vst [vmem:[#allocation59_spill] sm:$0xff] %v11065_v22  ;;  %v4156_v34 = vadd.f32 %v4155_v42, %v11065_v22 }
 0xd44   : > { %v4167_v63 = vpop.permute.xlu1 %4166 }
 0xd45   : > { %v4157_v26 = vmul.f32 %v4156_v34, %v11745_v21  ;;  %v4169_v33 = vmul.f32 %v9568_v4, %v4167_v63  ;;  %v11777_v63 = vld [vmem:[#allocation58_spill] sm:$0xff] }
 0xd47   : > { %v4158_v13 = vadd.f32 %v11746_v40, %v4157_v26 }
 0xd49   : > { %4161 = vperm.xlu0 %9307, %v4158_v13  }
 0xdc8   : > { %v4162_v52 = vpop.permute.xlu0 %4161 }
 0xdc9   : > { %v4164_v9 = vmul.f32 %v9563_v3, %v4162_v52  ;;  %v11776_v52 = vld [vmem:[#allocation53_spill] sm:$0xff] }
 0xdcb   : > { %v4170_v20 = vadd.f32 %v4169_v33, %v4164_v9 }
 0xdcd   : > { %v4179_v42 = vadd.f32 %v4177_v19, %v4170_v20  ;;  %v11778_v19 = vld [vmem:[#allocation56_spill] sm:$0xff] }
 0xdcf   : > { %v4180_v34 = vadd.f32 %v9580_v7, %v4179_v42  ;;  %v5478_v42 = vstv %s5477_s10 }
 0xdd1   : > { %v4181_v21 = vmax.f32 %v4180_v34, 0.0  ;;  %v11779_v34 = vld [vmem:[#allocation54_spill] sm:$0xff] }
 0xdd2   : > { %vm5479_vm2 = vcmp.eq.s32.totalorder %v11779_v34, %v5478_v42 }
 0xdd3   : > { %v11076_v26 = vand.u32 4294901760, %v4181_v21 }
 0xdd5   : > { %v4264_v13 = vsub.f32 %v4181_v21, %v11076_v26  ;;  %v11757_v21 = vld [vmem:[#allocation68_spill] sm:$0xff] }
 0xdd7   : > { %v4265_v40 = vand.u32 4294901760, %v4264_v13 }
 0xdd9   : > { %v4266_v22 = vsub.f32 %v4264_v13, %v4265_v40 }
 0xddb   : > { %v4267_v30 = vand.u32 4294901760, %v4266_v22  ;;  %v11756_v22 = vld [vmem:[#allocation67_spill] sm:$0xff] }
 0xddd   : > { %7636 = vmatmul.mubr.f32.vlgmr.msra.gmra.mrb[6].mxu0 %v4267_v30 }
 0xdde   : > { %8913 = vmatpush3.bf16.msra.mxu0 %v9811_v51  ;;  %7670 = vmatprep.mubr.msk.f32.mxu0 %vm9443_vm1, %v11592_v17  ;;  %v11752_v51 = vld [vmem:[#allocation85_spill] sm:$0xff] }
 0xddf   : > { %8914 = vmatprep.subr.bf16.mxu0 %v11572_v50 }
 0xde2   : > { %8916 = vmatpush3.bf16.msra.mxu0 %v9831_v38  ;;  %v11750_v38 = vld [vmem:[#allocation83_spill] sm:$0xff] }
 0xde3   : > { %8917 = vmatprep.subr.bf16.mxu0 %v11572_v50 }
 0xde6   : > { %8919 = vmatpush3.bf16.msra.mxu0 %v9862_v41  ;;  %v11751_v41 = vld [vmem:[#allocation84_spill] sm:$0xff] }
 0xde7   : > { %8920 = vmatprep.subr.bf16.mxu0 %v11572_v50 }
 0xdea   : > { %8922 = vmatpush3.bf16.msra.mxu0 %v9866_v14  ;;  %v11747_v14 = vld [vmem:[#allocation79_spill] sm:$0xff] }
 0xdeb   : > { %8923 = vmatprep.subr.bf16.mxu0 %v11572_v50 }
 0xdee   : > { %8925 = vmatpush3.bf16.msra.mxu0 %v9886_v15  ;;  %v11748_v15 = vld [vmem:[#allocation62_spill] sm:$0xff] }
 0xdef   : > { %8926 = vmatprep.subr.bf16.mxu0 %v11572_v50 }
 0xdf2   : > { %8928 = vmatpush3.bf16.msra.mxu0 %v9914_v10  ;;  %v11754_v10 = vld [vmem:[#allocation87_spill] sm:$0xff] }
 0xdf3   : > { %8929 = vmatprep.subr.bf16.mxu0 %v11572_v50 }
 0xdf6   : > { %8931 = vmatpush3.bf16.msra.mxu0 %v9918_v44  ;;  %v11753_v44 = vld [vmem:[#allocation86_spill] sm:$0xff] }
 0xdf7   : > { %8932 = vmatprep.subr.bf16.mxu0 %v11572_v50 }
 0xdfa   : > { %8934 = vmatpush3.bf16.msra.mxu0 %v9926_v60  ;;  %v11755_v60 = vld [vmem:[#allocation66_spill] sm:$0xff] }
 0xdfb   : > { %8935 = vmatprep.subr.bf16.mxu0 %v11572_v50 }
 0xdfd   : > { %7671 = vmatmul.mubr.f32.vlgmr.msra.gmra.mrb[6].mxu0 %v11076_v26 }
 0xdfe   : > { %8937 = vmatpush3.bf16.msra.mxu0 %v11682_v45  ;;  %7705 = vmatprep.mubr.msk.f32.mxu0 %vm9443_vm1, %v11592_v17 }
 0xdff   : > { %8938 = vmatprep.subr.bf16.mxu0 %v11572_v50 }
 0xe02   : > { %8940 = vmatpush3.bf16.msra.mxu0 %v11714_v48 }
 0xe03   : > { %8941 = vmatprep.subr.bf16.mxu0 %v11572_v50 }
 0xe06   : > { %8943 = vmatpush3.bf16.msra.mxu0 %v11715_v25 }
 0xe07   : > { %8944 = vmatprep.subr.bf16.mxu0 %v11572_v50 }
 0xe0a   : > { %8946 = vmatpush3.bf16.msra.mxu0 %v11716_v57  ;;  %v11774_v57 = vld [vmem:[#allocation59_spill] sm:$0xff] }
 0xe0b   : > { %8947 = vmatprep.subr.bf16.mxu0 %v11572_v50 }
 0xe0e   : > { %8949 = vmatpush3.bf16.msra.mxu0 %v11717_v62 }
 0xe0f   : > { %8950 = vmatprep.subr.bf16.mxu0 %v11572_v50 }
 0xe12   : > { %8952 = vmatpush3.bf16.msra.mxu0 %v11718_v0 }
 0xe13   : > { %8953 = vmatprep.subr.bf16.mxu0 %v11572_v50 }
 0xe16   : > { %8955 = vmatpush3.bf16.msra.mxu0 %v11719_v39 }
 0xe17   : > { %8956 = vmatprep.subr.bf16.mxu0 %v11572_v50 }
 0xe1a   : > { %8958 = vmatpush3.bf16.msra.mxu0 %v11747_v14 }
 0xe1b   : > { %8959 = vmatprep.subr.bf16.mxu0 %v11572_v50 }
 0xe1d   : > { %7706 = vmatmul.mubr.f32.vlgmr.msra.gmra.mrb[6].mxu0 %v4264_v13  ;;  %v11780_v13 = vld [vmem:[#allocation55_spill] sm:$0xff] }
 0xe1e   : > { %8961 = vmatpush3.bf16.msra.mxu0 %v11690_v58  ;;  %7740 = vmatprep.mubr.msk.f32.mxu0 %vm9443_vm1, %v11592_v17 }
 0xe1f   : > { %8962 = vmatprep.subr.bf16.mxu0 %v11572_v50 }
 0xe22   : > { %8964 = vmatpush3.bf16.msra.mxu0 %v11691_v27 }
 0xe23   : > { %8965 = vmatprep.subr.bf16.mxu0 %v11572_v50 }
 0xe26   : > { %8967 = vmatpush3.bf16.msra.mxu0 %v11692_v11 }
 0xe27   : > { %8968 = vmatprep.subr.bf16.mxu0 %v11572_v50 }
 0xe2a   : > { %8970 = vmatpush3.bf16.msra.mxu0 %v11721_v8 }
 0xe2b   : > { %8971 = vmatprep.subr.bf16.mxu0 %v11572_v50 }
 0xe2e   : > { %8973 = vmatpush3.bf16.msra.mxu0 %v11748_v15 }
 0xe2f   : > { %8974 = vmatprep.subr.bf16.mxu0 %v11572_v50 }
 0xe32   : > { %8976 = vmatpush3.bf16.msra.mxu0 %v11749_v37 }
 0xe33   : > { %8977 = vmatprep.subr.bf16.mxu0 %v11572_v50 }
 0xe36   : > { %8979 = vmatpush3.bf16.msra.mxu0 %v11696_v43 }
 0xe37   : > { %8980 = vmatprep.subr.bf16.mxu0 %v11572_v50 }
 0xe3a   : > { %8982 = vmatpush3.bf16.msra.mxu0 %v11697_v46 }
 0xe3b   : > { %8983 = vmatprep.subr.bf16.mxu0 %v11572_v50 }
 0xe3d   : > { %7741 = vmatmul.mubr.f32.vlgmr.msra.gmra.mrb[6].mxu0 %v4265_v40 }
 0xe3e   : > { %8985 = vmatpush3.bf16.msra.mxu0 %v11750_v38  ;;  %7775 = vmatprep.mubr.msk.f32.mxu0 %vm9443_vm1, %v11592_v17 }
 0xe3f   : > { %8986 = vmatprep.subr.bf16.mxu0 %v11572_v50 }
 0xe42   : > { %8988 = vmatpush3.bf16.msra.mxu0 %v11751_v41 }
 0xe43   : > { %8989 = vmatprep.subr.bf16.mxu0 %v11572_v50 }
 0xe46   : > { %8991 = vmatpush3.bf16.msra.mxu0 %v11752_v51 }
 0xe47   : > { %8992 = vmatprep.subr.bf16.mxu0 %v11572_v50 }
 0xe4a   : > { %8994 = vmatpush3.bf16.msra.mxu0 %v11753_v44 }
 0xe4b   : > { %8995 = vmatprep.subr.bf16.mxu0 %v11572_v50 }
 0xe4e   : > { %8997 = vmatpush3.bf16.msra.mxu0 %v11754_v10 }
 0xe4f   : > { %8998 = vmatprep.subr.bf16.mxu0 %v11572_v50 }
 0xe52   : > { %9000 = vmatpush3.bf16.msra.mxu0 %v11755_v60 }
 0xe53   : > { %9001 = vmatprep.subr.bf16.mxu0 %v11572_v50 }
 0xe56   : > { %9003 = vmatpush3.bf16.msra.mxu0 %v11756_v22 }
 0xe57   : > { %9004 = vmatprep.subr.bf16.mxu0 %v11572_v50 }
 0xe5a   : > { %9006 = vmatpush3.bf16.msra.mxu0 %v11757_v21 }
 0xe5b   : > { %9007 = vmatprep.subr.bf16.mxu0 %v11572_v50 }
 0xe5d   : > { %7776 = vmatmul.mubr.f32.vlgmr.msra.gmra.mrb[6].mxu0 %v11076_v26 }
 0xe5e   : > { %9009 = vmatpush3.bf16.msra.mxu0 %v11690_v58  ;;  %7810 = vmatprep.mubr.msk.f32.mxu0 %vm9443_vm1, %v11592_v17 }
 0xe5f   : > { %9010 = vmatprep.subr.bf16.mxu0 %v11572_v50 }
 0xe62   : > { %9012 = vmatpush3.bf16.msra.mxu0 %v11691_v27 }
 0xe63   : > { %9013 = vmatprep.subr.bf16.mxu0 %v11572_v50 }
 0xe66   : > { %9015 = vmatpush3.bf16.msra.mxu0 %v11692_v11 }
 0xe67   : > { %9016 = vmatprep.subr.bf16.mxu0 %v11572_v50 }
 0xe6a   : > { %9018 = vmatpush3.bf16.msra.mxu0 %v11721_v8  ;;  %v11775_v8 = vld [vmem:[#allocation96_spill] sm:$0xff] }
 0xe6b   : > { %9019 = vmatprep.subr.bf16.mxu0 %v11572_v50 }
 0xe6e   : > { %9021 = vmatpush3.bf16.msra.mxu0 %v11748_v15 }
 0xe6f   : > { %9022 = vmatprep.subr.bf16.mxu0 %v11572_v50 }
 0xe72   : > { %9024 = vmatpush3.bf16.msra.mxu0 %v11749_v37 }
 0xe73   : > { %9025 = vmatprep.subr.bf16.mxu0 %v11572_v50 }
 0xe76   : > { %9027 = vmatpush3.bf16.msra.mxu0 %v11696_v43  ;;  %v11773_v43 = vld [vmem:[#allocation72_spill] sm:$0xff] }
 0xe77   : > { %9028 = vmatprep.subr.bf16.mxu0 %v11572_v50  ;;  %v5470_v62 = vadd.f32 %v11774_v57, %v11773_v43 }
 0xe79   : > { %v5471_v0 = vmul.f32 3.0, %v5470_v62 }
 0xe7a   : > { %9030 = vmatpush3.bf16.msra.mxu0 %v11697_v46 }
 0xe7d   : > { %7811 = vmatmul.mubr.f32.vlgmr.msra.gmra.mrb[6].mxu0 %v11076_v26 }
 0xf50   : > { %v4819_v20 = vpop.f32.mrb[6].mxu0 }
 0xf51   : > { %v9181_v9 = vadd.f32 %v11706_v56, %v4819_v20  ;;  %v7812_v30 = vpop.f32.mrb[7].mxu0 }
 0xf53   : > { %v4823_v45 = vmax.f32 %v9181_v9, 0.0 }
 0xf55   : > { %v11172_v58 = vand.u32 4294901760, %v4823_v45 }
 0xf57   : > { %v4906_v27 = vsub.f32 %v4823_v45, %v11172_v58 }
 0xf59   : > { %v4907_v11 = vand.u32 4294901760, %v4906_v27 }
 0xf5b   : > { %v4908_v48 = vsub.f32 %v4906_v27, %v4907_v11 }
 0xf5d   : > { %v4909_v25 = vand.u32 4294901760, %v4908_v48 }
 0xf5f   : > { %7846 = vmatmul.mubr.f32.vlgmr.msra.gmra.mrb[6].mxu1 %v4909_v25 }
 0xf60   : > { %9057 = vmatpush3.bf16.msra.mxu1 %v10336_v12  ;;  %7880 = vmatprep.mubr.msk.f32.mxu1 %vm9443_vm1, %v11592_v17  ;;  %v11760_v12 = vld [vmem:[#allocation82_spill] sm:$0xff] }
 0xf61   : > { %9058 = vmatprep.subr.bf16.mxu1 %v11572_v50 }
 0xf64   : > { %9060 = vmatpush3.bf16.msra.mxu1 %v10359_v28  ;;  %v11758_v28 = vld [vmem:[#allocation80_spill] sm:$0xff] }
 0xf65   : > { %9061 = vmatprep.subr.bf16.mxu1 %v11572_v50 }
 0xf68   : > { %9063 = vmatpush3.bf16.msra.mxu1 %v10373_v18  ;;  %v11766_v18 = vld [vmem:[#allocation90_spill] sm:$0xff] }
 0xf69   : > { %9064 = vmatprep.subr.bf16.mxu1 %v11572_v50 }
 0xf6c   : > { %9066 = vmatpush3.bf16.msra.mxu1 %v10384_v29  ;;  %v11767_v29 = vld [vmem:[#allocation91_spill] sm:$0xff] }
 0xf6d   : > { %9067 = vmatprep.subr.bf16.mxu1 %v11572_v50 }
 0xf70   : > { %9069 = vmatpush3.bf16.msra.mxu1 %v10388_v31  ;;  %v11768_v31 = vld [vmem:[#allocation92_spill] sm:$0xff] }
 0xf71   : > { %9070 = vmatprep.subr.bf16.mxu1 %v11572_v50 }
 0xf74   : > { %9072 = vmatpush3.bf16.msra.mxu1 %v10233_v61  ;;  %v11759_v61 = vld [vmem:[#allocation81_spill] sm:$0xff] }
 0xf75   : > { %9073 = vmatprep.subr.bf16.mxu1 %v11572_v50 }
 0xf78   : > { %9075 = vmatpush3.bf16.msra.mxu1 %v10255_v16  ;;  %v11763_v16 = vld [vmem:[#allocation71_spill] sm:$0xff] }
 0xf79   : > { %9076 = vmatprep.subr.bf16.mxu1 %v11572_v50 }
 0xf7c   : > { %9078 = vmatpush3.bf16.msra.mxu1 %v10257_v47  ;;  %v11761_v47 = vld [vmem:[#allocation69_spill] sm:$0xff] }
 0xf7d   : > { %9079 = vmatprep.subr.bf16.mxu1 %v11572_v50 }
 0xf7f   : > { %7881 = vmatmul.mubr.f32.vlgmr.msra.gmra.mrb[6].mxu1 %v11172_v58 }
 0xf80   : > { %9081 = vmatpush3.bf16.msra.mxu1 %v10400_v32  ;;  %7915 = vmatprep.mubr.msk.f32.mxu1 %vm9443_vm1, %v11592_v17  ;;  %v11769_v32 = vld [vmem:[#allocation93_spill] sm:$0xff] }
 0xf81   : > { %9082 = vmatprep.subr.bf16.mxu1 %v11572_v50 }
 0xf84   : > { %9084 = vmatpush3.bf16.msra.mxu1 %v10407_v24  ;;  %v11770_v24 = vld [vmem:[#allocation94_spill] sm:$0xff] }
 0xf85   : > { %9085 = vmatprep.subr.bf16.mxu1 %v11572_v50 }
 0xf88   : > { %9087 = vmatpush3.bf16.msra.mxu1 %v10415_v49  ;;  %v11771_v49 = vld [vmem:[#allocation95_spill] sm:$0xff] }
 0xf89   : > { %9088 = vmatprep.subr.bf16.mxu1 %v11572_v50 }
 0xf8c   : > { %9090 = vmatpush3.bf16.msra.mxu1 %v10421_v2 }
 0xf8d   : > { %9091 = vmatprep.subr.bf16.mxu1 %v11572_v50 }
 0xf90   : > { %9093 = vmatpush3.bf16.msra.mxu1 %v10427_v53  ;;  %v11772_v53 = vld [vmem:[#allocation52_spill] sm:$0xff] }
 0xf91   : > { %9094 = vmatprep.subr.bf16.mxu1 %v11572_v50 }
 0xf94   : > { %9096 = vmatpush3.bf16.msra.mxu1 %v10261_v35  ;;  %v11764_v35 = vld [vmem:[#allocation88_spill] sm:$0xff] }
 0xf95   : > { %9097 = vmatprep.subr.bf16.mxu1 %v11572_v50 }
 0xf98   : > { %9099 = vmatpush3.bf16.msra.mxu1 %v10265_v23  ;;  %v11765_v23 = vld [vmem:[#allocation89_spill] sm:$0xff] }
 0xf99   : > { %9100 = vmatprep.subr.bf16.mxu1 %v11572_v50 }
 0xf9c   : > { %9102 = vmatpush3.bf16.msra.mxu1 %v10269_v1  ;;  %v11762_v1 = vld [vmem:[#allocation70_spill] sm:$0xff] }
 0xf9d   : > { %9103 = vmatprep.subr.bf16.mxu1 %v11572_v50 }
 0xf9f   : > { %7916 = vmatmul.mubr.f32.vlgmr.msra.gmra.mrb[6].mxu1 %v4906_v27 }
 0xfa0   : > { %9105 = vmatpush3.bf16.msra.mxu1 %v10012_v36  ;;  %7950 = vmatprep.mubr.msk.f32.mxu1 %vm9443_vm1, %v11592_v17 }
 0xfa1   : > { %9106 = vmatprep.subr.bf16.mxu1 %v11572_v50 }
 0xfa4   : > { %9108 = vmatpush3.bf16.msra.mxu1 %v10019_v59 }
 0xfa5   : > { %9109 = vmatprep.subr.bf16.mxu1 %v11572_v50 }
 0xfa8   : > { %9111 = vmatpush3.bf16.msra.mxu1 %v11758_v28 }
 0xfa9   : > { %9112 = vmatprep.subr.bf16.mxu1 %v11572_v50 }
 0xfac   : > { %9114 = vmatpush3.bf16.msra.mxu1 %v11759_v61 }
 0xfad   : > { %9115 = vmatprep.subr.bf16.mxu1 %v11572_v50 }
 0xfb0   : > { %9117 = vmatpush3.bf16.msra.mxu1 %v11760_v12 }
 0xfb1   : > { %9118 = vmatprep.subr.bf16.mxu1 %v11572_v50 }
 0xfb4   : > { %9120 = vmatpush3.bf16.msra.mxu1 %v11761_v47 }
 0xfb5   : > { %9121 = vmatprep.subr.bf16.mxu1 %v11572_v50 }
 0xfb8   : > { %9123 = vmatpush3.bf16.msra.mxu1 %v11762_v1 }
 0xfb9   : > { %9124 = vmatprep.subr.bf16.mxu1 %v11572_v50 }
 0xfbc   : > { %9126 = vmatpush3.bf16.msra.mxu1 %v11763_v16 }
 0xfbd   : > { %9127 = vmatprep.subr.bf16.mxu1 %v11572_v50 }
 0xfbf   : > { %7951 = vmatmul.mubr.f32.vlgmr.msra.gmra.mrb[6].mxu1 %v4907_v11 }
 0xfc0   : > { %9129 = vmatpush3.bf16.msra.mxu1 %v11764_v35  ;;  %7985 = vmatprep.mubr.msk.f32.mxu1 %vm9443_vm1, %v11592_v17 }
 0xfc1   : > { %9130 = vmatprep.subr.bf16.mxu1 %v11572_v50 }
 0xfc4   : > { %9132 = vmatpush3.bf16.msra.mxu1 %v11765_v23 }
 0xfc5   : > { %9133 = vmatprep.subr.bf16.mxu1 %v11572_v50 }
 0xfc8   : > { %9135 = vmatpush3.bf16.msra.mxu1 %v11766_v18 }
 0xfc9   : > { %9136 = vmatprep.subr.bf16.mxu1 %v11572_v50 }
 0xfcc   : > { %9138 = vmatpush3.bf16.msra.mxu1 %v11767_v29 }
 0xfcd   : > { %9139 = vmatprep.subr.bf16.mxu1 %v11572_v50 }
 0xfd0   : > { %9141 = vmatpush3.bf16.msra.mxu1 %v11768_v31 }
 0xfd1   : > { %9142 = vmatprep.subr.bf16.mxu1 %v11572_v50 }
 0xfd4   : > { %9144 = vmatpush3.bf16.msra.mxu1 %v11769_v32 }
 0xfd5   : > { %9145 = vmatprep.subr.bf16.mxu1 %v11572_v50 }
 0xfd8   : > { %9147 = vmatpush3.bf16.msra.mxu1 %v11770_v24 }
 0xfd9   : > { %9148 = vmatprep.subr.bf16.mxu1 %v11572_v50 }
 0xfdc   : > { %9150 = vmatpush3.bf16.msra.mxu1 %v11771_v49 }
 0xfdd   : > { %9151 = vmatprep.subr.bf16.mxu1 %v11572_v50 }
 0xfdf   : > { %7986 = vmatmul.mubr.f32.vlgmr.msra.gmra.mrb[6].mxu1 %v11172_v58 }
 0xfe0   : > { %9153 = vmatpush3.bf16.msra.mxu1 %v10012_v36  ;;  %8020 = vmatprep.mubr.msk.f32.mxu1 %vm9443_vm1, %v11592_v17 }
 0xfe1   : > { %9154 = vmatprep.subr.bf16.mxu1 %v11572_v50 }
 0xfe4   : > { %9156 = vmatpush3.bf16.msra.mxu1 %v10019_v59 }
 0xfe5   : > { %9157 = vmatprep.subr.bf16.mxu1 %v11572_v50 }
 0xfe8   : > { %9159 = vmatpush3.bf16.msra.mxu1 %v11758_v28 }
 0xfe9   : > { %9160 = vmatprep.subr.bf16.mxu1 %v11572_v50 }
 0xfec   : > { %9162 = vmatpush3.bf16.msra.mxu1 %v11759_v61 }
 0xfed   : > { %9163 = vmatprep.subr.bf16.mxu1 %v11572_v50 }
 0xff0   : > { %9165 = vmatpush3.bf16.msra.mxu1 %v11760_v12 }
 0xff1   : > { %9166 = vmatprep.subr.bf16.mxu1 %v11572_v50 }
 0xff4   : > { %9168 = vmatpush3.bf16.msra.mxu1 %v11761_v47 }
 0xff5   : > { %9169 = vmatprep.subr.bf16.mxu1 %v11572_v50 }
 0xff8   : > { %9171 = vmatpush3.bf16.msra.mxu1 %v11762_v1 }
 0xff9   : > { %9172 = vmatprep.subr.bf16.mxu1 %v11572_v50  ;;  %v5472_v50 = vadd.f32 %v5471_v0, %v11775_v8 }
 0xffc   : > { %9174 = vmatpush3.bf16.msra.mxu1 %v11763_v16 }
 0xfff   : > { %8021 = vmatmul.mubr.f32.vlgmr.msra.gmra.mrb[6].mxu1 %v11172_v58 }
0x10d2   : > { %v5461_v17 = vpop.f32.mrb[6].mxu1 }
0x10d3   : > { %v9182_v36 = vadd.f32 %v11674_v54, %v5461_v17  ;;  %v8022_v59 = vpop.f32.mrb[7].mxu1 }
0x10d5   : > { %v5465_v2 = vmax.f32 %v9182_v36, 0.0 }
0x10d7   : > { %v5466_v46 = vmul.f32 %v11772_v53, %v5465_v2 }
0x10d9   : > { %5467 = vadd.xlane.f32.xlu1 %v5466_v46 }
0x1166   : > { %v5468_v39 = vpop.xlane.xlu1 %5467 }
0x1167   : > { %v5469_v40 = vadd.f32 %v11776_v52, %v5468_v39 }
0x1169   : > { %v5473_v55 = vadd.f32 %v5472_v50, %v5469_v40 }
0x116b   : > { %v5474_v5 = vmul.f32 %v5473_v55, %v11777_v63 }
0x116d   : > { %v5475_v33 = vmul.f32 0.125, %v5474_v5 }
0x116f   : > { %v5476_v1 = vadd.f32 %v11778_v19, %v5475_v33  }
0x1171   : > { %5482 = vperm.xlu0 %9307, %v5476_v1  }
0x11ec   :  { %155 = sbr.rel (!%p153_p12) target bundleno = 201 (0xc9), region = 100 }
0x11f0   : > { %v5483_v26 = vpop.permute.xlu0 %5482 }
0x11f1   : > { %v5485_v14 = vsel %vm5479_vm2, %v5483_v26, %v11780_v13  }
0x11f2   : > { %v11781_v46 = vmov %v5485_v14  ;;  %5486 = vst [vmem:[#allocation12] sm:$0xff] (%p153_p12), %v5485_v14 }
0x11f3   :  { %9389 = shalt.err (!%p9386_p3)
}
0x11f4   :  { %s9390_s4 = scalar_lea.hbm %s11310_s14, 128 }
0x11f5   :  { %p9391_p4 = scmp.ne.s32.totalorder %s11310_s14, %s9390_s4  ;;  %p9394_p5 = scmp.lt.u32.totalorder %s9390_s4, %s11310_s14 }
0x11f7   :  { %p9396_p6 = pnand %p9394_p5, %p9391_p4 }
0x11f9   :  { %9399 = shalt.err (!%p9396_p6)
}
0x11fa   :  { %5496 = dma.vmem_to_hbm [thread:$0]  %s5494_s18, 128, %s11310_s14, [#allocation5]  }
0x11fb   :  { %9420 = dma.done.wait [#allocation5], 128  }
0x11fc   :  { %9421 = vsyncadd [#allocation5], 4294967168 }
0x11fd   :  { %5500 = vsyncpa [#allocation4], 1 }
0x11fe   :  { %5501 = vsyncpa [#allocation11], 1 }
0x11ff   :  { %5502 = vsyncpa [#allocation5], 1 }
0x1200   :  { %5503 = vsyncpa [#allocation6], 1 }
0x1201   :  { %5504 = vsyncpa [#allocation8], 1 }

</bundles_post_ra>
